<compile_context>
chip_gen: v7x
topology: tpu7x:2x2x1
jax: 0.10.0
libtpu: 0.0.40
codegen_flags: <defaults>
</compile_context>

<pallas_src>
import functools

import jax
import jax.numpy as jnp
import numpy as np
from jax.experimental import pallas as pl
from jax.experimental.pallas import tpu as pltpu


# ----------------------------- Pallas kernel -------------------------------
def _dense_block_kernel(x_ref, s1_ref, b1_ref, w1_ref, s2_ref, b2_ref, w2_ref,
                        out_ref, feat_ref, pad_ref, patch_ref,
                        *, N, H, W, Cin0, Cmid, G, L, Ct):
    """Fused _DenseBlock: L x (BN1->ReLU->1x1 conv->BN2->ReLU->3x3 conv),
    concatenated feature map kept resident in VMEM."""
    P = N * H * W

    # ---------------- one-time init (outside the layer loop) ----------------
    # Unwritten channel tail must be exact zeros: the matching 1x1-conv weight
    # rows are zero-padded, but 0 * garbage(NaN) would still poison the MXU sum.
    feat_ref[...] = jnp.zeros(feat_ref.shape, feat_ref.dtype)
    feat_ref[:, :Cin0] = x_ref[...]
    # 3x3 halo is zeroed once; only the interior is rewritten per layer.
    pad_ref[...] = jnp.zeros(pad_ref.shape, pad_ref.dtype)
    # K-padding columns of the im2col buffer stay zero for the whole kernel.
    patch_ref[...] = jnp.zeros(patch_ref.shape, patch_ref.dtype)

    # ---------------- layers (static unroll, L is small) --------------------
    for i in range(L):
        cin = Cin0 + i * G                       # valid channels so far (static)

        # BN1 (folded) + ReLU1 in f32, then 1x1 conv as one bf16 MXU matmul.
        feat = feat_ref[...]                                     # (P, CtP) f32
        h = jnp.maximum(feat * s1_ref[i] + b1_ref[i], 0.0)
        h = jnp.dot(h.astype(jnp.bfloat16), w1_ref[i],
                    preferred_element_type=jnp.float32)          # (P, Cmid) f32

        # BN2 (folded) + ReLU2 in f32.
        h = jnp.maximum(h * s2_ref[i] + b2_ref[i], 0.0)

        # 3x3 conv, stride 1, pad 1: write interior of the (pre-zeroed) padded
        # scratch, im2col the 9 taps into (P, 9*Cmid), one K=9*Cmid matmul.
        pad_ref[:, 1:H + 1, 1:W + 1, :] = h.reshape(N, H, W, Cmid)
        for t in range(9):
            dy, dx = t // 3, t % 3
            patch_ref[:, t * Cmid:(t + 1) * Cmid] = (
                pad_ref[:, dy:dy + H, dx:dx + W, :]
                .reshape(P, Cmid).astype(jnp.bfloat16))
        new = jnp.dot(patch_ref[...], w2_ref[i],
                      preferred_element_type=jnp.float32)        # (P, G) f32

        # drop_rate == 0 -> dropout is identity.  Append the new features.
        feat_ref[:, cin:cin + G] = new

    # Single lane-contiguous writeback of the full concatenated feature map.
    out_ref[...] = feat_ref[:, :Ct]


def _pack_params(layer_params, ctp, kp):
    """Stack per-layer params into uniform arrays (zero-padded K dims, bf16
    MXU weights, f32 BN scale/bias)."""
    s1s, b1s, w1s, s2s, b2s, w2s = [], [], [], [], [], []
    for (s1, b1, w1, s2, b2, w2) in layer_params:
        cin = w1.shape[0]
        s1s.append(jnp.pad(s1, ((0, 0), (0, ctp - cin))))
        b1s.append(jnp.pad(b1, ((0, 0), (0, ctp - cin))))
        w1s.append(jnp.pad(w1, ((0, ctp - cin), (0, 0))).astype(jnp.bfloat16))
        s2s.append(s2)
        b2s.append(b2)
        w2f = w2.reshape(-1, w2.shape[-1])          # (9*Cmid, G), tap-major
        w2s.append(jnp.pad(w2f, ((0, kp - w2f.shape[0]), (0, 0)))
                   .astype(jnp.bfloat16))
    return (jnp.stack(s1s), jnp.stack(b1s), jnp.stack(w1s),
            jnp.stack(s2s), jnp.stack(b2s), jnp.stack(w2s))


def dense_block_pallas(x_nhwc, layer_params, growth_rate):
    """_DenseBlock.forward, fully fused into one Pallas kernel."""
    N, H, W, Cin0 = x_nhwc.shape
    L = len(layer_params)
    G = growth_rate
    Cmid = layer_params[0][2].shape[1]
    Ct = Cin0 + L * G
    P = N * H * W
    lane = 128
    CtP = ((Ct + lane - 1) // lane) * lane          # padded concat width (K of conv1)
    KP = ((9 * Cmid + lane - 1) // lane) * lane     # padded im2col width (K of conv2)

    packed = _pack_params(layer_params, CtP, KP)
    x2d = x_nhwc.reshape(P, Cin0)

    kernel = functools.partial(_dense_block_kernel, N=N, H=H, W=W,
                               Cin0=Cin0, Cmid=Cmid, G=G, L=L, Ct=Ct)

    # TODO(synk): at real DenseNet-121 shapes (56x56 spatial, C up to ~512,
    # larger batch) this gridless whole-block-in-VMEM design must be tiled
    # over N/H with a 1-row halo (BlockSpec grid, "parallel" spatial axis) to
    # fit v7x's 64 MiB VMEM and use both of its TensorCores.
    out2d = pl.pallas_call(
        kernel,
        out_shape=jax.ShapeDtypeStruct((P, Ct), jnp.float32),
        in_specs=[pl.BlockSpec(memory_space=pltpu.MemorySpace.VMEM)] * 7,
        out_specs=pl.BlockSpec(memory_space=pltpu.MemorySpace.VMEM),
        scratch_shapes=[
            pltpu.VMEM((P, CtP), jnp.float32),                 # concat feature map
            pltpu.VMEM((N, H + 2, W + 2, Cmid), jnp.float32),  # 3x3 padded activation
            pltpu.VMEM((P, KP), jnp.bfloat16),                 # im2col patches
        ],
    )(x2d, *packed)
    return out2d.reshape(N, H, W, Ct)


# ----------------------------- pure-JAX reference ---------------------------
def dense_block_ref(x_nhwc, layer_params, matmul_dtype=jnp.float32):
    """Reference.  With matmul_dtype=float32 this is the exact eval-mode
    PyTorch math; with bfloat16 it matches the kernel's MXU numerics
    (bf16 operands, f32 accumulation)."""
    feats = [x_nhwc]
    for (s1, b1, w1, s2, b2, w2) in layer_params:
        xcat = jnp.concatenate(feats, axis=-1)
        h = jnp.maximum(xcat * s1 + b1, 0.0)
        h = jnp.einsum('nhwc,cd->nhwd',
                       h.astype(matmul_dtype), w1.astype(matmul_dtype),
                       preferred_element_type=jnp.float32)
        h = jnp.maximum(h * s2 + b2, 0.0)
        w2_hwio = w2.reshape(3, 3, w2.shape[1], w2.shape[2])
        h = jax.lax.conv_general_dilated(
            h.astype(matmul_dtype), w2_hwio.astype(matmul_dtype),
            window_strides=(1, 1), padding='SAME',
            dimension_numbers=('NHWC', 'HWIO', 'NHWC'),
            preferred_element_type=jnp.float32)
        feats.append(h)
    return jnp.concatenate(feats, axis=-1)


# ----------------------------- parameter init -------------------------------
def make_params(key, num_layers, num_input_features, bn_size, growth_rate):
    """Deterministic synthetic params; BatchNorm folded to (scale, bias)."""
    params = []
    cmid = bn_size * growth_rate
    eps = 1e-5
    for i in range(num_layers):
        cin = num_input_features + i * growth_rate
        key, *ks = jax.random.split(key, 11)
        g1 = jax.random.uniform(ks[0], (1, cin), jnp.float32, 0.5, 1.5)
        b1 = 0.1 * jax.random.normal(ks[1], (1, cin), jnp.float32)
        m1 = 0.1 * jax.random.normal(ks[2], (1, cin), jnp.float32)
        v1 = jax.random.uniform(ks[3], (1, cin), jnp.float32, 0.5, 1.5)
        scale1 = g1 / jnp.sqrt(v1 + eps)
        bias1 = b1 - m1 * scale1

        w1 = jax.random.normal(ks[4], (cin, cmid), jnp.float32) / np.sqrt(cin)

        g2 = jax.random.uniform(ks[5], (1, cmid), jnp.float32, 0.5, 1.5)
        b2 = 0.1 * jax.random.normal(ks[6], (1, cmid), jnp.float32)
        m2 = 0.1 * jax.random.normal(ks[7], (1, cmid), jnp.float32)
        v2 = jax.random.uniform(ks[8], (1, cmid), jnp.float32, 0.5, 1.5)
        scale2 = g2 / jnp.sqrt(v2 + eps)
        bias2 = b2 - m2 * scale2

        w2 = jax.random.normal(ks[9], (9, cmid, growth_rate),
                               jnp.float32) / np.sqrt(9 * cmid)
        params.append((scale1, bias1, w1, scale2, bias2, w2))
    return params


# ----------------------------- main -----------------------------------------
if __name__ == "__main__":
    # _DenseBlock(num_layers=3, num_input_features=32, bn_size=4,
    #             growth_rate=16, drop_rate=0.0)
    num_layers, num_input_features, bn_size, growth_rate = 3, 32, 4, 16
    N, H, W = 2, 8, 8

    key = jax.random.PRNGKey(0)
    key, kx = jax.random.split(key)
    x_nchw = jax.random.normal(kx, (N, num_input_features, H, W), jnp.float32)
    x_nhwc = jnp.transpose(x_nchw, (0, 2, 3, 1))

    params = make_params(key, num_layers, num_input_features, bn_size, growth_rate)

    out_nhwc = dense_block_pallas(x_nhwc, params, growth_rate)
    out_nhwc = jax.block_until_ready(out_nhwc)
    out_nchw = jnp.transpose(out_nhwc, (0, 3, 1, 2))  # back to PyTorch layout

    # Correctness check against a pure-JAX reference with matching bf16
    # matmul operands (f32 accumulation), i.e. the same numerics the kernel
    # intentionally uses on the MXU.
    ref_nhwc = dense_block_ref(x_nhwc, params, matmul_dtype=jnp.bfloat16)
    assert out_nchw.shape == (N, num_input_features + num_layers * growth_rate, H, W)
    assert np.allclose(np.asarray(out_nhwc), np.asarray(ref_nhwc),
                       atol=2e-2, rtol=2e-2), "Pallas output mismatch vs reference"

    # TODO(synk): training-mode BatchNorm (batch statistics) and dropout with
    # drop_rate > 0 are not implemented; this kernel models eval-mode inference.
    print("KERNEL_OK")
</pallas_src>

<mosaic_0001>
module attributes {stable_mosaic.version = 11 : i64} {
  func.func @_dense_block_kernel(%arg0: memref<128x32xf32, #tpu.memory_space<vmem>>, %arg1: memref<3x1x128xf32, #tpu.memory_space<vmem>>, %arg2: memref<3x1x128xf32, #tpu.memory_space<vmem>>, %arg3: memref<3x128x64xbf16, #tpu.memory_space<vmem>>, %arg4: memref<3x1x64xf32, #tpu.memory_space<vmem>>, %arg5: memref<3x1x64xf32, #tpu.memory_space<vmem>>, %arg6: memref<3x640x16xbf16, #tpu.memory_space<vmem>>, %arg7: memref<128x80xf32, #tpu.memory_space<vmem>>, %arg8: memref<128x128xf32, #tpu.memory_space<vmem>>, %arg9: memref<2x10x10x64xf32, #tpu.memory_space<vmem>>, %arg10: memref<128x640xbf16, #tpu.memory_space<vmem>>) attributes {dimension_semantics = [], scalar_prefetch = 0 : i64, scratch_operands = 3 : i64, tpu.core_type = #tpu.core_type<tc>} {
    %cst = arith.constant 0.000000e+00 : f32
    %0 = vector.broadcast %cst : f32 to vector<128x128xf32>
    %c0 = arith.constant 0 : index
    %c0_0 = arith.constant 0 : index
    %1 = vector.load %arg8[%c0, %c0_0] : memref<128x128xf32, #tpu.memory_space<vmem>>, vector<128x128xf32>
    tpu.vector_store %arg8[%c0, %c0_0], %0 {strides = array<i32>} : memref<128x128xf32, #tpu.memory_space<vmem>>, vector<128x128xf32>,
    %c0_1 = arith.constant 0 : index
    %c0_2 = arith.constant 0 : index
    %2 = vector.load %arg0[%c0_1, %c0_2] : memref<128x32xf32, #tpu.memory_space<vmem>>, vector<128x32xf32>
    %c0_3 = arith.constant 0 : index
    %c0_4 = arith.constant 0 : index
    %3 = vector.load %arg8[%c0_3, %c0_4] : memref<128x128xf32, #tpu.memory_space<vmem>>, vector<128x32xf32>
    tpu.vector_store %arg8[%c0_3, %c0_4], %2 {strides = array<i32>} : memref<128x128xf32, #tpu.memory_space<vmem>>, vector<128x32xf32>,
    %cst_5 = arith.constant 0.000000e+00 : f32
    %4 = vector.broadcast %cst_5 : f32 to vector<2x10x10x64xf32>
    %c0_6 = arith.constant 0 : index
    %c0_7 = arith.constant 0 : index
    %c0_8 = arith.constant 0 : index
    %c0_9 = arith.constant 0 : index
    %5 = vector.load %arg9[%c0_6, %c0_7, %c0_8, %c0_9] : memref<2x10x10x64xf32, #tpu.memory_space<vmem>>, vector<2x10x10x64xf32>
    tpu.vector_store %arg9[%c0_6, %c0_7, %c0_8, %c0_9], %4 {strides = array<i32>} : memref<2x10x10x64xf32, #tpu.memory_space<vmem>>, vector<2x10x10x64xf32>,
    %cst_10 = arith.constant 0.000000e+00 : bf16
    %6 = vector.broadcast %cst_10 : bf16 to vector<128x640xbf16>
    %c0_11 = arith.constant 0 : index
    %c0_12 = arith.constant 0 : index
    %7 = vector.load %arg10[%c0_11, %c0_12] : memref<128x640xbf16, #tpu.memory_space<vmem>>, vector<128x640xbf16>
    tpu.vector_store %arg10[%c0_11, %c0_12], %6 {strides = array<i32>} : memref<128x640xbf16, #tpu.memory_space<vmem>>, vector<128x640xbf16>,
    %c0_13 = arith.constant 0 : index
    %c0_14 = arith.constant 0 : index
    %8 = vector.load %arg8[%c0_13, %c0_14] : memref<128x128xf32, #tpu.memory_space<vmem>>, vector<128x128xf32>
    %c0_15 = arith.constant 0 : index
    %c0_16 = arith.constant 0 : index
    %c0_17 = arith.constant 0 : index
    %9 = vector.load %arg1[%c0_15, %c0_16, %c0_17] : memref<3x1x128xf32, #tpu.memory_space<vmem>>, vector<1x1x128xf32>
    %10 = vector.shape_cast %9 : vector<1x1x128xf32> to vector<1x128xf32>
    %11 = vector.broadcast %10 : vector<1x128xf32> to vector<128x128xf32>
    %12 = arith.mulf %8, %11 : vector<128x128xf32>
    %c0_18 = arith.constant 0 : index
    %c0_19 = arith.constant 0 : index
    %c0_20 = arith.constant 0 : index
    %13 = vector.load %arg2[%c0_18, %c0_19, %c0_20] : memref<3x1x128xf32, #tpu.memory_space<vmem>>, vector<1x1x128xf32>
    %14 = vector.shape_cast %13 : vector<1x1x128xf32> to vector<1x128xf32>
    %15 = vector.broadcast %14 : vector<1x128xf32> to vector<128x128xf32>
    %16 = arith.addf %12, %15 : vector<128x128xf32>
    %cst_21 = arith.constant 0.000000e+00 : f32
    %17 = vector.broadcast %cst_21 : f32 to vector<128x128xf32>
    %18 = arith.maximumf %16, %17 : vector<128x128xf32>
    %19 = arith.truncf %18 : vector<128x128xf32> to vector<128x128xbf16>
    %c0_22 = arith.constant 0 : index
    %c0_23 = arith.constant 0 : index
    %c0_24 = arith.constant 0 : index
    %20 = vector.load %arg3[%c0_22, %c0_23, %c0_24] : memref<3x128x64xbf16, #tpu.memory_space<vmem>>, vector<1x128x64xbf16>
    %21 = vector.shape_cast %20 : vector<1x128x64xbf16> to vector<128x64xbf16>
    %cst_25 = arith.constant dense<0.000000e+00> : vector<128x64xf32>
    %22 = tpu.matmul %19, %21, %cst_25 {dimension_numbers = #tpu.dot_dimension_numbers<[1], [0], [0], [1], [0, 0, 1, 1], [], []>} : vector<128x128xbf16>, vector<128x64xbf16>, vector<128x64xf32> -> vector<128x64xf32>
    %c0_26 = arith.constant 0 : index
    %c0_27 = arith.constant 0 : index
    %c0_28 = arith.constant 0 : index
    %23 = vector.load %arg4[%c0_26, %c0_27, %c0_28] : memref<3x1x64xf32, #tpu.memory_space<vmem>>, vector<1x1x64xf32>
    %24 = vector.shape_cast %23 : vector<1x1x64xf32> to vector<1x64xf32>
    %25 = vector.broadcast %24 : vector<1x64xf32> to vector<128x64xf32>
    %26 = arith.mulf %22, %25 : vector<128x64xf32>
    %c0_29 = arith.constant 0 : index
    %c0_30 = arith.constant 0 : index
    %c0_31 = arith.constant 0 : index
    %27 = vector.load %arg5[%c0_29, %c0_30, %c0_31] : memref<3x1x64xf32, #tpu.memory_space<vmem>>, vector<1x1x64xf32>
    %28 = vector.shape_cast %27 : vector<1x1x64xf32> to vector<1x64xf32>
    %29 = vector.broadcast %28 : vector<1x64xf32> to vector<128x64xf32>
    %30 = arith.addf %26, %29 : vector<128x64xf32>
    %cst_32 = arith.constant 0.000000e+00 : f32
    %31 = vector.broadcast %cst_32 : f32 to vector<128x64xf32>
    %32 = arith.maximumf %30, %31 : vector<128x64xf32>
    %33 = vector.shape_cast %32 : vector<128x64xf32> to vector<2x8x8x64xf32>
    %c0_33 = arith.constant 0 : index
    %c1 = arith.constant 1 : index
    %c1_34 = arith.constant 1 : index
    %c0_35 = arith.constant 0 : index
    %34 = vector.load %arg9[%c0_33, %c1, %c1_34, %c0_35] : memref<2x10x10x64xf32, #tpu.memory_space<vmem>>, vector<2x8x8x64xf32>
    tpu.vector_store %arg9[%c0_33, %c1, %c1_34, %c0_35], %33 {strides = array<i32>} : memref<2x10x10x64xf32, #tpu.memory_space<vmem>>, vector<2x8x8x64xf32>,
    %c0_36 = arith.constant 0 : index
    %c0_37 = arith.constant 0 : index
    %c0_38 = arith.constant 0 : index
    %c0_39 = arith.constant 0 : index
    %35 = vector.load %arg9[%c0_36, %c0_37, %c0_38, %c0_39] : memref<2x10x10x64xf32, #tpu.memory_space<vmem>>, vector<2x8x8x64xf32>
    %36 = vector.shape_cast %35 : vector<2x8x8x64xf32> to vector<128x64xf32>
    %37 = arith.truncf %36 : vector<128x64xf32> to vector<128x64xbf16>
    %c0_40 = arith.constant 0 : index
    %c0_41 = arith.constant 0 : index
    %38 = vector.load %arg10[%c0_40, %c0_41] : memref<128x640xbf16, #tpu.memory_space<vmem>>, vector<128x64xbf16>
    tpu.vector_store %arg10[%c0_40, %c0_41], %37 {strides = array<i32>} : memref<128x640xbf16, #tpu.memory_space<vmem>>, vector<128x64xbf16>,
    %c0_42 = arith.constant 0 : index
    %c0_43 = arith.constant 0 : index
    %c1_44 = arith.constant 1 : index
    %c0_45 = arith.constant 0 : index
    %39 = vector.load %arg9[%c0_42, %c0_43, %c1_44, %c0_45] : memref<2x10x10x64xf32, #tpu.memory_space<vmem>>, vector<2x8x8x64xf32>
    %40 = vector.shape_cast %39 : vector<2x8x8x64xf32> to vector<128x64xf32>
    %41 = arith.truncf %40 : vector<128x64xf32> to vector<128x64xbf16>
    %c0_46 = arith.constant 0 : index
    %c64 = arith.constant 64 : index
    %42 = vector.load %arg10[%c0_46, %c64] : memref<128x640xbf16, #tpu.memory_space<vmem>>, vector<128x64xbf16>
    tpu.vector_store %arg10[%c0_46, %c64], %41 {strides = array<i32>} : memref<128x640xbf16, #tpu.memory_space<vmem>>, vector<128x64xbf16>,
    %c0_47 = arith.constant 0 : index
    %c0_48 = arith.constant 0 : index
    %c2 = arith.constant 2 : index
    %c0_49 = arith.constant 0 : index
    %43 = vector.load %arg9[%c0_47, %c0_48, %c2, %c0_49] : memref<2x10x10x64xf32, #tpu.memory_space<vmem>>, vector<2x8x8x64xf32>
    %44 = vector.shape_cast %43 : vector<2x8x8x64xf32> to vector<128x64xf32>
    %45 = arith.truncf %44 : vector<128x64xf32> to vector<128x64xbf16>
    %c0_50 = arith.constant 0 : index
    %c128 = arith.constant 128 : index
    %46 = vector.load %arg10[%c0_50, %c128] : memref<128x640xbf16, #tpu.memory_space<vmem>>, vector<128x64xbf16>
    tpu.vector_store %arg10[%c0_50, %c128], %45 {strides = array<i32>} : memref<128x640xbf16, #tpu.memory_space<vmem>>, vector<128x64xbf16>,
    %c0_51 = arith.constant 0 : index
    %c1_52 = arith.constant 1 : index
    %c0_53 = arith.constant 0 : index
    %c0_54 = arith.constant 0 : index
    %47 = vector.load %arg9[%c0_51, %c1_52, %c0_53, %c0_54] : memref<2x10x10x64xf32, #tpu.memory_space<vmem>>, vector<2x8x8x64xf32>
    %48 = vector.shape_cast %47 : vector<2x8x8x64xf32> to vector<128x64xf32>
    %49 = arith.truncf %48 : vector<128x64xf32> to vector<128x64xbf16>
    %c0_55 = arith.constant 0 : index
    %c192 = arith.constant 192 : index
    %50 = vector.load %arg10[%c0_55, %c192] : memref<128x640xbf16, #tpu.memory_space<vmem>>, vector<128x64xbf16>
    tpu.vector_store %arg10[%c0_55, %c192], %49 {strides = array<i32>} : memref<128x640xbf16, #tpu.memory_space<vmem>>, vector<128x64xbf16>,
    %c0_56 = arith.constant 0 : index
    %c1_57 = arith.constant 1 : index
    %c1_58 = arith.constant 1 : index
    %c0_59 = arith.constant 0 : index
    %51 = vector.load %arg9[%c0_56, %c1_57, %c1_58, %c0_59] : memref<2x10x10x64xf32, #tpu.memory_space<vmem>>, vector<2x8x8x64xf32>
    %52 = vector.shape_cast %51 : vector<2x8x8x64xf32> to vector<128x64xf32>
    %53 = arith.truncf %52 : vector<128x64xf32> to vector<128x64xbf16>
    %c0_60 = arith.constant 0 : index
    %c256 = arith.constant 256 : index
    %54 = vector.load %arg10[%c0_60, %c256] : memref<128x640xbf16, #tpu.memory_space<vmem>>, vector<128x64xbf16>
    tpu.vector_store %arg10[%c0_60, %c256], %53 {strides = array<i32>} : memref<128x640xbf16, #tpu.memory_space<vmem>>, vector<128x64xbf16>,
    %c0_61 = arith.constant 0 : index
    %c1_62 = arith.constant 1 : index
    %c2_63 = arith.constant 2 : index
    %c0_64 = arith.constant 0 : index
    %55 = vector.load %arg9[%c0_61, %c1_62, %c2_63, %c0_64] : memref<2x10x10x64xf32, #tpu.memory_space<vmem>>, vector<2x8x8x64xf32>
    %56 = vector.shape_cast %55 : vector<2x8x8x64xf32> to vector<128x64xf32>
    %57 = arith.truncf %56 : vector<128x64xf32> to vector<128x64xbf16>
    %c0_65 = arith.constant 0 : index
    %c320 = arith.constant 320 : index
    %58 = vector.load %arg10[%c0_65, %c320] : memref<128x640xbf16, #tpu.memory_space<vmem>>, vector<128x64xbf16>
    tpu.vector_store %arg10[%c0_65, %c320], %57 {strides = array<i32>} : memref<128x640xbf16, #tpu.memory_space<vmem>>, vector<128x64xbf16>,
    %c0_66 = arith.constant 0 : index
    %c2_67 = arith.constant 2 : index
    %c0_68 = arith.constant 0 : index
    %c0_69 = arith.constant 0 : index
    %59 = vector.load %arg9[%c0_66, %c2_67, %c0_68, %c0_69] : memref<2x10x10x64xf32, #tpu.memory_space<vmem>>, vector<2x8x8x64xf32>
    %60 = vector.shape_cast %59 : vector<2x8x8x64xf32> to vector<128x64xf32>
    %61 = arith.truncf %60 : vector<128x64xf32> to vector<128x64xbf16>
    %c0_70 = arith.constant 0 : index
    %c384 = arith.constant 384 : index
    %62 = vector.load %arg10[%c0_70, %c384] : memref<128x640xbf16, #tpu.memory_space<vmem>>, vector<128x64xbf16>
    tpu.vector_store %arg10[%c0_70, %c384], %61 {strides = array<i32>} : memref<128x640xbf16, #tpu.memory_space<vmem>>, vector<128x64xbf16>,
    %c0_71 = arith.constant 0 : index
    %c2_72 = arith.constant 2 : index
    %c1_73 = arith.constant 1 : index
    %c0_74 = arith.constant 0 : index
    %63 = vector.load %arg9[%c0_71, %c2_72, %c1_73, %c0_74] : memref<2x10x10x64xf32, #tpu.memory_space<vmem>>, vector<2x8x8x64xf32>
    %64 = vector.shape_cast %63 : vector<2x8x8x64xf32> to vector<128x64xf32>
    %65 = arith.truncf %64 : vector<128x64xf32> to vector<128x64xbf16>
    %c0_75 = arith.constant 0 : index
    %c448 = arith.constant 448 : index
    %66 = vector.load %arg10[%c0_75, %c448] : memref<128x640xbf16, #tpu.memory_space<vmem>>, vector<128x64xbf16>
    tpu.vector_store %arg10[%c0_75, %c448], %65 {strides = array<i32>} : memref<128x640xbf16, #tpu.memory_space<vmem>>, vector<128x64xbf16>,
    %c0_76 = arith.constant 0 : index
    %c2_77 = arith.constant 2 : index
    %c2_78 = arith.constant 2 : index
    %c0_79 = arith.constant 0 : index
    %67 = vector.load %arg9[%c0_76, %c2_77, %c2_78, %c0_79] : memref<2x10x10x64xf32, #tpu.memory_space<vmem>>, vector<2x8x8x64xf32>
    %68 = vector.shape_cast %67 : vector<2x8x8x64xf32> to vector<128x64xf32>
    %69 = arith.truncf %68 : vector<128x64xf32> to vector<128x64xbf16>
    %c0_80 = arith.constant 0 : index
    %c512 = arith.constant 512 : index
    %70 = vector.load %arg10[%c0_80, %c512] : memref<128x640xbf16, #tpu.memory_space<vmem>>, vector<128x64xbf16>
    tpu.vector_store %arg10[%c0_80, %c512], %69 {strides = array<i32>} : memref<128x640xbf16, #tpu.memory_space<vmem>>, vector<128x64xbf16>,
    %c0_81 = arith.constant 0 : index
    %c0_82 = arith.constant 0 : index
    %71 = vector.load %arg10[%c0_81, %c0_82] : memref<128x640xbf16, #tpu.memory_space<vmem>>, vector<128x640xbf16>
    %c0_83 = arith.constant 0 : index
    %c0_84 = arith.constant 0 : index
    %c0_85 = arith.constant 0 : index
    %72 = vector.load %arg6[%c0_83, %c0_84, %c0_85] : memref<3x640x16xbf16, #tpu.memory_space<vmem>>, vector<1x640x16xbf16>
    %73 = vector.shape_cast %72 : vector<1x640x16xbf16> to vector<640x16xbf16>
    %cst_86 = arith.constant dense<0.000000e+00> : vector<128x16xf32>
    %74 = tpu.matmul %71, %73, %cst_86 {dimension_numbers = #tpu.dot_dimension_numbers<[1], [0], [0], [1], [0, 0, 1, 1], [], []>} : vector<128x640xbf16>, vector<640x16xbf16>, vector<128x16xf32> -> vector<128x16xf32>
    %c0_87 = arith.constant 0 : index
    %c32 = arith.constant 32 : index
    %75 = vector.load %arg8[%c0_87, %c32] : memref<128x128xf32, #tpu.memory_space<vmem>>, vector<128x16xf32>
    tpu.vector_store %arg8[%c0_87, %c32], %74 {strides = array<i32>} : memref<128x128xf32, #tpu.memory_space<vmem>>, vector<128x16xf32>,
    %c0_88 = arith.constant 0 : index
    %c0_89 = arith.constant 0 : index
    %76 = vector.load %arg8[%c0_88, %c0_89] : memref<128x128xf32, #tpu.memory_space<vmem>>, vector<128x128xf32>
    %c1_90 = arith.constant 1 : index
    %c0_91 = arith.constant 0 : index
    %c0_92 = arith.constant 0 : index
    %77 = vector.load %arg1[%c1_90, %c0_91, %c0_92] : memref<3x1x128xf32, #tpu.memory_space<vmem>>, vector<1x1x128xf32>
    %78 = vector.shape_cast %77 : vector<1x1x128xf32> to vector<1x128xf32>
    %79 = vector.broadcast %78 : vector<1x128xf32> to vector<128x128xf32>
    %80 = arith.mulf %76, %79 : vector<128x128xf32>
    %c1_93 = arith.constant 1 : index
    %c0_94 = arith.constant 0 : index
    %c0_95 = arith.constant 0 : index
    %81 = vector.load %arg2[%c1_93, %c0_94, %c0_95] : memref<3x1x128xf32, #tpu.memory_space<vmem>>, vector<1x1x128xf32>
    %82 = vector.shape_cast %81 : vector<1x1x128xf32> to vector<1x128xf32>
    %83 = vector.broadcast %82 : vector<1x128xf32> to vector<128x128xf32>
    %84 = arith.addf %80, %83 : vector<128x128xf32>
    %cst_96 = arith.constant 0.000000e+00 : f32
    %85 = vector.broadcast %cst_96 : f32 to vector<128x128xf32>
    %86 = arith.maximumf %84, %85 : vector<128x128xf32>
    %87 = arith.truncf %86 : vector<128x128xf32> to vector<128x128xbf16>
    %c1_97 = arith.constant 1 : index
    %c0_98 = arith.constant 0 : index
    %c0_99 = arith.constant 0 : index
    %88 = vector.load %arg3[%c1_97, %c0_98, %c0_99] : memref<3x128x64xbf16, #tpu.memory_space<vmem>>, vector<1x128x64xbf16>
    %89 = vector.shape_cast %88 : vector<1x128x64xbf16> to vector<128x64xbf16>
    %cst_100 = arith.constant dense<0.000000e+00> : vector<128x64xf32>
    %90 = tpu.matmul %87, %89, %cst_100 {dimension_numbers = #tpu.dot_dimension_numbers<[1], [0], [0], [1], [0, 0, 1, 1], [], []>} : vector<128x128xbf16>, vector<128x64xbf16>, vector<128x64xf32> -> vector<128x64xf32>
    %c1_101 = arith.constant 1 : index
    %c0_102 = arith.constant 0 : index
    %c0_103 = arith.constant 0 : index
    %91 = vector.load %arg4[%c1_101, %c0_102, %c0_103] : memref<3x1x64xf32, #tpu.memory_space<vmem>>, vector<1x1x64xf32>
    %92 = vector.shape_cast %91 : vector<1x1x64xf32> to vector<1x64xf32>
    %93 = vector.broadcast %92 : vector<1x64xf32> to vector<128x64xf32>
    %94 = arith.mulf %90, %93 : vector<128x64xf32>
    %c1_104 = arith.constant 1 : index
    %c0_105 = arith.constant 0 : index
    %c0_106 = arith.constant 0 : index
    %95 = vector.load %arg5[%c1_104, %c0_105, %c0_106] : memref<3x1x64xf32, #tpu.memory_space<vmem>>, vector<1x1x64xf32>
    %96 = vector.shape_cast %95 : vector<1x1x64xf32> to vector<1x64xf32>
    %97 = vector.broadcast %96 : vector<1x64xf32> to vector<128x64xf32>
    %98 = arith.addf %94, %97 : vector<128x64xf32>
    %cst_107 = arith.constant 0.000000e+00 : f32
    %99 = vector.broadcast %cst_107 : f32 to vector<128x64xf32>
    %100 = arith.maximumf %98, %99 : vector<128x64xf32>
    %101 = vector.shape_cast %100 : vector<128x64xf32> to vector<2x8x8x64xf32>
    %c0_108 = arith.constant 0 : index
    %c1_109 = arith.constant 1 : index
    %c1_110 = arith.constant 1 : index
    %c0_111 = arith.constant 0 : index
    %102 = vector.load %arg9[%c0_108, %c1_109, %c1_110, %c0_111] : memref<2x10x10x64xf32, #tpu.memory_space<vmem>>, vector<2x8x8x64xf32>
    tpu.vector_store %arg9[%c0_108, %c1_109, %c1_110, %c0_111], %101 {strides = array<i32>} : memref<2x10x10x64xf32, #tpu.memory_space<vmem>>, vector<2x8x8x64xf32>,
    %c0_112 = arith.constant 0 : index
    %c0_113 = arith.constant 0 : index
    %c0_114 = arith.constant 0 : index
    %c0_115 = arith.constant 0 : index
    %103 = vector.load %arg9[%c0_112, %c0_113, %c0_114, %c0_115] : memref<2x10x10x64xf32, #tpu.memory_space<vmem>>, vector<2x8x8x64xf32>
    %104 = vector.shape_cast %103 : vector<2x8x8x64xf32> to vector<128x64xf32>
    %105 = arith.truncf %104 : vector<128x64xf32> to vector<128x64xbf16>
    %c0_116 = arith.constant 0 : index
    %c0_117 = arith.constant 0 : index
    %106 = vector.load %arg10[%c0_116, %c0_117] : memref<128x640xbf16, #tpu.memory_space<vmem>>, vector<128x64xbf16>
    tpu.vector_store %arg10[%c0_116, %c0_117], %105 {strides = array<i32>} : memref<128x640xbf16, #tpu.memory_space<vmem>>, vector<128x64xbf16>,
    %c0_118 = arith.constant 0 : index
    %c0_119 = arith.constant 0 : index
    %c1_120 = arith.constant 1 : index
    %c0_121 = arith.constant 0 : index
    %107 = vector.load %arg9[%c0_118, %c0_119, %c1_120, %c0_121] : memref<2x10x10x64xf32, #tpu.memory_space<vmem>>, vector<2x8x8x64xf32>
    %108 = vector.shape_cast %107 : vector<2x8x8x64xf32> to vector<128x64xf32>
    %109 = arith.truncf %108 : vector<128x64xf32> to vector<128x64xbf16>
    %c0_122 = arith.constant 0 : index
    %c64_123 = arith.constant 64 : index
    %110 = vector.load %arg10[%c0_122, %c64_123] : memref<128x640xbf16, #tpu.memory_space<vmem>>, vector<128x64xbf16>
    tpu.vector_store %arg10[%c0_122, %c64_123], %109 {strides = array<i32>} : memref<128x640xbf16, #tpu.memory_space<vmem>>, vector<128x64xbf16>,
    %c0_124 = arith.constant 0 : index
    %c0_125 = arith.constant 0 : index
    %c2_126 = arith.constant 2 : index
    %c0_127 = arith.constant 0 : index
    %111 = vector.load %arg9[%c0_124, %c0_125, %c2_126, %c0_127] : memref<2x10x10x64xf32, #tpu.memory_space<vmem>>, vector<2x8x8x64xf32>
    %112 = vector.shape_cast %111 : vector<2x8x8x64xf32> to vector<128x64xf32>
    %113 = arith.truncf %112 : vector<128x64xf32> to vector<128x64xbf16>
    %c0_128 = arith.constant 0 : index
    %c128_129 = arith.constant 128 : index
    %114 = vector.load %arg10[%c0_128, %c128_129] : memref<128x640xbf16, #tpu.memory_space<vmem>>, vector<128x64xbf16>
    tpu.vector_store %arg10[%c0_128, %c128_129], %113 {strides = array<i32>} : memref<128x640xbf16, #tpu.memory_space<vmem>>, vector<128x64xbf16>,
    %c0_130 = arith.constant 0 : index
    %c1_131 = arith.constant 1 : index
    %c0_132 = arith.constant 0 : index
    %c0_133 = arith.constant 0 : index
    %115 = vector.load %arg9[%c0_130, %c1_131, %c0_132, %c0_133] : memref<2x10x10x64xf32, #tpu.memory_space<vmem>>, vector<2x8x8x64xf32>
    %116 = vector.shape_cast %115 : vector<2x8x8x64xf32> to vector<128x64xf32>
    %117 = arith.truncf %116 : vector<128x64xf32> to vector<128x64xbf16>
    %c0_134 = arith.constant 0 : index
    %c192_135 = arith.constant 192 : index
    %118 = vector.load %arg10[%c0_134, %c192_135] : memref<128x640xbf16, #tpu.memory_space<vmem>>, vector<128x64xbf16>
    tpu.vector_store %arg10[%c0_134, %c192_135], %117 {strides = array<i32>} : memref<128x640xbf16, #tpu.memory_space<vmem>>, vector<128x64xbf16>,
    %c0_136 = arith.constant 0 : index
    %c1_137 = arith.constant 1 : index
    %c1_138 = arith.constant 1 : index
    %c0_139 = arith.constant 0 : index
    %119 = vector.load %arg9[%c0_136, %c1_137, %c1_138, %c0_139] : memref<2x10x10x64xf32, #tpu.memory_space<vmem>>, vector<2x8x8x64xf32>
    %120 = vector.shape_cast %119 : vector<2x8x8x64xf32> to vector<128x64xf32>
    %121 = arith.truncf %120 : vector<128x64xf32> to vector<128x64xbf16>
    %c0_140 = arith.constant 0 : index
    %c256_141 = arith.constant 256 : index
    %122 = vector.load %arg10[%c0_140, %c256_141] : memref<128x640xbf16, #tpu.memory_space<vmem>>, vector<128x64xbf16>
    tpu.vector_store %arg10[%c0_140, %c256_141], %121 {strides = array<i32>} : memref<128x640xbf16, #tpu.memory_space<vmem>>, vector<128x64xbf16>,
    %c0_142 = arith.constant 0 : index
    %c1_143 = arith.constant 1 : index
    %c2_144 = arith.constant 2 : index
    %c0_145 = arith.constant 0 : index
    %123 = vector.load %arg9[%c0_142, %c1_143, %c2_144, %c0_145] : memref<2x10x10x64xf32, #tpu.memory_space<vmem>>, vector<2x8x8x64xf32>
    %124 = vector.shape_cast %123 : vector<2x8x8x64xf32> to vector<128x64xf32>
    %125 = arith.truncf %124 : vector<128x64xf32> to vector<128x64xbf16>
    %c0_146 = arith.constant 0 : index
    %c320_147 = arith.constant 320 : index
    %126 = vector.load %arg10[%c0_146, %c320_147] : memref<128x640xbf16, #tpu.memory_space<vmem>>, vector<128x64xbf16>
    tpu.vector_store %arg10[%c0_146, %c320_147], %125 {strides = array<i32>} : memref<128x640xbf16, #tpu.memory_space<vmem>>, vector<128x64xbf16>,
    %c0_148 = arith.constant 0 : index
    %c2_149 = arith.constant 2 : index
    %c0_150 = arith.constant 0 : index
    %c0_151 = arith.constant 0 : index
    %127 = vector.load %arg9[%c0_148, %c2_149, %c0_150, %c0_151] : memref<2x10x10x64xf32, #tpu.memory_space<vmem>>, vector<2x8x8x64xf32>
    %128 = vector.shape_cast %127 : vector<2x8x8x64xf32> to vector<128x64xf32>
    %129 = arith.truncf %128 : vector<128x64xf32> to vector<128x64xbf16>
    %c0_152 = arith.constant 0 : index
    %c384_153 = arith.constant 384 : index
    %130 = vector.load %arg10[%c0_152, %c384_153] : memref<128x640xbf16, #tpu.memory_space<vmem>>, vector<128x64xbf16>
    tpu.vector_store %arg10[%c0_152, %c384_153], %129 {strides = array<i32>} : memref<128x640xbf16, #tpu.memory_space<vmem>>, vector<128x64xbf16>,
    %c0_154 = arith.constant 0 : index
    %c2_155 = arith.constant 2 : index
    %c1_156 = arith.constant 1 : index
    %c0_157 = arith.constant 0 : index
    %131 = vector.load %arg9[%c0_154, %c2_155, %c1_156, %c0_157] : memref<2x10x10x64xf32, #tpu.memory_space<vmem>>, vector<2x8x8x64xf32>
    %132 = vector.shape_cast %131 : vector<2x8x8x64xf32> to vector<128x64xf32>
    %133 = arith.truncf %132 : vector<128x64xf32> to vector<128x64xbf16>
    %c0_158 = arith.constant 0 : index
    %c448_159 = arith.constant 448 : index
    %134 = vector.load %arg10[%c0_158, %c448_159] : memref<128x640xbf16, #tpu.memory_space<vmem>>, vector<128x64xbf16>
    tpu.vector_store %arg10[%c0_158, %c448_159], %133 {strides = array<i32>} : memref<128x640xbf16, #tpu.memory_space<vmem>>, vector<128x64xbf16>,
    %c0_160 = arith.constant 0 : index
    %c2_161 = arith.constant 2 : index
    %c2_162 = arith.constant 2 : index
    %c0_163 = arith.constant 0 : index
    %135 = vector.load %arg9[%c0_160, %c2_161, %c2_162, %c0_163] : memref<2x10x10x64xf32, #tpu.memory_space<vmem>>, vector<2x8x8x64xf32>
    %136 = vector.shape_cast %135 : vector<2x8x8x64xf32> to vector<128x64xf32>
    %137 = arith.truncf %136 : vector<128x64xf32> to vector<128x64xbf16>
    %c0_164 = arith.constant 0 : index
    %c512_165 = arith.constant 512 : index
    %138 = vector.load %arg10[%c0_164, %c512_165] : memref<128x640xbf16, #tpu.memory_space<vmem>>, vector<128x64xbf16>
    tpu.vector_store %arg10[%c0_164, %c512_165], %137 {strides = array<i32>} : memref<128x640xbf16, #tpu.memory_space<vmem>>, vector<128x64xbf16>,
    %c0_166 = arith.constant 0 : index
    %c0_167 = arith.constant 0 : index
    %139 = vector.load %arg10[%c0_166, %c0_167] : memref<128x640xbf16, #tpu.memory_space<vmem>>, vector<128x640xbf16>
    %c1_168 = arith.constant 1 : index
    %c0_169 = arith.constant 0 : index
    %c0_170 = arith.constant 0 : index
    %140 = vector.load %arg6[%c1_168, %c0_169, %c0_170] : memref<3x640x16xbf16, #tpu.memory_space<vmem>>, vector<1x640x16xbf16>
    %141 = vector.shape_cast %140 : vector<1x640x16xbf16> to vector<640x16xbf16>
    %cst_171 = arith.constant dense<0.000000e+00> : vector<128x16xf32>
    %142 = tpu.matmul %139, %141, %cst_171 {dimension_numbers = #tpu.dot_dimension_numbers<[1], [0], [0], [1], [0, 0, 1, 1], [], []>} : vector<128x640xbf16>, vector<640x16xbf16>, vector<128x16xf32> -> vector<128x16xf32>
    %c0_172 = arith.constant 0 : index
    %c48 = arith.constant 48 : index
    %143 = vector.load %arg8[%c0_172, %c48] : memref<128x128xf32, #tpu.memory_space<vmem>>, vector<128x16xf32>
    tpu.vector_store %arg8[%c0_172, %c48], %142 {strides = array<i32>} : memref<128x128xf32, #tpu.memory_space<vmem>>, vector<128x16xf32>,
    %c0_173 = arith.constant 0 : index
    %c0_174 = arith.constant 0 : index
    %144 = vector.load %arg8[%c0_173, %c0_174] : memref<128x128xf32, #tpu.memory_space<vmem>>, vector<128x128xf32>
    %c2_175 = arith.constant 2 : index
    %c0_176 = arith.constant 0 : index
    %c0_177 = arith.constant 0 : index
    %145 = vector.load %arg1[%c2_175, %c0_176, %c0_177] : memref<3x1x128xf32, #tpu.memory_space<vmem>>, vector<1x1x128xf32>
    %146 = vector.shape_cast %145 : vector<1x1x128xf32> to vector<1x128xf32>
    %147 = vector.broadcast %146 : vector<1x128xf32> to vector<128x128xf32>
    %148 = arith.mulf %144, %147 : vector<128x128xf32>
    %c2_178 = arith.constant 2 : index
    %c0_179 = arith.constant 0 : index
    %c0_180 = arith.constant 0 : index
    %149 = vector.load %arg2[%c2_178, %c0_179, %c0_180] : memref<3x1x128xf32, #tpu.memory_space<vmem>>, vector<1x1x128xf32>
    %150 = vector.shape_cast %149 : vector<1x1x128xf32> to vector<1x128xf32>
    %151 = vector.broadcast %150 : vector<1x128xf32> to vector<128x128xf32>
    %152 = arith.addf %148, %151 : vector<128x128xf32>
    %cst_181 = arith.constant 0.000000e+00 : f32
    %153 = vector.broadcast %cst_181 : f32 to vector<128x128xf32>
    %154 = arith.maximumf %152, %153 : vector<128x128xf32>
    %155 = arith.truncf %154 : vector<128x128xf32> to vector<128x128xbf16>
    %c2_182 = arith.constant 2 : index
    %c0_183 = arith.constant 0 : index
    %c0_184 = arith.constant 0 : index
    %156 = vector.load %arg3[%c2_182, %c0_183, %c0_184] : memref<3x128x64xbf16, #tpu.memory_space<vmem>>, vector<1x128x64xbf16>
    %157 = vector.shape_cast %156 : vector<1x128x64xbf16> to vector<128x64xbf16>
    %cst_185 = arith.constant dense<0.000000e+00> : vector<128x64xf32>
    %158 = tpu.matmul %155, %157, %cst_185 {dimension_numbers = #tpu.dot_dimension_numbers<[1], [0], [0], [1], [0, 0, 1, 1], [], []>} : vector<128x128xbf16>, vector<128x64xbf16>, vector<128x64xf32> -> vector<128x64xf32>
    %c2_186 = arith.constant 2 : index
    %c0_187 = arith.constant 0 : index
    %c0_188 = arith.constant 0 : index
    %159 = vector.load %arg4[%c2_186, %c0_187, %c0_188] : memref<3x1x64xf32, #tpu.memory_space<vmem>>, vector<1x1x64xf32>
    %160 = vector.shape_cast %159 : vector<1x1x64xf32> to vector<1x64xf32>
    %161 = vector.broadcast %160 : vector<1x64xf32> to vector<128x64xf32>
    %162 = arith.mulf %158, %161 : vector<128x64xf32>
    %c2_189 = arith.constant 2 : index
    %c0_190 = arith.constant 0 : index
    %c0_191 = arith.constant 0 : index
    %163 = vector.load %arg5[%c2_189, %c0_190, %c0_191] : memref<3x1x64xf32, #tpu.memory_space<vmem>>, vector<1x1x64xf32>
    %164 = vector.shape_cast %163 : vector<1x1x64xf32> to vector<1x64xf32>
    %165 = vector.broadcast %164 : vector<1x64xf32> to vector<128x64xf32>
    %166 = arith.addf %162, %165 : vector<128x64xf32>
    %cst_192 = arith.constant 0.000000e+00 : f32
    %167 = vector.broadcast %cst_192 : f32 to vector<128x64xf32>
    %168 = arith.maximumf %166, %167 : vector<128x64xf32>
    %169 = vector.shape_cast %168 : vector<128x64xf32> to vector<2x8x8x64xf32>
    %c0_193 = arith.constant 0 : index
    %c1_194 = arith.constant 1 : index
    %c1_195 = arith.constant 1 : index
    %c0_196 = arith.constant 0 : index
    %170 = vector.load %arg9[%c0_193, %c1_194, %c1_195, %c0_196] : memref<2x10x10x64xf32, #tpu.memory_space<vmem>>, vector<2x8x8x64xf32>
    tpu.vector_store %arg9[%c0_193, %c1_194, %c1_195, %c0_196], %169 {strides = array<i32>} : memref<2x10x10x64xf32, #tpu.memory_space<vmem>>, vector<2x8x8x64xf32>,
    %c0_197 = arith.constant 0 : index
    %c0_198 = arith.constant 0 : index
    %c0_199 = arith.constant 0 : index
    %c0_200 = arith.constant 0 : index
    %171 = vector.load %arg9[%c0_197, %c0_198, %c0_199, %c0_200] : memref<2x10x10x64xf32, #tpu.memory_space<vmem>>, vector<2x8x8x64xf32>
    %172 = vector.shape_cast %171 : vector<2x8x8x64xf32> to vector<128x64xf32>
    %173 = arith.truncf %172 : vector<128x64xf32> to vector<128x64xbf16>
    %c0_201 = arith.constant 0 : index
    %c0_202 = arith.constant 0 : index
    %174 = vector.load %arg10[%c0_201, %c0_202] : memref<128x640xbf16, #tpu.memory_space<vmem>>, vector<128x64xbf16>
    tpu.vector_store %arg10[%c0_201, %c0_202], %173 {strides = array<i32>} : memref<128x640xbf16, #tpu.memory_space<vmem>>, vector<128x64xbf16>,
    %c0_203 = arith.constant 0 : index
    %c0_204 = arith.constant 0 : index
    %c1_205 = arith.constant 1 : index
    %c0_206 = arith.constant 0 : index
    %175 = vector.load %arg9[%c0_203, %c0_204, %c1_205, %c0_206] : memref<2x10x10x64xf32, #tpu.memory_space<vmem>>, vector<2x8x8x64xf32>
    %176 = vector.shape_cast %175 : vector<2x8x8x64xf32> to vector<128x64xf32>
    %177 = arith.truncf %176 : vector<128x64xf32> to vector<128x64xbf16>
    %c0_207 = arith.constant 0 : index
    %c64_208 = arith.constant 64 : index
    %178 = vector.load %arg10[%c0_207, %c64_208] : memref<128x640xbf16, #tpu.memory_space<vmem>>, vector<128x64xbf16>
    tpu.vector_store %arg10[%c0_207, %c64_208], %177 {strides = array<i32>} : memref<128x640xbf16, #tpu.memory_space<vmem>>, vector<128x64xbf16>,
    %c0_209 = arith.constant 0 : index
    %c0_210 = arith.constant 0 : index
    %c2_211 = arith.constant 2 : index
    %c0_212 = arith.constant 0 : index
    %179 = vector.load %arg9[%c0_209, %c0_210, %c2_211, %c0_212] : memref<2x10x10x64xf32, #tpu.memory_space<vmem>>, vector<2x8x8x64xf32>
    %180 = vector.shape_cast %179 : vector<2x8x8x64xf32> to vector<128x64xf32>
    %181 = arith.truncf %180 : vector<128x64xf32> to vector<128x64xbf16>
    %c0_213 = arith.constant 0 : index
    %c128_214 = arith.constant 128 : index
    %182 = vector.load %arg10[%c0_213, %c128_214] : memref<128x640xbf16, #tpu.memory_space<vmem>>, vector<128x64xbf16>
    tpu.vector_store %arg10[%c0_213, %c128_214], %181 {strides = array<i32>} : memref<128x640xbf16, #tpu.memory_space<vmem>>, vector<128x64xbf16>,
    %c0_215 = arith.constant 0 : index
    %c1_216 = arith.constant 1 : index
    %c0_217 = arith.constant 0 : index
    %c0_218 = arith.constant 0 : index
    %183 = vector.load %arg9[%c0_215, %c1_216, %c0_217, %c0_218] : memref<2x10x10x64xf32, #tpu.memory_space<vmem>>, vector<2x8x8x64xf32>
    %184 = vector.shape_cast %183 : vector<2x8x8x64xf32> to vector<128x64xf32>
    %185 = arith.truncf %184 : vector<128x64xf32> to vector<128x64xbf16>
    %c0_219 = arith.constant 0 : index
    %c192_220 = arith.constant 192 : index
    %186 = vector.load %arg10[%c0_219, %c192_220] : memref<128x640xbf16, #tpu.memory_space<vmem>>, vector<128x64xbf16>
    tpu.vector_store %arg10[%c0_219, %c192_220], %185 {strides = array<i32>} : memref<128x640xbf16, #tpu.memory_space<vmem>>, vector<128x64xbf16>,
    %c0_221 = arith.constant 0 : index
    %c1_222 = arith.constant 1 : index
    %c1_223 = arith.constant 1 : index
    %c0_224 = arith.constant 0 : index
    %187 = vector.load %arg9[%c0_221, %c1_222, %c1_223, %c0_224] : memref<2x10x10x64xf32, #tpu.memory_space<vmem>>, vector<2x8x8x64xf32>
    %188 = vector.shape_cast %187 : vector<2x8x8x64xf32> to vector<128x64xf32>
    %189 = arith.truncf %188 : vector<128x64xf32> to vector<128x64xbf16>
    %c0_225 = arith.constant 0 : index
    %c256_226 = arith.constant 256 : index
    %190 = vector.load %arg10[%c0_225, %c256_226] : memref<128x640xbf16, #tpu.memory_space<vmem>>, vector<128x64xbf16>
    tpu.vector_store %arg10[%c0_225, %c256_226], %189 {strides = array<i32>} : memref<128x640xbf16, #tpu.memory_space<vmem>>, vector<128x64xbf16>,
    %c0_227 = arith.constant 0 : index
    %c1_228 = arith.constant 1 : index
    %c2_229 = arith.constant 2 : index
    %c0_230 = arith.constant 0 : index
    %191 = vector.load %arg9[%c0_227, %c1_228, %c2_229, %c0_230] : memref<2x10x10x64xf32, #tpu.memory_space<vmem>>, vector<2x8x8x64xf32>
    %192 = vector.shape_cast %191 : vector<2x8x8x64xf32> to vector<128x64xf32>
    %193 = arith.truncf %192 : vector<128x64xf32> to vector<128x64xbf16>
    %c0_231 = arith.constant 0 : index
    %c320_232 = arith.constant 320 : index
    %194 = vector.load %arg10[%c0_231, %c320_232] : memref<128x640xbf16, #tpu.memory_space<vmem>>, vector<128x64xbf16>
    tpu.vector_store %arg10[%c0_231, %c320_232], %193 {strides = array<i32>} : memref<128x640xbf16, #tpu.memory_space<vmem>>, vector<128x64xbf16>,
    %c0_233 = arith.constant 0 : index
    %c2_234 = arith.constant 2 : index
    %c0_235 = arith.constant 0 : index
    %c0_236 = arith.constant 0 : index
    %195 = vector.load %arg9[%c0_233, %c2_234, %c0_235, %c0_236] : memref<2x10x10x64xf32, #tpu.memory_space<vmem>>, vector<2x8x8x64xf32>
    %196 = vector.shape_cast %195 : vector<2x8x8x64xf32> to vector<128x64xf32>
    %197 = arith.truncf %196 : vector<128x64xf32> to vector<128x64xbf16>
    %c0_237 = arith.constant 0 : index
    %c384_238 = arith.constant 384 : index
    %198 = vector.load %arg10[%c0_237, %c384_238] : memref<128x640xbf16, #tpu.memory_space<vmem>>, vector<128x64xbf16>
    tpu.vector_store %arg10[%c0_237, %c384_238], %197 {strides = array<i32>} : memref<128x640xbf16, #tpu.memory_space<vmem>>, vector<128x64xbf16>,
    %c0_239 = arith.constant 0 : index
    %c2_240 = arith.constant 2 : index
    %c1_241 = arith.constant 1 : index
    %c0_242 = arith.constant 0 : index
    %199 = vector.load %arg9[%c0_239, %c2_240, %c1_241, %c0_242] : memref<2x10x10x64xf32, #tpu.memory_space<vmem>>, vector<2x8x8x64xf32>
    %200 = vector.shape_cast %199 : vector<2x8x8x64xf32> to vector<128x64xf32>
    %201 = arith.truncf %200 : vector<128x64xf32> to vector<128x64xbf16>
    %c0_243 = arith.constant 0 : index
    %c448_244 = arith.constant 448 : index
    %202 = vector.load %arg10[%c0_243, %c448_244] : memref<128x640xbf16, #tpu.memory_space<vmem>>, vector<128x64xbf16>
    tpu.vector_store %arg10[%c0_243, %c448_244], %201 {strides = array<i32>} : memref<128x640xbf16, #tpu.memory_space<vmem>>, vector<128x64xbf16>,
    %c0_245 = arith.constant 0 : index
    %c2_246 = arith.constant 2 : index
    %c2_247 = arith.constant 2 : index
    %c0_248 = arith.constant 0 : index
    %203 = vector.load %arg9[%c0_245, %c2_246, %c2_247, %c0_248] : memref<2x10x10x64xf32, #tpu.memory_space<vmem>>, vector<2x8x8x64xf32>
    %204 = vector.shape_cast %203 : vector<2x8x8x64xf32> to vector<128x64xf32>
    %205 = arith.truncf %204 : vector<128x64xf32> to vector<128x64xbf16>
    %c0_249 = arith.constant 0 : index
    %c512_250 = arith.constant 512 : index
    %206 = vector.load %arg10[%c0_249, %c512_250] : memref<128x640xbf16, #tpu.memory_space<vmem>>, vector<128x64xbf16>
    tpu.vector_store %arg10[%c0_249, %c512_250], %205 {strides = array<i32>} : memref<128x640xbf16, #tpu.memory_space<vmem>>, vector<128x64xbf16>,
    %c0_251 = arith.constant 0 : index
    %c0_252 = arith.constant 0 : index
    %207 = vector.load %arg10[%c0_251, %c0_252] : memref<128x640xbf16, #tpu.memory_space<vmem>>, vector<128x640xbf16>
    %c2_253 = arith.constant 2 : index
    %c0_254 = arith.constant 0 : index
    %c0_255 = arith.constant 0 : index
    %208 = vector.load %arg6[%c2_253, %c0_254, %c0_255] : memref<3x640x16xbf16, #tpu.memory_space<vmem>>, vector<1x640x16xbf16>
    %209 = vector.shape_cast %208 : vector<1x640x16xbf16> to vector<640x16xbf16>
    %cst_256 = arith.constant dense<0.000000e+00> : vector<128x16xf32>
    %210 = tpu.matmul %207, %209, %cst_256 {dimension_numbers = #tpu.dot_dimension_numbers<[1], [0], [0], [1], [0, 0, 1, 1], [], []>} : vector<128x640xbf16>, vector<640x16xbf16>, vector<128x16xf32> -> vector<128x16xf32>
    %c0_257 = arith.constant 0 : index
    %c64_258 = arith.constant 64 : index
    %211 = vector.load %arg8[%c0_257, %c64_258] : memref<128x128xf32, #tpu.memory_space<vmem>>, vector<128x16xf32>
    tpu.vector_store %arg8[%c0_257, %c64_258], %210 {strides = array<i32>} : memref<128x128xf32, #tpu.memory_space<vmem>>, vector<128x16xf32>,
    %c0_259 = arith.constant 0 : index
    %c0_260 = arith.constant 0 : index
    %212 = vector.load %arg8[%c0_259, %c0_260] : memref<128x128xf32, #tpu.memory_space<vmem>>, vector<128x80xf32>
    %c0_261 = arith.constant 0 : index
    %c0_262 = arith.constant 0 : index
    %213 = vector.load %arg7[%c0_261, %c0_262] : memref<128x80xf32, #tpu.memory_space<vmem>>, vector<128x80xf32>
    tpu.vector_store %arg7[%c0_261, %c0_262], %212 {strides = array<i32>} : memref<128x80xf32, #tpu.memory_space<vmem>>, vector<128x80xf32>,
    return
  }
}

</mosaic_0001>

<bundles_post_ra>
// kernel: tpu_custom_call.1
= control target key start
LH: loop header
LB: loop body
LE: loop exit
PB: predicated region body
PF: predicated region fallthrough
CT: control target
= control target key end

     0   :  { %vm76_vm0 = vcmask 523264   ;;  %vm78_vm1 = vcmask 517120   ;;  %v5806_v1 = vmov 0.0   ;;  %vm59_vm2 = vcmask 261120   ;;  %s5808_s24 = smov 64   ;;  %s5809_s13 = smov 32   ;;  %s7523_s3 = inlined_call_operand.vmem [shape: bf16[3,128,64], index: 3, kind: input, shape index: {}]   ;;  %s7524_s0 = inlined_call_operand.vmem [shape: f32[128,32], index: 0, kind: input, shape index: {}]   ;;  %s7525_s1 = inlined_call_operand.vmem [shape: f32[3,1,128], index: 1, kind: input, shape index: {}]   ;;  %s7526_s2 = inlined_call_operand.vmem [shape: f32[3,1,128], index: 2, kind: input, shape index: {}]   ;;  %s7527_s6 = inlined_call_operand.vmem [shape: bf16[3,640,16], index: 6, kind: input, shape index: {}]   ;;  %s7528_s4 = inlined_call_operand.vmem [shape: f32[3,1,64], index: 4, kind: input, shape index: {}]   ;;  %s7529_s5 = inlined_call_operand.vmem [shape: f32[3,1,64], index: 5, kind: input, shape index: {}]   ;;  %s7530_s7 = inlined_call_operand.vmem [shape: f32[128,80], index: 7, kind: output, shape index: {}]  }
   0x1   :  { %v5662_v0 = vld [vmem:[%s7523_s3] sm:$0xff]   ;;  %27 = vst [vmem:[#allocation2] sm:$0xff] %v5806_v1  ;;  %28 = vst [vmem:[#allocation2 + $0x8] sm:$0xff] %v5806_v1  ;;  %v5663_v2 = vld [vmem:[%s7523_s3 + $0x8] sm:$0xff]   ;;  %vm572_vm3 = vcmask 1048064   ;;  %vm1617_vm4 = vcmask 392448  }
   0x2   :  { %29 = vst [vmem:[#allocation2 + $0x10] sm:$0xff] %v5806_v1  ;;  %30 = vst [vmem:[#allocation2 + $0x18] sm:$0xff] %v5806_v1  ;;  %5465 = vmatprep.subr.bf16.mxu0 %v5662_v0  ;;  %v5664_v3 = vld [vmem:[%s7523_s3 + $0x10] sm:$0xff]   ;;  %v5665_v4 = vld [vmem:[%s7523_s3 + $0x18] sm:$0xff]   ;;  %s5810_s26 = smov 48   ;;  %vm3096_vm5 = vcmask 523648  }
   0x3   :  { %31 = vst [vmem:[#allocation2 + $0x20] sm:$0xff] %v5806_v1  ;;  %32 = vst [vmem:[#allocation2 + $0x28] sm:$0xff] %v5806_v1  ;;  %5466 = vmatpush3.bf16.msra.mxu0 %v5662_v0  ;;  %v43_v5 = vld [vmem:[%s7524_s0] sm:$0xff]  ;;  %v44_v6 = vld [vmem:[%s7524_s0 + $0x8] sm:$0xff]  ;;  %vm4575_vm6 = vcmask 654848   ;;  %vm4608_vm7 = vcmask 654336  }
   0x4   :  { %33 = vst [vmem:[#allocation2 + $0x30] sm:$0xff] %v5806_v1  ;;  %34 = vst [vmem:[#allocation2 + $0x38] sm:$0xff] %v5806_v1  ;;  %5467 = vmatprep.subr.bf16.mxu0 %v5663_v2  ;;  %v45_v7 = vld [vmem:[%s7524_s0 + $0x10] sm:$0xff]  ;;  %v46_v8 = vld [vmem:[%s7524_s0 + $0x18] sm:$0xff] }
   0x5   :  { %35 = vst [vmem:[#allocation2 + $0x40] sm:$0xff] %v5806_v1  ;;  %36 = vst [vmem:[#allocation2 + $0x48] sm:$0xff] %v5806_v1  ;;  %v5666_v9 = vld [vmem:[%s7523_s3 + $0x20] sm:$0xff]   ;;  %v48_v11 = vld [vmem:[%s7524_s0 + $0x28] sm:$0xff] }
   0x6   :  { %37 = vst [vmem:[#allocation2 + $0x50] sm:$0xff] %v5806_v1  ;;  %38 = vst [vmem:[#allocation2 + $0x58] sm:$0xff] %v5806_v1  ;;  %v47_v10 = vld [vmem:[%s7524_s0 + $0x20] sm:$0xff]  ;;  %v49_v12 = vld [vmem:[%s7524_s0 + $0x30] sm:$0xff] }
   0x7   :  { %39 = vst [vmem:[#allocation2 + $0x60] sm:$0xff] %v5806_v1  ;;  %40 = vst [vmem:[#allocation2 + $0x68] sm:$0xff] %v5806_v1  ;;  %5468 = vmatpush3.bf16.msra.mxu0 %v5663_v2  ;;  %v50_v13 = vld [vmem:[%s7524_s0 + $0x38] sm:$0xff]  ;;  %v51_v14 = vld [vmem:[%s7524_s0 + $0x40] sm:$0xff] }
   0x8   :  { %41 = vst [vmem:[#allocation2 + $0x70] sm:$0xff] %v5806_v1  ;;  %42 = vst [vmem:[#allocation2 + $0x78] sm:$0xff] %v5806_v1  ;;  %5469 = vmatprep.subr.bf16.mxu0 %v5664_v3  ;;  %v52_v15 = vld [vmem:[%s7524_s0 + $0x48] sm:$0xff]  ;;  %v5946_v16 = vld [vmem:[%s7525_s1] ss:$0 sm:$0xff] }
   0x9   :  { %84 = vst.msk [vmem:[#allocation3 + $0x30] sm:$0xff] %vm76_vm0, %v5806_v1  ;;  %77 = vst.msk [vmem:[#allocation3] sm:$0xff] %vm76_vm0, %v5806_v1  ;;  %v53_v17 = vld [vmem:[%s7524_s0 + $0x50] sm:$0xff]  ;;  %v54_v18 = vld [vmem:[%s7524_s0 + $0x58] sm:$0xff] }
   0xa   :  { %85 = vst.msk [vmem:[#allocation3 + $0x38] sm:$0x3] %vm78_vm1, %v5806_v1  ;;  %79 = vst.msk [vmem:[#allocation3 + $0x8] sm:$0x3] %vm78_vm1, %v5806_v1  ;;  %v55_v19 = vld [vmem:[%s7524_s0 + $0x60] sm:$0xff]  ;;  %v56_v20 = vld [vmem:[%s7524_s0 + $0x68] sm:$0xff] }
   0xb   :  { %80 = vst.msk [vmem:[#allocation3 + $0x10] sm:$0xff] %vm76_vm0, %v5806_v1  ;;  %82 = vst.msk [vmem:[#allocation3 + $0x20] sm:$0xff] %vm76_vm0, %v5806_v1  ;;  %5470 = vmatpush3.bf16.msra.mxu0 %v5664_v3  ;;  %v57_v21 = vld [vmem:[%s7524_s0 + $0x70] sm:$0xff]  ;;  %v58_v22 = vld [vmem:[%s7524_s0 + $0x78] sm:$0xff] }
   0xc   :  { %81 = vst.msk [vmem:[#allocation3 + $0x18] sm:$0x3] %vm78_vm1, %v5806_v1  ;;  %83 = vst.msk [vmem:[#allocation3 + $0x28] sm:$0x3] %vm78_vm1, %v5806_v1  ;;  %5471 = vmatprep.subr.bf16.mxu0 %v5665_v4  ;;  %v5667_v23 = vld [vmem:[%s7523_s3 + $0x28] sm:$0xff]   ;;  %v5668_v39 = vld [vmem:[%s7523_s3 + $0x30] sm:$0xff]  }
   0xd   :  { %86 = vst.msk [vmem:[#allocation3 + $0x40] sm:$0xff] %vm76_vm0, %v5806_v1  ;;  %88 = vst.msk [vmem:[#allocation3 + $0x50] sm:$0xff] %vm76_vm0, %v5806_v1  ;;  %v5978_v24 = vld [vmem:[%s7526_s2] ss:$0 sm:$0xff]  ;;  %v5669_v46 = vld [vmem:[%s7523_s3 + $0x38] sm:$0xff]  }
   0xe   :  { %87 = vst.msk [vmem:[#allocation3 + $0x48] sm:$0x3] %vm78_vm1, %v5806_v1  ;;  %89 = vst.msk [vmem:[#allocation3 + $0x58] sm:$0x3] %vm78_vm1, %v5806_v1 }
   0xf   :  { %90 = vst.msk [vmem:[#allocation3 + $0x60] sm:$0xff] %vm76_vm0, %v5806_v1  ;;  %92 = vst.msk [vmem:[#allocation3 + $0x70] sm:$0xff] %vm76_vm0, %v5806_v1  ;;  %5472 = vmatpush3.bf16.msra.mxu0 %v5665_v4 }
  0x10   :  { %91 = vst.msk [vmem:[#allocation3 + $0x68] sm:$0x3] %vm78_vm1, %v5806_v1  ;;  %93 = vst.msk [vmem:[#allocation3 + $0x78] sm:$0x3] %vm78_vm1, %v5806_v1  ;;  %5473 = vmatprep.subr.bf16.mxu0 %v5666_v9 }
  0x11   :  { %94 = vst.msk [vmem:[#allocation3 + $0x80] sm:$0xff] %vm76_vm0, %v5806_v1  ;;  %96 = vst.msk [vmem:[#allocation3 + $0x90] sm:$0xff] %vm76_vm0, %v5806_v1 }
  0x12   :  { %95 = vst.msk [vmem:[#allocation3 + $0x88] sm:$0x3] %vm78_vm1, %v5806_v1  ;;  %97 = vst.msk [vmem:[#allocation3 + $0x98] sm:$0x3] %vm78_vm1, %v5806_v1 }
  0x13   :  { %98 = vst.msk [vmem:[#allocation3 + $0xa0] sm:$0xff] %vm76_vm0, %v5806_v1  ;;  %100 = vst.msk [vmem:[#allocation3 + $0xb0] sm:$0xff] %vm76_vm0, %v5806_v1  ;;  %5474 = vmatpush3.bf16.msra.mxu0 %v5666_v9 }
  0x14   :  { %99 = vst.msk [vmem:[#allocation3 + $0xa8] sm:$0x3] %vm78_vm1, %v5806_v1  ;;  %101 = vst.msk [vmem:[#allocation3 + $0xb8] sm:$0x3] %vm78_vm1, %v5806_v1  ;;  %5475 = vmatprep.subr.bf16.mxu0 %v5667_v23 }
  0x15   :  { %102 = vst.msk [vmem:[#allocation3 + $0xc0] sm:$0xff] %vm76_vm0, %v5806_v1  ;;  %104 = vst.msk [vmem:[#allocation3 + $0xd0] sm:$0xff] %vm76_vm0, %v5806_v1 }
  0x16   :  { %103 = vst.msk [vmem:[#allocation3 + $0xc8] sm:$0x3] %vm78_vm1, %v5806_v1  ;;  %105 = vst.msk [vmem:[#allocation3 + $0xd8] sm:$0x3] %vm78_vm1, %v5806_v1 }
  0x17   :  { %106 = vst.msk [vmem:[#allocation3 + $0xe0] sm:$0xff] %vm76_vm0, %v5806_v1  ;;  %108 = vst.msk [vmem:[#allocation3 + $0xf0] sm:$0xff] %vm76_vm0, %v5806_v1  ;;  %5476 = vmatpush3.bf16.msra.mxu0 %v5667_v23 }
  0x18   :  { %107 = vst.msk [vmem:[#allocation3 + $0xe8] sm:$0x3] %vm78_vm1, %v5806_v1  ;;  %109 = vst.msk [vmem:[#allocation3 + $0xf8] sm:$0x3] %vm78_vm1, %v5806_v1  ;;  %5477 = vmatprep.subr.bf16.mxu0 %v5668_v39 }
  0x19   :  { %110 = vst.msk [vmem:[#allocation3 + $0x100] sm:$0xff] %vm76_vm0, %v5806_v1  ;;  %112 = vst.msk [vmem:[#allocation3 + $0x110] sm:$0xff] %vm76_vm0, %v5806_v1 }
  0x1a   :  { %111 = vst.msk [vmem:[#allocation3 + $0x108] sm:$0x3] %vm78_vm1, %v5806_v1  ;;  %113 = vst.msk [vmem:[#allocation3 + $0x118] sm:$0x3] %vm78_vm1, %v5806_v1 }
  0x1b   :  { %114 = vst.msk [vmem:[#allocation3 + $0x120] sm:$0xff] %vm76_vm0, %v5806_v1  ;;  %116 = vst.msk [vmem:[#allocation3 + $0x130] sm:$0xff] %vm76_vm0, %v5806_v1  ;;  %5478 = vmatpush3.bf16.msra.mxu0 %v5668_v39  ;;  %v5673_v39 = vld [vmem:[%s7527_s6 + $0x8] sm:$0xff]  }
  0x1c   :  { %115 = vst.msk [vmem:[#allocation3 + $0x128] sm:$0x3] %vm78_vm1, %v5806_v1  ;;  %117 = vst.msk [vmem:[#allocation3 + $0x138] sm:$0x3] %vm78_vm1, %v5806_v1  ;;  %5479 = vmatprep.subr.bf16.mxu0 %v5669_v46 }
  0x1d   :  { %60 = vst.msk [vmem:[#allocation2] sm:$0xff] %vm59_vm2, %v43_v5  ;;  %61 = vst.msk [vmem:[#allocation2 + $0x8] sm:$0xff] %vm59_vm2, %v44_v6 }
  0x1e   :  { %62 = vst.msk [vmem:[#allocation2 + $0x10] sm:$0xff] %vm59_vm2, %v45_v7  ;;  %63 = vst.msk [vmem:[#allocation2 + $0x18] sm:$0xff] %vm59_vm2, %v46_v8 }
  0x1f   :  { %64 = vst.msk [vmem:[#allocation2 + $0x20] sm:$0xff] %vm59_vm2, %v47_v10  ;;  %65 = vst.msk [vmem:[#allocation2 + $0x28] sm:$0xff] %vm59_vm2, %v48_v11  ;;  %5480 = vmatpush3.bf16.msra.mxu0 %v5669_v46  ;;  %v6054_v46 = vld [vmem:[%s7528_s4] ss:$0 sm:$0xff] }
  0x20   :  { %66 = vst.msk [vmem:[#allocation2 + $0x30] sm:$0xff] %vm59_vm2, %v49_v12  ;;  %67 = vst.msk [vmem:[#allocation2 + $0x38] sm:$0xff] %vm59_vm2, %v50_v13 }
  0x21   :  { %68 = vst.msk [vmem:[#allocation2 + $0x40] sm:$0xff] %vm59_vm2, %v51_v14  ;;  %69 = vst.msk [vmem:[#allocation2 + $0x48] sm:$0xff] %vm59_vm2, %v52_v15 }
  0x22   :  { %70 = vst.msk [vmem:[#allocation2 + $0x50] sm:$0xff] %vm59_vm2, %v53_v17  ;;  %71 = vst.msk [vmem:[#allocation2 + $0x58] sm:$0xff] %vm59_vm2, %v54_v18 }
  0x23   :  { %72 = vst.msk [vmem:[#allocation2 + $0x60] sm:$0xff] %vm59_vm2, %v55_v19  ;;  %73 = vst.msk [vmem:[#allocation2 + $0x68] sm:$0xff] %vm59_vm2, %v56_v20 }
  0x24   :  { %74 = vst.msk [vmem:[#allocation2 + $0x70] sm:$0xff] %vm59_vm2, %v57_v21  ;;  %75 = vst.msk [vmem:[#allocation2 + $0x78] sm:$0xff] %vm59_vm2, %v58_v22  ;;  %v158_v25 = vld [vmem:[#allocation2] sm:$0xff]  ;;  %v159_v26 = vld [vmem:[#allocation2 + $0x8] sm:$0xff] }
  0x25   :  { %v181_v27 = vmul.f32 %v5946_v16, %v158_v25  ;;  %v182_v28 = vmul.f32 %v5946_v16, %v159_v26  ;;  %v160_v29 = vld [vmem:[#allocation2 + $0x10] sm:$0xff]  ;;  %v161_v30 = vld [vmem:[#allocation2 + $0x18] sm:$0xff] }
  0x26   :  { %v183_v31 = vmul.f32 %v5946_v16, %v160_v29  ;;  %v184_v32 = vmul.f32 %v5946_v16, %v161_v30  ;;  %v162_v33 = vld [vmem:[#allocation2 + $0x20] sm:$0xff]  ;;  %v163_v34 = vld [vmem:[#allocation2 + $0x28] sm:$0xff] }
  0x27   :  { %v204_v35 = vadd.f32 %v5978_v24, %v181_v27  ;;  %v205_v36 = vadd.f32 %v5978_v24, %v182_v28  ;;  %v185_v37 = vmul.f32 %v5946_v16, %v162_v33  ;;  %v186_v38 = vmul.f32 %v5946_v16, %v163_v34  ;;  %v164_v44 = vld [vmem:[#allocation2 + $0x30] sm:$0xff]  ;;  %v165_v45 = vld [vmem:[#allocation2 + $0x38] sm:$0xff] }
  0x28   :  { %v206_v40 = vadd.f32 %v5978_v24, %v183_v31  ;;  %v207_v41 = vadd.f32 %v5978_v24, %v184_v32  ;;  %v166_v47 = vld [vmem:[#allocation2 + $0x40] sm:$0xff]  ;;  %v167_v51 = vld [vmem:[#allocation2 + $0x48] sm:$0xff]  ;;  %v187_v54 = vmul.f32 %v5946_v16, %v164_v44  ;;  %v188_v55 = vmul.f32 %v5946_v16, %v165_v45 }
  0x29   :  { %v220_v42 = vmax.f32 %v204_v35, 0.0  ;;  %v221_v43 = vmax.f32 %v205_v36, 0.0  ;;  %v208_v49 = vadd.f32 %v5978_v24, %v185_v37  ;;  %v209_v50 = vadd.f32 %v5978_v24, %v186_v38  ;;  %v168_v60 = vld [vmem:[#allocation2 + $0x50] sm:$0xff]  ;;  %v169_v0 = vld [vmem:[#allocation2 + $0x58] sm:$0xff]  ;;  %v5672_v38 = vld [vmem:[%s7527_s6 + $0x48] sm:$0xff]  }
  0x2a   :  { %v222_v52 = vmax.f32 %v206_v40, 0.0  ;;  %v223_v53 = vmax.f32 %v207_v41, 0.0  ;;  %v189_v58 = vmul.f32 %v5946_v16, %v166_v47  ;;  %v190_v59 = vmul.f32 %v5946_v16, %v167_v51  ;;  %v170_v4 = vld [vmem:[#allocation2 + $0x60] sm:$0xff]  ;;  %v171_v5 = vld [vmem:[#allocation2 + $0x68] sm:$0xff]  ;;  %v5674_v40 = vld [vmem:[%s7527_s6 + $0x50] sm:$0xff]  }
  0x2b   :  { %v236_v48 = vpack.c.bf16 %v221_v43, %v220_v42  ;;  %v224_v56 = vmax.f32 %v208_v49, 0.0  ;;  %v225_v57 = vmax.f32 %v209_v50, 0.0  ;;  %v210_v62 = vadd.f32 %v5978_v24, %v187_v54  ;;  %v172_v21 = vld [vmem:[#allocation2 + $0x70] sm:$0xff]  ;;  %v173_v22 = vld [vmem:[#allocation2 + $0x78] sm:$0xff]  ;;  %v5678_v44 = vld [vmem:[%s7527_s6 + $0x60] sm:$0xff]  }
  0x2c   :  { %v237_v61 = vpack.c.bf16 %v223_v53, %v222_v52  ;;  %v211_v63 = vadd.f32 %v5978_v24, %v188_v55  ;;  %v212_v2 = vadd.f32 %v5978_v24, %v189_v58  ;;  %v213_v3 = vadd.f32 %v5978_v24, %v190_v59  ;;  %v5675_v41 = vld [vmem:[%s7527_s6 + $0x10] sm:$0xff]   ;;  %v5676_v42 = vld [vmem:[%s7527_s6 + $0x58] sm:$0xff]   ;;  %v5679_v45 = vld [vmem:[%s7527_s6 + $0x20] sm:$0xff]  }
  0x2d   :  { %5481 = vmatprep.mubr.bf16.mxu0 %v236_v48  ;;  %v238_v1 = vpack.c.bf16 %v225_v57, %v224_v56  ;;  %v226_v6 = vmax.f32 %v210_v62, 0.0  ;;  %v191_v8 = vmul.f32 %v5946_v16, %v168_v60  ;;  %v192_v9 = vmul.f32 %v5946_v16, %v169_v0  ;;  %v5677_v43 = vld [vmem:[%s7527_s6 + $0x18] sm:$0xff]   ;;  %v6059_v47 = vld [vmem:[%s7529_s5] ss:$0 sm:$0xff]  ;;  %v5680_v62 = vld [vmem:[%s7527_s6 + $0x68] sm:$0xff]  }
  0x2e   :  { %5482 = vmatmul.mubr.bf16.vlgmr.msra.gmra.mrb[0].mxu0 %v237_v61  ;;  %v227_v7 = vmax.f32 %v211_v63, 0.0  ;;  %v228_v10 = vmax.f32 %v212_v2, 0.0  ;;  %v229_v11 = vmax.f32 %v213_v3, 0.0  ;;  %v193_v12 = vmul.f32 %v5946_v16, %v170_v4  ;;  %v5681_v0 = vld [vmem:[%s7527_s6 + $0x28] sm:$0xff]  }
  0x2f   :  { %5485 = vmatprep.mubr.bf16.mxu0 %v238_v1  ;;  %v194_v13 = vmul.f32 %v5946_v16, %v171_v5  ;;  %v214_v15 = vadd.f32 %v5978_v24, %v191_v8  ;;  %v215_v17 = vadd.f32 %v5978_v24, %v192_v9  ;;  %v195_v26 = vmul.f32 %v5946_v16, %v172_v21 }
  0x30   :  { %v239_v14 = vpack.c.bf16 %v227_v7, %v226_v6  ;;  %v240_v18 = vpack.c.bf16 %v229_v11, %v228_v10  ;;  %v216_v19 = vadd.f32 %v5978_v24, %v193_v12  ;;  %v196_v27 = vmul.f32 %v5946_v16, %v173_v22  ;;  %v5670_v16 = vld [vmem:[%s7527_s6 + $0x40] sm:$0xff]   ;;  %v5682_v7 = vld [vmem:[%s7527_s6 + $0x70] sm:$0xff]  }
  0x31   :  { %v217_v20 = vadd.f32 %v5978_v24, %v194_v13  ;;  %v230_v23 = vmax.f32 %v214_v15, 0.0  ;;  %v231_v25 = vmax.f32 %v215_v17, 0.0  ;;  %v218_v31 = vadd.f32 %v5978_v24, %v195_v26  ;;  %5001 = vmatprep.subr.bf16.mxu1 %v5670_v16  ;;  %v581_v11 = vld [vmem:[#allocation3 + $0x2] sm:$0xff]  ;;  %v5683_v12 = vld [vmem:[%s7527_s6 + $0x30] sm:$0xff]  }
  0x32   :  { %v232_v28 = vmax.f32 %v216_v19, 0.0  ;;  %v219_v32 = vadd.f32 %v5978_v24, %v196_v27  ;;  %v5807_v37 = vmov 0   ;;  %v5671_v24 = vld [vmem:[%s7527_s6] sm:$0xff]  }
  0x33   :  { %v233_v29 = vmax.f32 %v217_v20, 0.0  ;;  %v241_v30 = vpack.c.bf16 %v231_v25, %v230_v23  ;;  %v234_v34 = vmax.f32 %v218_v31, 0.0  ;;  %124 = vst [vmem:[#allocation4 + $0x30] sm:$0xff] %v5807_v37  ;;  %118 = vst [vmem:[#allocation4] sm:$0xff] %v5807_v37  ;;  %5002 = vmatpush3.bf16.msra.mxu1 %v5671_v24  ;;  %v5684_v13 = vld [vmem:[%s7527_s6 + $0xc0] sm:$0xff]  }
  0x34   :  { %v235_v35 = vmax.f32 %v219_v32, 0.0  ;;  %119 = vst [vmem:[#allocation4 + $0x8] sm:$0xff] %v5807_v37  ;;  %120 = vst [vmem:[#allocation4 + $0x10] sm:$0xff] %v5807_v37  ;;  %5003 = vmatprep.subr.bf16.mxu1 %v5672_v38  ;;  %v484_v20 = vld [vmem:[#allocation3] sm:$0xff]  ;;  %5065 = vmatprep.subr.bf16.mxu0 %v5684_v13 }
  0x35   :  { %v242_v33 = vpack.c.bf16 %v233_v29, %v232_v28  ;;  %121 = vst [vmem:[#allocation4 + $0x18] sm:$0xff] %v5807_v37  ;;  %122 = vst [vmem:[#allocation4 + $0x20] sm:$0xff] %v5807_v37 }
  0x36   :  { %5486 = vmatmul.mubr.bf16.gmra.mrb[4].mxu0 %v239_v14  ;;  %v243_v36 = vpack.c.bf16 %v235_v35, %v234_v34  ;;  %123 = vst [vmem:[#allocation4 + $0x28] sm:$0xff] %v5807_v37  ;;  %125 = vst [vmem:[#allocation4 + $0x38] sm:$0xff] %v5807_v37  ;;  %v5685_v14 = vld [vmem:[%s7527_s6 + $0x80] sm:$0xff]  }
  0x37   :  { %5489 = vmatprep.mubr.bf16.mxu0 %v240_v18  ;;  %126 = vst [vmem:[#allocation4 + $0x40] sm:$0xff] %v5807_v37  ;;  %127 = vst [vmem:[#allocation4 + $0x48] sm:$0xff] %v5807_v37  ;;  %5004 = vmatpush3.bf16.msra.mxu1 %v5673_v39  ;;  %v516_v39 = vld [vmem:[#allocation3 + $0x1] sm:$0xff] }
  0x38   :  { %128 = vst [vmem:[#allocation4 + $0x50] sm:$0xff] %v5807_v37  ;;  %129 = vst [vmem:[#allocation4 + $0x58] sm:$0xff] %v5807_v37  ;;  %5005 = vmatprep.subr.bf16.mxu1 %v5674_v40  ;;  %5066 = vmatpush3.bf16.msra.mxu0 %v5685_v14 }
  0x39   :  { %130 = vst [vmem:[#allocation4 + $0x60] sm:$0xff] %v5807_v37  ;;  %131 = vst [vmem:[#allocation4 + $0x68] sm:$0xff] %v5807_v37 }
  0x3a   :  { %132 = vst [vmem:[#allocation4 + $0x70] sm:$0xff] %v5807_v37  ;;  %133 = vst [vmem:[#allocation4 + $0x78] sm:$0xff] %v5807_v37 }
  0x3b   :  { %134 = vst [vmem:[#allocation4 + $0x80] sm:$0xff] %v5807_v37  ;;  %135 = vst [vmem:[#allocation4 + $0x88] sm:$0xff] %v5807_v37  ;;  %5006 = vmatpush3.bf16.msra.mxu1 %v5675_v41 }
  0x3c   :  { %136 = vst [vmem:[#allocation4 + $0x90] sm:$0xff] %v5807_v37  ;;  %137 = vst [vmem:[#allocation4 + $0x98] sm:$0xff] %v5807_v37  ;;  %5007 = vmatprep.subr.bf16.mxu1 %v5676_v42 }
  0x3d   :  { %138 = vst [vmem:[#allocation4 + $0xa0] sm:$0xff] %v5807_v37  ;;  %139 = vst [vmem:[#allocation4 + $0xa8] sm:$0xff] %v5807_v37 }
  0x3e   :  { %5490 = vmatmul.mubr.bf16.gmra.mrb[8].mxu0 %v241_v30  ;;  %140 = vst [vmem:[#allocation4 + $0xb0] sm:$0xff] %v5807_v37  ;;  %141 = vst [vmem:[#allocation4 + $0xb8] sm:$0xff] %v5807_v37 }
  0x3f   :  { %5493 = vmatprep.mubr.bf16.mxu0 %v242_v33  ;;  %142 = vst [vmem:[#allocation4 + $0xc0] sm:$0xff] %v5807_v37  ;;  %143 = vst [vmem:[#allocation4 + $0xc8] sm:$0xff] %v5807_v37  ;;  %5008 = vmatpush3.bf16.msra.mxu1 %v5677_v43 }
  0x40   :  { %144 = vst [vmem:[#allocation4 + $0xd0] sm:$0xff] %v5807_v37  ;;  %145 = vst [vmem:[#allocation4 + $0xd8] sm:$0xff] %v5807_v37  ;;  %5009 = vmatprep.subr.bf16.mxu1 %v5678_v44 }
  0x41   :  { %146 = vst [vmem:[#allocation4 + $0xe0] sm:$0xff] %v5807_v37  ;;  %147 = vst [vmem:[#allocation4 + $0xe8] sm:$0xff] %v5807_v37 }
  0x42   :  { %148 = vst [vmem:[#allocation4 + $0xf0] sm:$0xff] %v5807_v37  ;;  %149 = vst [vmem:[#allocation4 + $0xf8] sm:$0xff] %v5807_v37 }
  0x43   :  { %150 = vst [vmem:[#allocation4 + $0x100] sm:$0xff] %v5807_v37  ;;  %151 = vst [vmem:[#allocation4 + $0x108] sm:$0xff] %v5807_v37  ;;  %5010 = vmatpush3.bf16.msra.mxu1 %v5679_v45 }
  0x44   :  { %152 = vst [vmem:[#allocation4 + $0x110] sm:$0xff] %v5807_v37  ;;  %153 = vst [vmem:[#allocation4 + $0x118] sm:$0xff] %v5807_v37  ;;  %5011 = vmatprep.subr.bf16.mxu1 %v5680_v62 }
  0x45   :  { %154 = vst [vmem:[#allocation4 + $0x120] sm:$0xff] %v5807_v37  ;;  %155 = vst [vmem:[#allocation4 + $0x128] sm:$0xff] %v5807_v37 }
  0x46   :  { %5494 = vmatmul.mubr.bf16.gmra.mrb[12].mxu0 %v243_v36  ;;  %156 = vst [vmem:[#allocation4 + $0x130] sm:$0xff] %v5807_v37  ;;  %157 = vst [vmem:[#allocation4 + $0x138] sm:$0xff] %v5807_v37 }
  0x47   :  { %5012 = vmatpush3.bf16.msra.mxu1 %v5681_v0 }
  0x48   :  { %5013 = vmatprep.subr.bf16.mxu1 %v5682_v7 }
  0x4b   :  { %5014 = vmatpush3.bf16.msra.mxu1 %v5683_v12 }
 0x101   :  { %v5483_v48 = vpop.f32.mrb[0].mxu0 }
 0x102   :  { %v414_v49 = vmul.f32 %v5483_v48, %v6054_v46  ;;  %v342_v50 = vpop.f32.mrb[1].mxu0  ;;  %v5686_v48 = vld [vmem:[%s7527_s6 + $0x78] sm:$0xff]  }
 0x103   :  { %v412_v51 = vmul.f32 %v6054_v46, %v342_v50  ;;  %v5484_v52 = vpop.f32.mrb[2].mxu0  ;;  %v5688_v50 = vld [vmem:[%s7527_s6 + $0xc8] sm:$0xff]   ;;  %5015 = vmatprep.subr.bf16.mxu1 %v5686_v48  ;;  %v5696_v48 = vld [vmem:[%s7527_s6 + $0xe0] sm:$0xff]  }
 0x104   :  { %v437_v53 = vadd.f32 %v6059_v47, %v414_v49  ;;  %v415_v54 = vmul.f32 %v5484_v52, %v6054_v46  ;;  %v345_v55 = vpop.f32.mrb[3].mxu0  ;;  %v5687_v49 = vld [vmem:[%s7527_s6 + $0x38] sm:$0xff]   ;;  %5067 = vmatprep.subr.bf16.mxu0 %v5688_v50 }
 0x105   :  { %v435_v56 = vadd.f32 %v6059_v47, %v412_v51  ;;  %v413_v57 = vmul.f32 %v6054_v46, %v345_v55  ;;  %5016 = vmatpush3.bf16.msra.mxu1 %v5687_v49 }
 0x106   :  { %v453_v58 = vmax.f32 %v437_v53, 0.0  ;;  %v438_v59 = vadd.f32 %v6059_v47, %v415_v54 }
 0x107   :  { %v451_v60 = vmax.f32 %v435_v56, 0.0  ;;  %v436_v61 = vadd.f32 %v6059_v47, %v413_v57  ;;  %v5689_v56 = vld [vmem:[%s7527_s6 + $0x88] sm:$0xff]   ;;  %v6140_v57 = vld [vmem:[%s7527_s6 + $0x100] sm:$0xff]  }
 0x108   :  { %470 = vst.msk [vmem:[#allocation3 + $0x31] sm:$0xff] %vm76_vm0, %v453_v58  ;;  %v454_v63 = vmax.f32 %v438_v59, 0.0  ;;  %v5691_v58 = vld [vmem:[%s7527_s6 + $0xd0] sm:$0xff]   ;;  %5068 = vmatpush3.bf16.msra.mxu0 %v5689_v56  ;;  %5497 = vmatprep.subr.bf16.mxu1 %v6140_v57  ;;  %v589_v56 = vld [vmem:[#allocation3 + $0xa2] sm:$0xff] }
 0x109   :  { %468 = vst.msk [vmem:[#allocation3 + $0x11] sm:$0xff] %vm76_vm0, %v451_v60  ;;  %v452_v1 = vmax.f32 %v436_v61, 0.0  ;;  %v5487_v2 = vpop.f32.mrb[4].mxu0  ;;  %5069 = vmatprep.subr.bf16.mxu0 %v5691_v58 }
 0x10a   :  { %471 = vst.msk [vmem:[#allocation3 + $0x41] sm:$0xff] %vm76_vm0, %v454_v63  ;;  %v418_v3 = vmul.f32 %v5487_v2, %v6054_v46  ;;  %v358_v4 = vpop.f32.mrb[5].mxu0 }
 0x10b   :  { %469 = vst.msk [vmem:[#allocation3 + $0x21] sm:$0xff] %vm76_vm0, %v452_v1  ;;  %v416_v5 = vmul.f32 %v6054_v46, %v358_v4  ;;  %v5488_v6 = vpop.f32.mrb[6].mxu0 }
 0x10c   :  { %v441_v8 = vadd.f32 %v6059_v47, %v418_v3  ;;  %v419_v9 = vmul.f32 %v5488_v6, %v6054_v46  ;;  %v361_v10 = vpop.f32.mrb[7].mxu0 }
 0x10d   :  { %v439_v15 = vadd.f32 %v6059_v47, %v416_v5  ;;  %v417_v17 = vmul.f32 %v6054_v46, %v361_v10 }
 0x10e   :  { %v457_v18 = vmax.f32 %v441_v8, 0.0  ;;  %v442_v19 = vadd.f32 %v6059_v47, %v419_v9  ;;  %v5692_v9 = vld [vmem:[%s7527_s6 + $0x90] sm:$0xff]  }
 0x10f   :  { %v455_v21 = vmax.f32 %v439_v15, 0.0  ;;  %v440_v22 = vadd.f32 %v6059_v47, %v417_v17  ;;  %v615_v23 = vld [vmem:[#allocation3 + $0x30] sm:$0xff]  ;;  %5070 = vmatpush3.bf16.msra.mxu0 %v5692_v9 }
 0x110   :  { %474 = vst.msk [vmem:[#allocation3 + $0x71] sm:$0xff] %vm76_vm0, %v457_v18  ;;  %v458_v25 = vmax.f32 %v442_v19, 0.0  ;;  %v613_v26 = vld [vmem:[#allocation3 + $0x10] sm:$0xff] }
 0x111   :  { %v519_v27 = vld [vmem:[#allocation3 + $0x31] sm:$0xff]  ;;  %472 = vst.msk [vmem:[#allocation3 + $0x51] sm:$0xff] %vm76_vm0, %v455_v21  ;;  %v456_v29 = vmax.f32 %v440_v22, 0.0  ;;  %v5491_v30 = vpop.f32.mrb[8].mxu0  ;;  %v6103_v31 = vld [vmem:[#allocation3 + $0x40] sm:$0xff]  ;;  %v500_v35 = vpack.c.bf16 %v613_v26, %v484_v20 }
 0x112   :  { %v6100_v28 = vld [vmem:[#allocation3 + $0x12] sm:$0xff]  ;;  %v6105_v32 = vld [vmem:[#allocation3 + $0x41] sm:$0xff]  ;;  %475 = vst.msk [vmem:[#allocation3 + $0x81] sm:$0xff] %vm76_vm0, %v458_v25  ;;  %v422_v36 = vmul.f32 %v5491_v30, %v6054_v46  ;;  %v374_v37 = vpop.f32.mrb[9].mxu0  ;;  %v630_v16 = vpack.c.bf16 %v6103_v31, %v615_v23 }
 0x113   :  { %v6107_v33 = vld [vmem:[#allocation3 + $0x32] sm:$0xff]  ;;  %v597_v34 = vpack.c.bf16 %v6100_v28, %v581_v11  ;;  %v614_v24 = vld [vmem:[#allocation3 + $0x20] sm:$0xff]  ;;  %v694_v42 = vpack.c.bf16 %v6105_v32, %v519_v27  ;;  %473 = vst.msk [vmem:[#allocation3 + $0x61] sm:$0xff] %vm76_vm0, %v456_v29  ;;  %v420_v43 = vmul.f32 %v6054_v46, %v374_v37  ;;  %v5492_v44 = vpop.f32.mrb[10].mxu0  ;;  %508 = vst.msk [vmem:[#allocation4] sm:$0xff] %vm76_vm0, %v500_v35 }
 0x114   :  { %v518_v38 = vld [vmem:[#allocation3 + $0x21] sm:$0xff]  ;;  %v517_v40 = vld [vmem:[#allocation3 + $0x11] sm:$0xff]  ;;  %v629_v45 = vpack.c.bf16 %v614_v24, %v613_v26  ;;  %v445_v51 = vadd.f32 %v6059_v47, %v422_v36  ;;  %v423_v52 = vmul.f32 %v5492_v44, %v6054_v46  ;;  %647 = vrot.lane.b32.xlu1 %v630_v16, %s5808_s24  ;;  %v377_v53 = vpop.f32.mrb[11].mxu0  ;;  %v501_v55 = vpack.c.bf16 %v615_v23, %v614_v24 }
 0x115   :  { %v6113_v41 = vld [vmem:[#allocation3 + $0x22] sm:$0xff]  ;;  %605 = vst.msk [vmem:[#allocation4 + $0x8] sm:$0xff] %vm76_vm0, %v597_v34  ;;  %702 = vst.msk [vmem:[#allocation4 + $0x38] sm:$0xff] %vm76_vm0, %v694_v42  ;;  %v443_v59 = vadd.f32 %v6059_v47, %v420_v43  ;;  %v421_v60 = vmul.f32 %v6054_v46, %v377_v53  ;;  %v693_v61 = vpack.c.bf16 %v518_v38, %v517_v40  ;;  %v6189_v22 = vld [vmem:[#allocation3 + $0x90] sm:$0xff] }
 0x116   :  { %v598_v54 = vpack.c.bf16 %v6107_v33, %v6113_v41  ;;  %645 = vrot.lane.b32.xlu0 %v629_v45, %s5808_s24  ;;  %v870_v62 = vld [vmem:[#allocation3 + $0x22] sm:$0xff]  ;;  %v461_v0 = vmax.f32 %v445_v51, 0.0  ;;  %v446_v1 = vadd.f32 %v6059_v47, %v423_v52  ;;  %v6152_v2 = vpack.c.bf16 %v519_v27, %v518_v38  ;;  %509 = vst.msk [vmem:[#allocation4 + $0x28] sm:$0xff] %vm76_vm0, %v501_v55  ;;  %v6195_v30 = vld [vmem:[#allocation3 + $0x92] sm:$0xff] }
 0x117   :  { %v6149_v63 = vld [vmem:[#allocation3 + $0x42] sm:$0xff]  ;;  %798 = vst.msk [vmem:[#allocation4 + $0x18] sm:$0xff] %vm76_vm0, %v501_v55  ;;  %v886_v3 = vpack.c.bf16 %v6107_v33, %v870_v62  ;;  %v459_v4 = vmax.f32 %v443_v59, 0.0  ;;  %v444_v5 = vadd.f32 %v6059_v47, %v421_v60  ;;  %v532_v6 = vpack.c.bf16 %v517_v40, %v516_v39  ;;  %v6159_v7 = vld [vmem:[#allocation3 + $0x71] sm:$0xff]  ;;  %701 = vst.msk [vmem:[#allocation4 + $0x10] sm:$0xff] %vm76_vm0, %v693_v61 }
 0x118   :  { %606 = vst.msk [vmem:[#allocation4 + $0x30] sm:$0xff] %vm76_vm0, %v598_v54  ;;  %v6161_v8 = vld [vmem:[#allocation3 + $0x70] sm:$0xff]  ;;  %478 = vst.msk [vmem:[#allocation3 + $0xd1] sm:$0xff] %vm76_vm0, %v461_v0  ;;  %v462_v11 = vmax.f32 %v446_v1, 0.0  ;;  %550 = vrot.lane.b32.xlu1 %v6152_v2, %s5808_s24  ;;  %v5693_v16 = vld [vmem:[%s7527_s6 + $0xd8] sm:$0xff]  }
 0x119   :  { %v6168_v10 = vld [vmem:[#allocation3 + $0x52] sm:$0xff]  ;;  %894 = vst.msk [vmem:[#allocation4 + $0x20] sm:$0xff] %vm76_vm0, %v886_v3  ;;  %476 = vst.msk [vmem:[#allocation3 + $0xb1] sm:$0xff] %vm76_vm0, %v459_v4  ;;  %v460_v14 = vmax.f32 %v444_v5, 0.0  ;;  %v5495_v15 = vpop.f32.mrb[12].mxu0  ;;  %v6182_v18 = vld [vmem:[#allocation3 + $0x80] sm:$0xff]  ;;  %5071 = vmatprep.subr.bf16.mxu0 %v5693_v16 }
 0x11a   :  { %v6173_v12 = vld [vmem:[#allocation3 + $0x51] sm:$0xff]  ;;  %548 = vrot.lane.b32.xlu0 %v532_v6, %s5808_s24  ;;  %v599_v21 = vpack.c.bf16 %v6168_v10, %v6149_v63  ;;  %479 = vst.msk [vmem:[#allocation3 + $0xe1] sm:$0xff] %vm76_vm0, %v462_v11  ;;  %v426_v23 = vmul.f32 %v5495_v15, %v6054_v46  ;;  %v390_v25 = vpop.f32.mrb[13].mxu0  ;;  %v618_v26 = vld [vmem:[#allocation3 + $0x60] sm:$0xff]  ;;  %v632_v36 = vpack.c.bf16 %v6182_v18, %v6161_v8 }
 0x11b   :  { %v617_v13 = vld [vmem:[#allocation3 + $0x50] sm:$0xff]  ;;  %v6180_v17 = vpack.c.bf16 %v6173_v12, %v6105_v32  ;;  %v522_v27 = vld [vmem:[#allocation3 + $0x61] sm:$0xff]  ;;  %477 = vst.msk [vmem:[#allocation3 + $0xc1] sm:$0xff] %vm76_vm0, %v460_v14  ;;  %v5496_v32 = vpop.f32.mrb[14].mxu0  ;;  %v5694_v24 = vld [vmem:[%s7527_s6 + $0x98] sm:$0xff]   ;;  %v503_v43 = vpack.c.bf16 %v6161_v8, %v618_v26 }
 0x11c   :  { %v6184_v19 = vld [vmem:[#allocation3 + $0x72] sm:$0xff]  ;;  %v502_v20 = vpack.c.bf16 %v617_v13, %v6103_v31  ;;  %v6193_v29 = vld [vmem:[#allocation3 + $0x62] sm:$0xff]  ;;  %v424_v31 = vmul.f32 %v6054_v46, %v390_v25  ;;  %v631_v34 = vpack.c.bf16 %v618_v26, %v617_v13  ;;  %v6200_v35 = vpack.c.bf16 %v6159_v7, %v522_v27  ;;  %607 = vst.msk [vmem:[#allocation4 + $0x58] sm:$0xff] %vm76_vm0, %v599_v21  ;;  %v393_v40 = vpop.f32.mrb[15].mxu0 }
 0x11d   :  { %v6204_v37 = vld [vmem:[#allocation3 + $0x81] sm:$0xff]  ;;  %895 = vst.msk [vmem:[#allocation4 + $0x48] sm:$0xff] %vm76_vm0, %v599_v21  ;;  %v449_v38 = vadd.f32 %v6059_v47, %v426_v23  ;;  %v427_v39 = vmul.f32 %v5496_v32, %v6054_v46  ;;  %552 = vrot.lane.b32.xlu1 %v6180_v17, %s5808_s24  ;;  %v600_v44 = vpack.c.bf16 %v6184_v19, %v6193_v29  ;;  %511 = vst.msk [vmem:[#allocation4 + $0x78] sm:$0xff] %vm76_vm0, %v503_v43  ;;  %v5701_v16 = vld [vmem:[%s7527_s6 + $0xf0] sm:$0xff]  }
 0x11e   :  { %510 = vst.msk [vmem:[#allocation4 + $0x50] sm:$0xff] %vm76_vm0, %v502_v20  ;;  %799 = vst.msk [vmem:[#allocation4 + $0x40] sm:$0xff] %vm76_vm0, %v502_v20  ;;  %v524_v42 = vld [vmem:[#allocation3 + $0xa1] sm:$0xff]  ;;  %v447_v50 = vadd.f32 %v6059_v47, %v424_v31  ;;  %v425_v51 = vmul.f32 %v6054_v46, %v393_v40  ;;  %649 = vrot.lane.b32.xlu0 %v631_v34, %s5808_s24  ;;  %v695_v52 = vpack.c.bf16 %v522_v27, %v6173_v12  ;;  %v5702_v40 = vld [vmem:[%s7527_s6 + $0xb0] sm:$0xff]  }
 0x11f   :  { %v492_v45 = vld [vmem:[#allocation3 + $0xa0] sm:$0xff]  ;;  %v465_v54 = vmax.f32 %v449_v38, 0.0  ;;  %v450_v55 = vadd.f32 %v6059_v47, %v427_v39  ;;  %608 = vst.msk [vmem:[#allocation4 + $0x80] sm:$0xff] %vm76_vm0, %v600_v44  ;;  %800 = vst.msk [vmem:[#allocation4 + $0x68] sm:$0xff] %vm76_vm0, %v503_v43  ;;  %v696_v58 = vpack.c.bf16 %v6204_v37, %v6159_v7  ;;  %v793_v46 = vpack.c.bf16 %v6189_v22, %v6182_v18  ;;  %v527_v61 = vld [vmem:[#allocation3 + $0xd1] sm:$0xff] }
 0x120   :  { %v874_v49 = vld [vmem:[#allocation3 + $0x62] sm:$0xff]  ;;  %v463_v59 = vmax.f32 %v447_v50, 0.0  ;;  %v448_v60 = vadd.f32 %v6059_v47, %v425_v51  ;;  %5072 = vmatpush3.bf16.msra.mxu0 %v5694_v24  ;;  %703 = vst.msk [vmem:[#allocation4 + $0x60] sm:$0xff] %vm76_vm0, %v695_v52  ;;  %v525_v4 = vld [vmem:[#allocation3 + $0xb1] sm:$0xff] }
 0x121   :  { %v876_v53 = vld [vmem:[#allocation3 + $0x82] sm:$0xff]  ;;  %v888_v0 = vpack.c.bf16 %v6184_v19, %v874_v49  ;;  %482 = vst.msk [vmem:[#allocation3 + $0x111] sm:$0xff] %vm76_vm0, %v465_v54  ;;  %v466_v3 = vmax.f32 %v450_v55, 0.0  ;;  %554 = vrot.lane.b32.xlu1 %v6200_v35, %s5808_s24  ;;  %v621_v47 = vld [vmem:[#allocation3 + $0xb0] sm:$0xff]  ;;  %5073 = vmatprep.subr.bf16.mxu0 %v5696_v48  ;;  %704 = vst.msk [vmem:[#allocation4 + $0x88] sm:$0xff] %vm76_vm0, %v696_v58  ;;  %v536_v8 = vpack.c.bf16 %v525_v4, %v524_v42 }
 0x122   :  { %v5697_v62 = vld [vmem:[%s7527_s6 + $0xa0] sm:$0xff]   ;;  %v889_v1 = vpack.c.bf16 %v6195_v30, %v876_v53  ;;  %v623_v5 = vld [vmem:[#allocation3 + $0xd0] sm:$0xff]  ;;  %801 = vst.msk [vmem:[#allocation4 + $0x90] sm:$0xff] %vm76_vm0, %v793_v46  ;;  %480 = vst.msk [vmem:[#allocation3 + $0xf1] sm:$0xff] %vm76_vm0, %v463_v59  ;;  %v464_v7 = vmax.f32 %v448_v60, 0.0  ;;  %651 = vrot.lane.b32.xlu0 %v632_v36, %s5808_s24  ;;  %v504_v13 = vpack.c.bf16 %v621_v47, %v492_v45 }
 0x123   :  { %v6248_v6 = vld [vmem:[#allocation3 + $0xb2] sm:$0xff]  ;;  %v624_v9 = vld [vmem:[#allocation3 + $0xe0] sm:$0xff]  ;;  %896 = vst.msk [vmem:[#allocation4 + $0x70] sm:$0xff] %vm76_vm0, %v888_v0  ;;  %483 = vst.msk [vmem:[#allocation3 + $0x121] sm:$0xff] %vm76_vm0, %v466_v3 }
 0x124   :  { %v528_v11 = vld [vmem:[#allocation3 + $0xe1] sm:$0xff]  ;;  %v6254_v12 = vld [vmem:[#allocation3 + $0xd2] sm:$0xff]  ;;  %v601_v14 = vpack.c.bf16 %v6248_v6, %v589_v56  ;;  %897 = vst.msk [vmem:[#allocation4 + $0x98] sm:$0xff] %vm76_vm0, %v889_v1  ;;  %481 = vst.msk [vmem:[#allocation3 + $0x101] sm:$0xff] %vm76_vm0, %v464_v7  ;;  %5074 = vmatpush3.bf16.msra.mxu0 %v5697_v62  ;;  %v634_v34 = vpack.c.bf16 %v624_v9, %v623_v5 }
 0x125   :  { %v622_v15 = vld [vmem:[#allocation3 + $0xc0] sm:$0xff]  ;;  %v698_v21 = vpack.c.bf16 %v528_v11, %v527_v61  ;;  %512 = vst.msk [vmem:[#allocation4 + $0xa0] sm:$0xff] %vm76_vm0, %v504_v13  ;;  %v5698_v25 = vld [vmem:[%s7527_s6 + $0xe8] sm:$0xff]   ;;  %556 = vrot.lane.b32.xlu1 %v536_v8, %s5808_s24  ;;  %v789_v42 = vld [vmem:[#allocation3 + $0x130] sm:$0xff] }
 0x126   :  { %v526_v18 = vld [vmem:[#allocation3 + $0xc1] sm:$0xff]  ;;  %v633_v22 = vpack.c.bf16 %v622_v15, %v621_v47  ;;  %609 = vst.msk [vmem:[#allocation4 + $0xa8] sm:$0xff] %vm76_vm0, %v601_v14  ;;  %v505_v23 = vpack.c.bf16 %v623_v5, %v622_v15  ;;  %5075 = vmatprep.subr.bf16.mxu0 %v5698_v25  ;;  %v885_v55 = vld [vmem:[#allocation3 + $0x132] sm:$0xff] }
 0x127   :  { %v6260_v20 = vld [vmem:[#allocation3 + $0xc2] sm:$0xff]  ;;  %v6272_v27 = vpack.c.bf16 %v527_v61, %v526_v18  ;;  %v697_v31 = vpack.c.bf16 %v526_v18, %v525_v4  ;;  %706 = vst.msk [vmem:[#allocation4 + $0xd8] sm:$0xff] %vm76_vm0, %v698_v21  ;;  %v5703_v0 = vld [vmem:[%s7527_s6 + $0xf8] sm:$0xff]  }
 0x128   :  { %v5699_v26 = vld [vmem:[%s7527_s6 + $0xa8] sm:$0xff]   ;;  %v602_v30 = vpack.c.bf16 %v6254_v12, %v6260_v20  ;;  %653 = vrot.lane.b32.xlu0 %v633_v22, %s5808_s24  ;;  %513 = vst.msk [vmem:[#allocation4 + $0xc8] sm:$0xff] %vm76_vm0, %v505_v23  ;;  %802 = vst.msk [vmem:[#allocation4 + $0xb8] sm:$0xff] %vm76_vm0, %v505_v23  ;;  %v531_v39 = vld [vmem:[#allocation3 + $0x111] sm:$0xff] }
 0x129   :  { %v878_v32 = vld [vmem:[#allocation3 + $0xc2] sm:$0xff]  ;;  %705 = vst.msk [vmem:[#allocation4 + $0xb0] sm:$0xff] %vm76_vm0, %v697_v31  ;;  %5076 = vmatpush3.bf16.msra.mxu0 %v5699_v26  ;;  %558 = vrot.lane.b32.xlu1 %v6272_v27, %s5808_s24  ;;  %v529_v43 = vld [vmem:[#allocation3 + $0xf1] sm:$0xff] }
 0x12a   :  { %v6278_v36 = vld [vmem:[#allocation3 + $0xe2] sm:$0xff]  ;;  %v890_v24 = vpack.c.bf16 %v6254_v12, %v878_v32  ;;  %610 = vst.msk [vmem:[#allocation4 + $0xd0] sm:$0xff] %vm76_vm0, %v602_v30  ;;  %v625_v44 = vld [vmem:[#allocation3 + $0xf0] sm:$0xff]  ;;  %5077 = vmatprep.subr.bf16.mxu0 %v5701_v16  ;;  %v6297_v48 = vpack.c.bf16 %v529_v43, %v528_v11  ;;  %v5704_v1 = vld [vmem:[%s7527_s6 + $0xb8] sm:$0xff]  }
 0x12b   :  { %v880_v38 = vld [vmem:[#allocation3 + $0xe2] sm:$0xff]  ;;  %v6294_v45 = vld [vmem:[#allocation3 + $0xf2] sm:$0xff]  ;;  %v506_v52 = vpack.c.bf16 %v625_v44, %v624_v9  ;;  %v725_v9 = vpack.c.bf16 %v6113_v41, %v6100_v28  ;;  %v726_v28 = vpack.c.bf16 %v6149_v63, %v6107_v33  ;;  %v727_v41 = vpack.c.bf16 %v6193_v29, %v6168_v10 }
 0x12c   :  { %898 = vst.msk [vmem:[#allocation4 + $0xc0] sm:$0xff] %vm76_vm0, %v890_v24  ;;  %655 = vrot.lane.b32.xlu0 %v634_v34, %s5808_s24  ;;  %v627_v49 = vld [vmem:[#allocation3 + $0x110] sm:$0xff]  ;;  %v6301_v51 = vld [vmem:[#allocation3 + $0x121] sm:$0xff]  ;;  %v603_v53 = vpack.c.bf16 %v6294_v45, %v6278_v36  ;;  %v891_v54 = vpack.c.bf16 %v6294_v45, %v880_v38  ;;  %v729_v33 = vpack.c.bf16 %v6260_v20, %v6248_v6 }
 0x12d   :  { %v6299_v50 = vld [vmem:[#allocation3 + $0x112] sm:$0xff]  ;;  %v626_v56 = vld [vmem:[#allocation3 + $0x100] sm:$0xff]  ;;  %v700_v59 = vpack.c.bf16 %v6301_v51, %v531_v39  ;;  %514 = vst.msk [vmem:[#allocation4 + $0xf0] sm:$0xff] %vm76_vm0, %v506_v52  ;;  %5078 = vmatpush3.bf16.msra.mxu0 %v5702_v40  ;;  %803 = vst.msk [vmem:[#allocation4 + $0xe0] sm:$0xff] %vm76_vm0, %v506_v52  ;;  %560 = vrot.lane.b32.xlu1 %v6297_v48, %s5808_s24  ;;  %v730_v63 = vpack.c.bf16 %v6278_v36, %v6254_v12 }
 0x12e   :  { %v628_v58 = vld [vmem:[#allocation3 + $0x120] sm:$0xff]  ;;  %v635_v60 = vpack.c.bf16 %v626_v56, %v625_v44  ;;  %611 = vst.msk [vmem:[#allocation4 + $0xf8] sm:$0xff] %vm76_vm0, %v603_v53  ;;  %v507_v62 = vpack.c.bf16 %v627_v49, %v626_v56  ;;  %899 = vst.msk [vmem:[#allocation4 + $0xe8] sm:$0xff] %vm76_vm0, %v891_v54  ;;  %5079 = vmatprep.subr.bf16.mxu0 %v5703_v0  ;;  %v813_v15 = vld [vmem:[#allocation3 + $0x91] sm:$0xff] }
 0x12f   :  { %v722_v46 = vld [vmem:[#allocation3 + $0x102] sm:$0xff]  ;;  %708 = vst.msk [vmem:[#allocation4 + $0x128] sm:$0xff] %vm76_vm0, %v700_v59  ;;  %v797_v47 = vpack.c.bf16 %v789_v42, %v628_v58  ;;  %v636_v14 = vpack.c.bf16 %v628_v58, %v627_v49  ;;  %v825_v21 = vpack.c.bf16 %v813_v15, %v6204_v37  ;;  %v5700_v36 = vld [vmem:[%s7527_s6 + $0x110] sm:$0xff]  }
 0x130   :  { %v530_v61 = vld [vmem:[#allocation3 + $0x101] sm:$0xff]  ;;  %v604_v3 = vpack.c.bf16 %v6299_v50, %v722_v46  ;;  %657 = vrot.lane.b32.xlu0 %v635_v60, %s5808_s24  ;;  %515 = vst.msk [vmem:[#allocation4 + $0x118] sm:$0xff] %vm76_vm0, %v507_v62  ;;  %804 = vst.msk [vmem:[#allocation4 + $0x108] sm:$0xff] %vm76_vm0, %v507_v62  ;;  %v731_v10 = vpack.c.bf16 %v722_v46, %v6294_v45  ;;  %v5708_v53 = vld [vmem:[%s7527_s6 + $0x130] sm:$0xff]  }
 0x131   :  { %v699_v4 = vpack.c.bf16 %v530_v61, %v529_v43  ;;  %v882_v5 = vld [vmem:[#allocation3 + $0x102] sm:$0xff]  ;;  %805 = vst.msk [vmem:[#allocation4 + $0x130] sm:$0xff] %vm76_vm0, %v797_v47  ;;  %5080 = vmatpush3.bf16.msra.mxu0 %v5704_v1  ;;  %741 = vrot.lane.b32.xlu1 %v725_v9, %s5808_s24  ;;  %v539_v13 = vpack.c.bf16 %v531_v39, %v530_v61  ;;  %v5709_v60 = vld [vmem:[%s7527_s6 + $0x138] sm:$0xff]  }
 0x132   :  { %v892_v7 = vpack.c.bf16 %v6299_v50, %v882_v5  ;;  %v884_v8 = vld [vmem:[#allocation3 + $0x122] sm:$0xff]  ;;  %612 = vst.msk [vmem:[#allocation4 + $0x120] sm:$0xff] %vm76_vm0, %v604_v3 }
 0x133   :  { %707 = vst.msk [vmem:[#allocation4 + $0x100] sm:$0xff] %vm76_vm0, %v699_v4  ;;  %v893_v11 = vpack.c.bf16 %v885_v55, %v884_v8  ;;  %v716_v18 = vld [vmem:[#allocation3 + $0x82] sm:$0xff] }
 0x134   :  { %900 = vst.msk [vmem:[#allocation4 + $0x110] sm:$0xff] %vm76_vm0, %v892_v7  ;;  %838 = vrot.lane.b32.xlu0 %v6152_v2, %s5808_s24  ;;  %v728_v2 = vpack.c.bf16 %v716_v18, %v6184_v19  ;;  %v821_v19 = vld [vmem:[#allocation3 + $0x131] sm:$0xff]  ;;  %v5706_v43 = vld [vmem:[%s7527_s6 + $0x120] sm:$0xff]  }
 0x135   :  { %901 = vst.msk [vmem:[#allocation4 + $0x138] sm:$0xff] %vm76_vm0, %v893_v11  ;;  %562 = vrot.lane.b32.xlu1 %v539_v13, %s5808_s24 }
 0x138   :  { %659 = vrot.lane.b32.xlu0 %v636_v14, %s5808_s24 }
 0x139   :  { %743 = vrot.lane.b32.xlu1 %v726_v28, %s5808_s24 }
 0x13c   :  { %840 = vrot.lane.b32.xlu0 %v6180_v17, %s5808_s24  ;;  %v724_v17 = vld [vmem:[#allocation3 + $0x122] sm:$0xff] }
 0x13d   :  { %745 = vrot.lane.b32.xlu1 %v727_v41, %s5808_s24  ;;  %v732_v29 = vpack.c.bf16 %v724_v17, %v6299_v50 }
 0x140   :  { %842 = vrot.lane.b32.xlu0 %v6200_v35, %s5808_s24  ;;  %v829_v35 = vpack.c.bf16 %v821_v19, %v6301_v51 }
 0x141   :  { %747 = vrot.lane.b32.xlu1 %v728_v2, %s5808_s24 }
 0x144   :  { %844 = vrot.lane.b32.xlu0 %v825_v21, %s5808_s24 }
 0x145   :  { %749 = vrot.lane.b32.xlu1 %v729_v33, %s5808_s24 }
 0x148   :  { %846 = vrot.lane.b32.xlu0 %v6272_v27, %s5808_s24  ;;  %v5695_v27 = vld [vmem:[%s7527_s6 + $0x108] sm:$0xff]  }
 0x149   :  { %751 = vrot.lane.b32.xlu1 %v730_v63, %s5808_s24 }
 0x14c   :  { %848 = vrot.lane.b32.xlu0 %v6297_v48, %s5808_s24  ;;  %v5707_v48 = vld [vmem:[%s7527_s6 + $0x128] sm:$0xff]  }
 0x14d   :  { %753 = vrot.lane.b32.xlu1 %v731_v10, %s5808_s24 }
 0x150   :  { %850 = vrot.lane.b32.xlu0 %v539_v13, %s5808_s24 }
 0x151   :  { %755 = vrot.lane.b32.xlu1 %v732_v29, %s5808_s24 }
 0x154   :  { %852 = vrot.lane.b32.xlu0 %v829_v35, %s5808_s24 }
 0x186   :  { %v648_v37 = vpop.permute.xlu1 %647 }
 0x187   :  { %670 = vst.msk [vmem:[#allocation4 + $0x30] sm:$0xff] %vm572_vm3, %v648_v37 }
 0x188   :  { %v646_v6 = vpop.permute.xlu0 %645 }
 0x189   :  { %669 = vst.msk [vmem:[#allocation4 + $0x8] sm:$0xff] %vm572_vm3, %v646_v6  ;;  %v906_v6 = vld [vmem:[#allocation4 + $0x20] sm:$0xff] }
 0x18a   :  { %v551_v12 = vpop.permute.xlu1 %550 }
 0x18b   :  { %574 = vst.msk [vmem:[#allocation4 + $0x28] sm:$0xff] %vm572_vm3, %v551_v12 }
 0x18c   :  { %v549_v20 = vpop.permute.xlu0 %548 }
 0x18d   :  { %573 = vst.msk [vmem:[#allocation4] sm:$0xff] %vm572_vm3, %v549_v20  ;;  %v911_v20 = vld [vmem:[#allocation4 + $0x48] sm:$0xff] }
 0x18e   :  { %v908_v32 = vld [vmem:[#allocation4 + $0x30] sm:$0xff] }
 0x18f   :  { %v553_v22 = vpop.permute.xlu1 %552 }
 0x190   :  { %575 = vst.msk [vmem:[#allocation4 + $0x50] sm:$0xff] %vm572_vm3, %v553_v22  ;;  %v650_v23 = vpop.permute.xlu0 %649  ;;  %v903_v25 = vld [vmem:[#allocation4 + $0x8] sm:$0xff] }
 0x191   :  { %671 = vst.msk [vmem:[#allocation4 + $0x58] sm:$0xff] %vm572_vm3, %v650_v23  ;;  %1294 = vmatprep.mubr.bf16.mxu1 %v903_v25  ;;  %v916_v23 = vld [vmem:[#allocation4 + $0x70] sm:$0xff] }
 0x192   :  { %v907_v40 = vld [vmem:[#allocation4 + $0x28] sm:$0xff] }
 0x193   :  { %v555_v26 = vpop.permute.xlu1 %554 }
 0x194   :  { %576 = vst.msk [vmem:[#allocation4 + $0x78] sm:$0xff] %vm572_vm3, %v555_v26  ;;  %v652_v30 = vpop.permute.xlu0 %651  ;;  %v902_v31 = vld [vmem:[#allocation4] sm:$0xff]  ;;  %v921_v26 = vld [vmem:[#allocation4 + $0x98] sm:$0xff] }
 0x195   :  { %672 = vst.msk [vmem:[#allocation4 + $0x80] sm:$0xff] %vm572_vm3, %v652_v30  ;;  %1295 = vmatmul.mubr.bf16.vlgmr.msra.gmra.mrb[0].mxu1 %v902_v31  ;;  %v926_v30 = vld [vmem:[#allocation4 + $0xc0] sm:$0xff] }
 0x196   :  { %5498 = vmatpush3.bf16.msra.mxu1 %v6140_v57  ;;  %1302 = vmatprep.mubr.bf16.mxu1 %v908_v32  ;;  %v5705_v57 = vld [vmem:[%s7527_s6 + $0x118] sm:$0xff]   ;;  %v931_v32 = vld [vmem:[#allocation4 + $0xe8] sm:$0xff] }
 0x197   :  { %v557_v34 = vpop.permute.xlu1 %556  ;;  %5499 = vmatprep.subr.bf16.mxu1 %v5695_v27  ;;  %v912_v50 = vld [vmem:[#allocation4 + $0x50] sm:$0xff] }
 0x198   :  { %577 = vst.msk [vmem:[#allocation4 + $0xa0] sm:$0xff] %vm572_vm3, %v557_v34  ;;  %v913_v38 = vld [vmem:[#allocation4 + $0x58] sm:$0xff] }
 0x19a   :  { %v654_v16 = vpop.permute.xlu0 %653  ;;  %5500 = vmatpush3.bf16.msra.mxu1 %v5695_v27 }
 0x19b   :  { %673 = vst.msk [vmem:[#allocation4 + $0xa8] sm:$0xff] %vm572_vm3, %v654_v16  ;;  %v559_v24 = vpop.permute.xlu1 %558  ;;  %5501 = vmatprep.subr.bf16.mxu1 %v5700_v36  ;;  %v917_v46 = vld [vmem:[#allocation4 + $0x78] sm:$0xff] }
 0x19c   :  { %578 = vst.msk [vmem:[#allocation4 + $0xc8] sm:$0xff] %vm572_vm3, %v559_v24  ;;  %v918_v51 = vld [vmem:[#allocation4 + $0x80] sm:$0xff]  ;;  %v941_v16 = vld [vmem:[#allocation4 + $0x138] sm:$0xff] }
 0x19d   :  { %1303 = vmatmul.mubr.bf16.gmra.mrb[4].mxu1 %v907_v40  ;;  %v5710_v24 = vld [vmem:[%s7523_s3 + $0x40] sm:$0xff]  }
 0x19e   :  { %v656_v39 = vpop.permute.xlu0 %655  ;;  %1310 = vmatprep.mubr.bf16.mxu1 %v913_v38  ;;  %5502 = vmatpush3.bf16.msra.mxu1 %v5700_v36  ;;  %v936_v36 = vld [vmem:[#allocation4 + $0x110] sm:$0xff]  ;;  %v5711_v38 = vld [vmem:[%s7523_s3 + $0x48] sm:$0xff]   ;;  %v5714_v40 = vld [vmem:[%s7523_s3 + $0x60] sm:$0xff]  }
 0x19f   :  { %674 = vst.msk [vmem:[#allocation4 + $0xd0] sm:$0xff] %vm572_vm3, %v656_v39  ;;  %v561_v42 = vpop.permute.xlu1 %560  ;;  %5503 = vmatprep.subr.bf16.mxu1 %v5705_v57  ;;  %v922_v4 = vld [vmem:[#allocation4 + $0xa0] sm:$0xff]  ;;  %5529 = vmatprep.subr.bf16.mxu0 %v5710_v24  ;;  %v5713_v39 = vld [vmem:[%s7523_s3 + $0x58] sm:$0xff]  }
 0x1a0   :  { %579 = vst.msk [vmem:[#allocation4 + $0xf0] sm:$0xff] %vm572_vm3, %v561_v42  ;;  %v5715_v42 = vld [vmem:[%s7523_s3 + $0x68] sm:$0xff]  }
 0x1a2   :  { %v658_v44 = vpop.permute.xlu0 %657  ;;  %5504 = vmatpush3.bf16.msra.mxu1 %v5705_v57  ;;  %v923_v56 = vld [vmem:[#allocation4 + $0xa8] sm:$0xff]  ;;  %v5712_v57 = vld [vmem:[%s7523_s3 + $0x50] sm:$0xff]  }
 0x1a3   :  { %675 = vst.msk [vmem:[#allocation4 + $0xf8] sm:$0xff] %vm572_vm3, %v658_v44  ;;  %v742_v45 = vpop.permute.xlu1 %741  ;;  %5505 = vmatprep.subr.bf16.mxu1 %v5706_v43  ;;  %v927_v41 = vld [vmem:[#allocation4 + $0xc8] sm:$0xff] }
 0x1a4   :  { %765 = vst.msk [vmem:[#allocation4 + $0x10] sm:$0xff] %vm572_vm3, %v742_v45 }
 0x1a5   :  { %1311 = vmatmul.mubr.bf16.gmra.mrb[8].mxu1 %v912_v50 }
 0x1a6   :  { %v839_v49 = vpop.permute.xlu0 %838  ;;  %1318 = vmatprep.mubr.bf16.mxu1 %v918_v51  ;;  %5506 = vmatpush3.bf16.msra.mxu1 %v5706_v43  ;;  %v928_v5 = vld [vmem:[#allocation4 + $0xd0] sm:$0xff] }
 0x1a7   :  { %862 = vst.msk [vmem:[#allocation4 + $0x18] sm:$0xff] %vm572_vm3, %v839_v49  ;;  %v563_v52 = vpop.permute.xlu1 %562  ;;  %5507 = vmatprep.subr.bf16.mxu1 %v5707_v48  ;;  %v932_v10 = vld [vmem:[#allocation4 + $0xf0] sm:$0xff] }
 0x1a8   :  { %580 = vst.msk [vmem:[#allocation4 + $0x118] sm:$0xff] %vm572_vm3, %v563_v52 }
 0x1aa   :  { %v660_v54 = vpop.permute.xlu0 %659  ;;  %5508 = vmatpush3.bf16.msra.mxu1 %v5707_v48  ;;  %v933_v14 = vld [vmem:[#allocation4 + $0xf8] sm:$0xff] }
 0x1ab   :  { %676 = vst.msk [vmem:[#allocation4 + $0x120] sm:$0xff] %vm572_vm3, %v660_v54  ;;  %v744_v55 = vpop.permute.xlu1 %743  ;;  %5509 = vmatprep.subr.bf16.mxu1 %v5708_v53  ;;  %v904_v61 = vld [vmem:[#allocation4 + $0x10] sm:$0xff] }
 0x1ac   :  { %766 = vst.msk [vmem:[#allocation4 + $0x38] sm:$0xff] %vm572_vm3, %v744_v55 }
 0x1ad   :  { %1319 = vmatmul.mubr.bf16.gmra.mrb[12].mxu1 %v917_v46 }
 0x1ae   :  { %v841_v58 = vpop.permute.xlu0 %840  ;;  %v905_v59 = vld [vmem:[#allocation4 + $0x18] sm:$0xff]  ;;  %1326 = vmatprep.mubr.bf16.mxu1 %v923_v56  ;;  %5510 = vmatpush3.bf16.msra.mxu1 %v5708_v53 }
 0x1af   :  { %863 = vst.msk [vmem:[#allocation4 + $0x40] sm:$0xff] %vm572_vm3, %v841_v58  ;;  %1391 = vmatprep.mubr.bf16.mxu0 %v905_v59  ;;  %v746_v62 = vpop.permute.xlu1 %745  ;;  %5511 = vmatprep.subr.bf16.mxu1 %v5709_v60  ;;  %v937_v35 = vld [vmem:[#allocation4 + $0x118] sm:$0xff] }
 0x1b0   :  { %1392 = vmatmul.mubr.bf16.vlgmr.msra.gmra.mrb[16].mxu0 %v904_v61  ;;  %767 = vst.msk [vmem:[#allocation4 + $0x60] sm:$0xff] %vm572_vm3, %v746_v62 }
 0x1b1   :  { %5530 = vmatpush3.bf16.msra.mxu0 %v5710_v24 }
 0x1b2   :  { %v843_v0 = vpop.permute.xlu0 %842  ;;  %5512 = vmatpush3.bf16.msra.mxu1 %v5709_v60  ;;  %v938_v17 = vld [vmem:[#allocation4 + $0x120] sm:$0xff]  ;;  %5531 = vmatprep.subr.bf16.mxu0 %v5711_v38 }
 0x1b3   :  { %864 = vst.msk [vmem:[#allocation4 + $0x68] sm:$0xff] %vm572_vm3, %v843_v0  ;;  %v748_v1 = vpop.permute.xlu1 %747  ;;  %v909_v7 = vld [vmem:[#allocation4 + $0x38] sm:$0xff] }
 0x1b4   :  { %768 = vst.msk [vmem:[#allocation4 + $0x88] sm:$0xff] %vm572_vm3, %v748_v1 }
 0x1b5   :  { %1327 = vmatmul.mubr.bf16.gmra.mrb[16].mxu1 %v922_v4  ;;  %5532 = vmatpush3.bf16.msra.mxu0 %v5711_v38 }
 0x1b6   :  { %v845_v3 = vpop.permute.xlu0 %844  ;;  %v910_v47 = vld [vmem:[#allocation4 + $0x40] sm:$0xff]  ;;  %1334 = vmatprep.mubr.bf16.mxu1 %v928_v5  ;;  %5533 = vmatprep.subr.bf16.mxu0 %v5712_v57 }
 0x1b7   :  { %865 = vst.msk [vmem:[#allocation4 + $0x90] sm:$0xff] %vm572_vm3, %v845_v3  ;;  %1399 = vmatprep.mubr.bf16.mxu0 %v910_v47  ;;  %v750_v8 = vpop.permute.xlu1 %749  ;;  %v914_v15 = vld [vmem:[#allocation4 + $0x60] sm:$0xff] }
 0x1b8   :  { %1400 = vmatmul.mubr.bf16.gmra.mrb[20].mxu0 %v909_v7  ;;  %769 = vst.msk [vmem:[#allocation4 + $0xb0] sm:$0xff] %vm572_vm3, %v750_v8 }
 0x1b9   :  { %5534 = vmatpush3.bf16.msra.mxu0 %v5712_v57 }
 0x1ba   :  { %v847_v9 = vpop.permute.xlu0 %846  ;;  %v915_v11 = vld [vmem:[#allocation4 + $0x68] sm:$0xff]  ;;  %5535 = vmatprep.subr.bf16.mxu0 %v5713_v39 }
 0x1bb   :  { %866 = vst.msk [vmem:[#allocation4 + $0xb8] sm:$0xff] %vm572_vm3, %v847_v9  ;;  %1407 = vmatprep.mubr.bf16.mxu0 %v915_v11  ;;  %v752_v13 = vpop.permute.xlu1 %751  ;;  %v919_v19 = vld [vmem:[#allocation4 + $0x88] sm:$0xff] }
 0x1bc   :  { %770 = vst.msk [vmem:[#allocation4 + $0xd8] sm:$0xff] %vm572_vm3, %v752_v13 }
 0x1bd   :  { %1335 = vmatmul.mubr.bf16.gmra.mrb[20].mxu1 %v927_v41  ;;  %5536 = vmatpush3.bf16.msra.mxu0 %v5713_v39 }
 0x1be   :  { %v849_v28 = vpop.permute.xlu0 %848  ;;  %v920_v18 = vld [vmem:[#allocation4 + $0x90] sm:$0xff]  ;;  %1342 = vmatprep.mubr.bf16.mxu1 %v933_v14  ;;  %5537 = vmatprep.subr.bf16.mxu0 %v5714_v40 }
 0x1bf   :  { %867 = vst.msk [vmem:[#allocation4 + $0xe0] sm:$0xff] %vm572_vm3, %v849_v28  ;;  %v754_v2 = vpop.permute.xlu1 %753  ;;  %v924_v37 = vld [vmem:[#allocation4 + $0xb0] sm:$0xff] }
 0x1c0   :  { %1408 = vmatmul.mubr.bf16.gmra.mrb[24].mxu0 %v914_v15  ;;  %771 = vst.msk [vmem:[#allocation4 + $0x100] sm:$0xff] %vm572_vm3, %v754_v2 }
 0x1c1   :  { %1415 = vmatprep.mubr.bf16.mxu0 %v920_v18  ;;  %5538 = vmatpush3.bf16.msra.mxu0 %v5714_v40 }
 0x1c2   :  { %v851_v21 = vpop.permute.xlu0 %850  ;;  %v925_v29 = vld [vmem:[#allocation4 + $0xb8] sm:$0xff]  ;;  %5539 = vmatprep.subr.bf16.mxu0 %v5715_v42 }
 0x1c3   :  { %868 = vst.msk [vmem:[#allocation4 + $0x108] sm:$0xff] %vm572_vm3, %v851_v21  ;;  %v756_v33 = vpop.permute.xlu1 %755  ;;  %v929_v22 = vld [vmem:[#allocation4 + $0xd8] sm:$0xff] }
 0x1c4   :  { %772 = vst.msk [vmem:[#allocation4 + $0x128] sm:$0xff] %vm572_vm3, %v756_v33 }
 0x1c5   :  { %1343 = vmatmul.mubr.bf16.gmra.mrb[24].mxu1 %v932_v10  ;;  %5540 = vmatpush3.bf16.msra.mxu0 %v5715_v42 }
 0x1c6   :  { %v853_v63 = vpop.permute.xlu0 %852  ;;  %1350 = vmatprep.mubr.bf16.mxu1 %v938_v17  ;;  %v930_v12 = vld [vmem:[#allocation4 + $0xe0] sm:$0xff] }
 0x1c7   :  { %869 = vst.msk [vmem:[#allocation4 + $0x130] sm:$0xff] %vm572_vm3, %v853_v63  ;;  %v934_v27 = vld [vmem:[#allocation4 + $0x100] sm:$0xff] }
 0x1c8   :  { %1416 = vmatmul.mubr.bf16.gmra.mrb[28].mxu0 %v919_v19 }
 0x1c9   :  { %1423 = vmatprep.mubr.bf16.mxu0 %v925_v29 }
 0x1ca   :  { %v935_v25 = vld [vmem:[#allocation4 + $0x108] sm:$0xff] }
 0x1cb   :  { %v939_v34 = vld [vmem:[#allocation4 + $0x128] sm:$0xff] }
 0x1cd   :  { %1351 = vmatmul.mubr.bf16.gmra.mrb[28].mxu1 %v937_v35 }
 0x1ce   :  { %5513 = vmatprep.mubr.bf16.mxu1 %v906_v6  ;;  %v940_v31 = vld [vmem:[#allocation4 + $0x130] sm:$0xff] }
 0x1d0   :  { %1424 = vmatmul.mubr.bf16.gmra.mrb[32].mxu0 %v924_v37 }
 0x1d1   :  { %1431 = vmatprep.mubr.bf16.mxu0 %v930_v12 }
 0x1d5   :  { %5514 = vmatmul.mubr.bf16.vlgmr.msra.gmra.mrb[32].mxu1 %v911_v20 }
 0x1d6   :  { %5517 = vmatprep.mubr.bf16.mxu1 %v916_v23 }
 0x1d8   :  { %1432 = vmatmul.mubr.bf16.gmra.mrb[36].mxu0 %v929_v22 }
 0x1d9   :  { %1439 = vmatprep.mubr.bf16.mxu0 %v935_v25 }
 0x1dd   :  { %5518 = vmatmul.mubr.bf16.gmra.mrb[36].mxu1 %v921_v26 }
 0x1de   :  { %5521 = vmatprep.mubr.bf16.mxu1 %v926_v30 }
 0x1e0   :  { %1440 = vmatmul.mubr.bf16.gmra.mrb[40].mxu0 %v934_v27 }
 0x1e1   :  { %1447 = vmatprep.mubr.bf16.mxu0 %v940_v31 }
 0x1e5   :  { %5522 = vmatmul.mubr.bf16.gmra.mrb[40].mxu1 %v931_v32 }
 0x1e6   :  { %5525 = vmatprep.mubr.bf16.mxu1 %v936_v36 }
 0x1e8   :  { %1448 = vmatmul.mubr.bf16.gmra.mrb[44].mxu0 %v939_v34 }
 0x1ed   :  { %5526 = vmatmul.mubr.bf16.gmra.mrb[44].mxu1 %v941_v16 }
 0x268   :  { %v5017_v43 = vpop.f32.mrb[0].mxu1 }
 0x269   :  { %v5018_v44 = vpop.f32.mrb[1].mxu1 }
 0x26a   :  { %v5019_v45 = vadd.f32 %v5018_v44, %v5017_v43  ;;  %v5020_v48 = vpop.f32.mrb[2].mxu1 }
 0x26b   :  { %v5021_v49 = vpop.f32.mrb[3].mxu1 }
 0x26c   :  { %v5022_v50 = vadd.f32 %v5021_v49, %v5020_v48 }
 0x270   :  { %v5023_v51 = vpop.f32.mrb[4].mxu1 }
 0x271   :  { %v5024_v52 = vpop.f32.mrb[5].mxu1 }
 0x272   :  { %v5025_v53 = vadd.f32 %v5024_v52, %v5023_v51  ;;  %v5026_v54 = vpop.f32.mrb[6].mxu1 }
 0x273   :  { %v5027_v55 = vpop.f32.mrb[7].mxu1 }
 0x274   :  { %v5028_v56 = vadd.f32 %v5027_v55, %v5026_v54 }
 0x278   :  { %v5029_v58 = vpop.f32.mrb[8].mxu1 }
 0x279   :  { %v5030_v46 = vpop.f32.mrb[9].mxu1 }
 0x27a   :  { %v5031_v59 = vadd.f32 %v5030_v46, %v5029_v58  ;;  %v5032_v60 = vpop.f32.mrb[10].mxu1 }
 0x27b   :  { %v5033_v61 = vpop.f32.mrb[11].mxu1 }
 0x27c   :  { %v5034_v62 = vadd.f32 %v5033_v61, %v5032_v60 }
 0x280   :  { %v5035_v0 = vpop.f32.mrb[12].mxu1 }
 0x281   :  { %v5036_v1 = vpop.f32.mrb[13].mxu1 }
 0x282   :  { %v5037_v4 = vadd.f32 %v5036_v1, %v5035_v0  ;;  %v5038_v47 = vpop.f32.mrb[14].mxu1  ;;  %v5716_v1 = vld [vmem:[%s7523_s3 + $0x70] sm:$0xff]  }
 0x283   :  { %v5081_v3 = vpop.f32.mrb[16].mxu0  ;;  %v5039_v8 = vpop.f32.mrb[15].mxu1  ;;  %5541 = vmatprep.subr.bf16.mxu0 %v5716_v1 }
 0x284   :  { %v5082_v5 = vpop.f32.mrb[17].mxu0  ;;  %v5040_v11 = vadd.f32 %v5039_v8, %v5038_v47  ;;  %5542 = vmatpush3.bf16.msra.mxu0 %v5716_v1 }
 0x285   :  { %v5083_v7 = vadd.f32 %v5082_v5, %v5081_v3  ;;  %v5084_v9 = vpop.f32.mrb[18].mxu0 }
 0x286   :  { %v5085_v13 = vpop.f32.mrb[19].mxu0 }
 0x287   :  { %v5086_v14 = vadd.f32 %v5085_v13, %v5084_v9  ;;  %v6440_v28 = vadd.f32 %v5083_v7, %v5019_v45 }
 0x288   :  { %v5041_v15 = vpop.f32.mrb[16].mxu1 }
 0x289   :  { %v6442_v41 = vadd.f32 %v5086_v14, %v5022_v50  ;;  %v5042_v18 = vpop.f32.mrb[17].mxu1 }
 0x28a   :  { %v5043_v21 = vadd.f32 %v5042_v18, %v5041_v15  ;;  %v5044_v33 = vpop.f32.mrb[18].mxu1 }
 0x28b   :  { %v5087_v2 = vpop.f32.mrb[20].mxu0  ;;  %v5045_v17 = vpop.f32.mrb[19].mxu1 }
 0x28c   :  { %v5088_v63 = vpop.f32.mrb[21].mxu0  ;;  %v5046_v29 = vadd.f32 %v5045_v17, %v5044_v33  ;;  %v5717_v17 = vld [vmem:[%s7523_s3 + $0x78] sm:$0xff]  }
 0x28d   :  { %v5089_v10 = vadd.f32 %v5088_v63, %v5087_v2  ;;  %v5090_v19 = vpop.f32.mrb[22].mxu0  ;;  %5543 = vmatprep.subr.bf16.mxu0 %v5717_v17 }
 0x28e   :  { %v5091_v35 = vpop.f32.mrb[23].mxu0  ;;  %5544 = vmatpush3.bf16.msra.mxu0 %v5717_v17 }
 0x28f   :  { %v5092_v37 = vadd.f32 %v5091_v35, %v5090_v19  ;;  %v1402_v6 = vadd.f32 %v5089_v10, %v5025_v53 }
 0x290   :  { %v5047_v20 = vpop.f32.mrb[20].mxu1 }
 0x291   :  { %v1405_v12 = vadd.f32 %v5092_v37, %v5028_v56  ;;  %v5048_v22 = vpop.f32.mrb[21].mxu1 }
 0x292   :  { %v5049_v25 = vadd.f32 %v5048_v22, %v5047_v20  ;;  %v5050_v26 = vpop.f32.mrb[22].mxu1 }
 0x293   :  { %v5093_v23 = vpop.f32.mrb[24].mxu0  ;;  %v5051_v31 = vpop.f32.mrb[23].mxu1 }
 0x294   :  { %v5094_v27 = vpop.f32.mrb[25].mxu0  ;;  %v5052_v34 = vadd.f32 %v5051_v31, %v5050_v26 }
 0x295   :  { %v5095_v30 = vadd.f32 %v5094_v27, %v5093_v23  ;;  %v5096_v32 = vpop.f32.mrb[26].mxu0 }
 0x296   :  { %v5097_v36 = vpop.f32.mrb[27].mxu0 }
 0x297   :  { %v5098_v16 = vadd.f32 %v5097_v36, %v5096_v32  ;;  %v1410_v24 = vadd.f32 %v5095_v30, %v5031_v59 }
 0x298   :  { %v5053_v57 = vpop.f32.mrb[24].mxu1 }
 0x299   :  { %v6444_v38 = vadd.f32 %v5098_v16, %v5034_v62  ;;  %v5054_v39 = vpop.f32.mrb[25].mxu1 }
 0x29a   :  { %v6446_v42 = vadd.f32 %v5054_v39, %v5053_v57  ;;  %v5056_v43 = vpop.f32.mrb[26].mxu1 }
 0x29b   :  { %v5099_v40 = vpop.f32.mrb[28].mxu0  ;;  %v5057_v48 = vpop.f32.mrb[27].mxu1 }
 0x29c   :  { %v5100_v44 = vpop.f32.mrb[29].mxu0  ;;  %v6448_v50 = vadd.f32 %v5057_v48, %v5056_v43 }
 0x29d   :  { %v5101_v45 = vadd.f32 %v5100_v44, %v5099_v40  ;;  %v5102_v49 = vpop.f32.mrb[30].mxu0 }
 0x29e   :  { %v5103_v51 = vpop.f32.mrb[31].mxu0 }
 0x29f   :  { %v5104_v52 = vadd.f32 %v5103_v51, %v5102_v49  ;;  %v1418_v53 = vadd.f32 %v5101_v45, %v5037_v4 }
 0x2a0   :  { %v5059_v55 = vpop.f32.mrb[28].mxu1 }
 0x2a1   :  { %v1421_v54 = vadd.f32 %v5104_v52, %v5040_v11  ;;  %v5060_v56 = vpop.f32.mrb[29].mxu1 }
 0x2a2   :  { %v6450_v46 = vadd.f32 %v5060_v56, %v5059_v55  ;;  %v5062_v59 = vpop.f32.mrb[30].mxu1 }
 0x2a3   :  { %v5105_v58 = vpop.f32.mrb[32].mxu0  ;;  %v5063_v62 = vpop.f32.mrb[31].mxu1 }
 0x2a4   :  { %v5106_v60 = vpop.f32.mrb[33].mxu0  ;;  %v6455_v3 = vadd.f32 %v5063_v62, %v5062_v59 }
 0x2a5   :  { %v5107_v61 = vadd.f32 %v5106_v60, %v5105_v58  ;;  %v5108_v0 = vpop.f32.mrb[34].mxu0 }
 0x2a6   :  { %v5109_v47 = vpop.f32.mrb[35].mxu0 }
 0x2a7   :  { %v5110_v5 = vadd.f32 %v5109_v47, %v5108_v0  ;;  %v1426_v4 = vadd.f32 %v5107_v61, %v5043_v21 }
 0x2a8   :  { %v5515_v8 = vpop.f32.mrb[32].mxu1 }
 0x2a9   :  { %v1429_v7 = vadd.f32 %v5110_v5, %v5046_v29  ;;  %v1499_v9 = vadd.f32 %v5515_v8, %v1402_v6  ;;  %v1490_v13 = vpop.f32.mrb[33].mxu1  ;;  %v6489_v5 = vld [vmem:[%s7525_s1 + $0x1] ss:$0 sm:$0xff] }
 0x2aa   :  { %v1491_v14 = vadd.f32 %v1490_v13, %v6440_v28  ;;  %v5516_v18 = vpop.f32.mrb[34].mxu1  ;;  %v6495_v8 = vld [vmem:[%s7526_s2 + $0x1] ss:$0 sm:$0xff] }
 0x2ab   :  { %v5111_v11 = vpop.f32.mrb[36].mxu0  ;;  %v1502_v33 = vadd.f32 %v5516_v18, %v1405_v12  ;;  %v1493_v10 = vpop.f32.mrb[35].mxu1 }
 0x2ac   :  { %v5112_v15 = vpop.f32.mrb[37].mxu0  ;;  %v1494_v21 = vadd.f32 %v1493_v10, %v6442_v41  ;;  %1569 = vrot.lane.b32.xlu0 %v1491_v14, %s5809_s13 }
 0x2ad   :  { %v5113_v2 = vadd.f32 %v5112_v15, %v5111_v11  ;;  %v5114_v63 = vpop.f32.mrb[38].mxu0 }
 0x2ae   :  { %v5115_v19 = vpop.f32.mrb[39].mxu0  ;;  %1571 = vrot.lane.b32.xlu1 %v1494_v21, %s5809_s13 }
 0x2af   :  { %v5116_v29 = vadd.f32 %v5115_v19, %v5114_v63  ;;  %v1434_v35 = vadd.f32 %v5113_v2, %v5049_v25 }
 0x2b0   :  { %v5519_v37 = vpop.f32.mrb[36].mxu1  ;;  %1573 = vrot.lane.b32.xlu0 %v1499_v9, %s5809_s13 }
 0x2b1   :  { %v1437_v28 = vadd.f32 %v5116_v29, %v5052_v34  ;;  %v1515_v6 = vadd.f32 %v5519_v37, %v1418_v53  ;;  %v1506_v20 = vpop.f32.mrb[37].mxu1 }
 0x2b2   :  { %v1507_v22 = vadd.f32 %v1506_v20, %v1410_v24  ;;  %v5520_v41 = vpop.f32.mrb[38].mxu1  ;;  %1575 = vrot.lane.b32.xlu1 %v1502_v33, %s5809_s13 }
 0x2b3   :  { %v5117_v12 = vpop.f32.mrb[40].mxu0  ;;  %v1518_v27 = vadd.f32 %v5520_v41, %v1421_v54  ;;  %v1509_v25 = vpop.f32.mrb[39].mxu1 }
 0x2b4   :  { %v5118_v23 = vpop.f32.mrb[41].mxu0  ;;  %v1510_v31 = vadd.f32 %v1509_v25, %v6444_v38  ;;  %1577 = vrot.lane.b32.xlu0 %v1507_v22, %s5809_s13 }
 0x2b5   :  { %v5119_v26 = vadd.f32 %v5118_v23, %v5117_v12  ;;  %v5120_v30 = vpop.f32.mrb[42].mxu0 }
 0x2b6   :  { %v5121_v32 = vpop.f32.mrb[43].mxu0  ;;  %1579 = vrot.lane.b32.xlu1 %v1510_v31, %s5809_s13 }
 0x2b7   :  { %v5122_v34 = vadd.f32 %v5121_v32, %v5120_v30  ;;  %v1442_v36 = vadd.f32 %v5119_v26, %v6446_v42 }
 0x2b8   :  { %v5523_v24 = vpop.f32.mrb[40].mxu1  ;;  %1581 = vrot.lane.b32.xlu0 %v1515_v6, %s5809_s13 }
 0x2b9   :  { %v1445_v16 = vadd.f32 %v5122_v34, %v6448_v50  ;;  %v1531_v57 = vadd.f32 %v5523_v24, %v1434_v35  ;;  %v1522_v40 = vpop.f32.mrb[41].mxu1 }
 0x2ba   :  { %v1523_v43 = vadd.f32 %v1522_v40, %v1426_v4  ;;  %v5524_v45 = vpop.f32.mrb[42].mxu1  ;;  %1583 = vrot.lane.b32.xlu1 %v1518_v27, %s5809_s13 }
 0x2bb   :  { %v5123_v39 = vpop.f32.mrb[44].mxu0  ;;  %v1534_v48 = vadd.f32 %v5524_v45, %v1437_v28  ;;  %v1525_v51 = vpop.f32.mrb[43].mxu1 }
 0x2bc   :  { %v5124_v44 = vpop.f32.mrb[45].mxu0  ;;  %v1526_v42 = vadd.f32 %v1525_v51, %v1429_v7  ;;  %1585 = vrot.lane.b32.xlu0 %v1523_v43, %s5809_s13 }
 0x2bd   :  { %v5125_v38 = vadd.f32 %v5124_v44, %v5123_v39  ;;  %v5126_v49 = vpop.f32.mrb[46].mxu0 }
 0x2be   :  { %v5127_v52 = vpop.f32.mrb[47].mxu0  ;;  %1587 = vrot.lane.b32.xlu1 %v1526_v42, %s5809_s13 }
 0x2bf   :  { %v5128_v50 = vadd.f32 %v5127_v52, %v5126_v49  ;;  %v1450_v53 = vadd.f32 %v5125_v38, %v6450_v46 }
 0x2c0   :  { %v5527_v55 = vpop.f32.mrb[44].mxu1  ;;  %1589 = vrot.lane.b32.xlu0 %v1531_v57, %s5809_s13 }
 0x2c1   :  { %v1453_v54 = vadd.f32 %v5128_v50, %v6455_v3  ;;  %v1547_v56 = vadd.f32 %v5527_v55, %v1450_v53  ;;  %v1538_v58 = vpop.f32.mrb[45].mxu1 }
 0x2c2   :  { %v1539_v59 = vadd.f32 %v1538_v58, %v1442_v36  ;;  %v5528_v60 = vpop.f32.mrb[46].mxu1  ;;  %1591 = vrot.lane.b32.xlu1 %v1534_v48, %s5809_s13 }
 0x2c3   :  { %v1550_v61 = vadd.f32 %v5528_v60, %v1453_v54  ;;  %v1541_v62 = vpop.f32.mrb[47].mxu1 }
 0x2c4   :  { %v1542_v0 = vadd.f32 %v1541_v62, %v1445_v16  ;;  %1593 = vrot.lane.b32.xlu0 %v1539_v59, %s5809_s13 }
 0x2c6   :  { %1595 = vrot.lane.b32.xlu1 %v1542_v0, %s5809_s13 }
 0x2c8   :  { %1597 = vrot.lane.b32.xlu0 %v1547_v56, %s5809_s13 }
 0x2ca   :  { %1599 = vrot.lane.b32.xlu1 %v1550_v61, %s5809_s13 }
 0x31e   :  { %v1570_v46 = vpop.permute.xlu0 %1569 }
 0x31f   :  { %1618 = vst.msk [vmem:[#allocation2] sm:$0xff] %vm1617_vm4, %v1570_v46 }
 0x320   :  { %v1572_v1 = vpop.permute.xlu1 %1571 }
 0x321   :  { %1619 = vst.msk [vmem:[#allocation2 + $0x8] sm:$0xff] %vm1617_vm4, %v1572_v1 }
 0x322   :  { %v1574_v3 = vpop.permute.xlu0 %1573 }
 0x323   :  { %1620 = vst.msk [vmem:[#allocation2 + $0x10] sm:$0xff] %vm1617_vm4, %v1574_v3 }
 0x324   :  { %v1576_v47 = vpop.permute.xlu1 %1575 }
 0x325   :  { %1621 = vst.msk [vmem:[#allocation2 + $0x18] sm:$0xff] %vm1617_vm4, %v1576_v47 }
 0x326   :  { %v1578_v4 = vpop.permute.xlu0 %1577  ;;  %v1634_v7 = vld [vmem:[#allocation2] sm:$0xff] }
 0x327   :  { %1622 = vst.msk [vmem:[#allocation2 + $0x20] sm:$0xff] %vm1617_vm4, %v1578_v4  ;;  %v1658_v9 = vmul.f32 %v6489_v5, %v1634_v7 }
 0x328   :  { %v1580_v11 = vpop.permute.xlu1 %1579  ;;  %v1635_v13 = vld [vmem:[#allocation2 + $0x8] sm:$0xff] }
 0x329   :  { %1623 = vst.msk [vmem:[#allocation2 + $0x28] sm:$0xff] %vm1617_vm4, %v1580_v11  ;;  %v1659_v14 = vmul.f32 %v6489_v5, %v1635_v13  ;;  %v1682_v15 = vadd.f32 %v6495_v8, %v1658_v9 }
 0x32a   :  { %v1582_v18 = vpop.permute.xlu0 %1581  ;;  %v1636_v2 = vld [vmem:[#allocation2 + $0x10] sm:$0xff] }
 0x32b   :  { %1624 = vst.msk [vmem:[#allocation2 + $0x30] sm:$0xff] %vm1617_vm4, %v1582_v18  ;;  %v1683_v33 = vadd.f32 %v6495_v8, %v1659_v14  ;;  %v1660_v63 = vmul.f32 %v6489_v5, %v1636_v2  ;;  %v1698_v21 = vmax.f32 %v1682_v15, 0.0 }
 0x32c   :  { %v1584_v10 = vpop.permute.xlu1 %1583  ;;  %v1637_v17 = vld [vmem:[#allocation2 + $0x18] sm:$0xff] }
 0x32d   :  { %1625 = vst.msk [vmem:[#allocation2 + $0x38] sm:$0xff] %vm1617_vm4, %v1584_v10  ;;  %v1699_v19 = vmax.f32 %v1683_v33, 0.0  ;;  %v1661_v29 = vmul.f32 %v6489_v5, %v1637_v17  ;;  %v1684_v35 = vadd.f32 %v6495_v8, %v1660_v63 }
 0x32e   :  { %v1586_v28 = vpop.permute.xlu0 %1585  ;;  %v1638_v37 = vld [vmem:[#allocation2 + $0x20] sm:$0xff] }
 0x32f   :  { %1626 = vst.msk [vmem:[#allocation2 + $0x40] sm:$0xff] %vm1617_vm4, %v1586_v28  ;;  %v1714_v6 = vpack.c.bf16 %v1699_v19, %v1698_v21  ;;  %v1685_v12 = vadd.f32 %v6495_v8, %v1661_v29  ;;  %v1662_v20 = vmul.f32 %v6489_v5, %v1638_v37  ;;  %v1700_v41 = vmax.f32 %v1684_v35, 0.0 }
 0x330   :  { %v1588_v22 = vpop.permute.xlu1 %1587  ;;  %v1639_v23 = vld [vmem:[#allocation2 + $0x28] sm:$0xff] }
 0x331   :  { %1627 = vst.msk [vmem:[#allocation2 + $0x48] sm:$0xff] %vm1617_vm4, %v1588_v22  ;;  %5545 = vmatprep.mubr.bf16.mxu0 %v1714_v6  ;;  %v1701_v26 = vmax.f32 %v1685_v12, 0.0  ;;  %v1663_v27 = vmul.f32 %v6489_v5, %v1639_v23  ;;  %v1686_v30 = vadd.f32 %v6495_v8, %v1662_v20  ;;  %v5718_v22 = vld [vmem:[%s7527_s6 + $0x180] sm:$0xff]  }
 0x332   :  { %v1590_v25 = vpop.permute.xlu0 %1589  ;;  %v1640_v31 = vld [vmem:[#allocation2 + $0x30] sm:$0xff]  ;;  %v5719_v23 = vld [vmem:[%s7527_s6 + $0x140] sm:$0xff]   ;;  %5161 = vmatprep.subr.bf16.mxu1 %v5718_v22 }
 0x333   :  { %1628 = vst.msk [vmem:[#allocation2 + $0x50] sm:$0xff] %vm1617_vm4, %v1590_v25  ;;  %v1715_v32 = vpack.c.bf16 %v1701_v26, %v1700_v41  ;;  %v1687_v34 = vadd.f32 %v6495_v8, %v1663_v27  ;;  %v1664_v36 = vmul.f32 %v6489_v5, %v1640_v31  ;;  %v1702_v57 = vmax.f32 %v1686_v30, 0.0  ;;  %5162 = vmatpush3.bf16.msra.mxu1 %v5719_v23  ;;  %v5722_v41 = vld [vmem:[%s7527_s6 + $0x190] sm:$0xff]   ;;  %v5724_v27 = vld [vmem:[%s7527_s6 + $0x198] sm:$0xff]   ;;  %v5726_v25 = vld [vmem:[%s7527_s6 + $0x1a0] sm:$0xff]  }
 0x334   :  { %v1592_v16 = vpop.permute.xlu1 %1591  ;;  %v1641_v24 = vld [vmem:[#allocation2 + $0x38] sm:$0xff]  ;;  %v5723_v26 = vld [vmem:[%s7527_s6 + $0x150] sm:$0xff]   ;;  %v5727_v31 = vld [vmem:[%s7527_s6 + $0x160] sm:$0xff]  }
 0x335   :  { %1629 = vst.msk [vmem:[#allocation2 + $0x58] sm:$0xff] %vm1617_vm4, %v1592_v16  ;;  %5546 = vmatmul.mubr.bf16.vlgmr.msra.gmra.mrb[48].mxu0 %v1715_v32  ;;  %v1703_v39 = vmax.f32 %v1687_v34, 0.0  ;;  %v1665_v40 = vmul.f32 %v6489_v5, %v1641_v24  ;;  %v1688_v43 = vadd.f32 %v6495_v8, %v1664_v36  ;;  %v5725_v30 = vld [vmem:[%s7527_s6 + $0x158] sm:$0xff]   ;;  %v5728_v32 = vld [vmem:[%s7527_s6 + $0x1a8] sm:$0xff]   ;;  %v6580_v36 = vld [vmem:[%s7528_s4 + $0x1] ss:$0 sm:$0xff] }
 0x336   :  { %v1594_v44 = vpop.permute.xlu0 %1593  ;;  %v1642_v45 = vld [vmem:[#allocation2 + $0x40] sm:$0xff]  ;;  %v5729_v34 = vld [vmem:[%s7527_s6 + $0x168] sm:$0xff]  }
 0x337   :  { %1630 = vst.msk [vmem:[#allocation2 + $0x60] sm:$0xff] %vm1617_vm4, %v1594_v44  ;;  %v1716_v38 = vpack.c.bf16 %v1703_v39, %v1702_v57  ;;  %v1689_v48 = vadd.f32 %v6495_v8, %v1665_v40  ;;  %v1666_v49 = vmul.f32 %v6489_v5, %v1642_v45  ;;  %v1704_v52 = vmax.f32 %v1688_v43, 0.0  ;;  %v6585_v24 = vld [vmem:[%s7529_s5 + $0x1] ss:$0 sm:$0xff] }
 0x338   :  { %v1596_v51 = vpop.permute.xlu1 %1595  ;;  %v1643_v42 = vld [vmem:[#allocation2 + $0x48] sm:$0xff] }
 0x339   :  { %1631 = vst.msk [vmem:[#allocation2 + $0x68] sm:$0xff] %vm1617_vm4, %v1596_v51  ;;  %5549 = vmatprep.mubr.bf16.mxu0 %v1716_v38  ;;  %v1705_v50 = vmax.f32 %v1689_v48, 0.0  ;;  %v1667_v53 = vmul.f32 %v6489_v5, %v1643_v42  ;;  %v1690_v54 = vadd.f32 %v6495_v8, %v1666_v49 }
 0x33a   :  { %v1598_v55 = vpop.permute.xlu0 %1597  ;;  %v1644_v56 = vld [vmem:[#allocation2 + $0x50] sm:$0xff] }
 0x33b   :  { %1632 = vst.msk [vmem:[#allocation2 + $0x70] sm:$0xff] %vm1617_vm4, %v1598_v55  ;;  %v1717_v58 = vpack.c.bf16 %v1705_v50, %v1704_v52  ;;  %v1691_v59 = vadd.f32 %v6495_v8, %v1667_v53  ;;  %v1668_v60 = vmul.f32 %v6489_v5, %v1644_v56  ;;  %v1706_v0 = vmax.f32 %v1690_v54, 0.0  ;;  %v5730_v54 = vld [vmem:[%s7527_s6 + $0x1b0] sm:$0xff]  }
 0x33c   :  { %v1600_v61 = vpop.permute.xlu1 %1599  ;;  %v1645_v62 = vld [vmem:[#allocation2 + $0x58] sm:$0xff]  ;;  %v5731_v55 = vld [vmem:[%s7527_s6 + $0x170] sm:$0xff]  }
 0x33d   :  { %1633 = vst.msk [vmem:[#allocation2 + $0x78] sm:$0xff] %vm1617_vm4, %v1600_v61  ;;  %5550 = vmatmul.mubr.bf16.gmra.mrb[52].mxu0 %v1717_v58  ;;  %v1707_v46 = vmax.f32 %v1691_v59, 0.0  ;;  %v1669_v1 = vmul.f32 %v6489_v5, %v1645_v62  ;;  %v1692_v3 = vadd.f32 %v6495_v8, %v1668_v60 }
 0x33e   :  { %v1646_v47 = vld [vmem:[#allocation2 + $0x60] sm:$0xff] }
 0x33f   :  { %v1718_v4 = vpack.c.bf16 %v1707_v46, %v1706_v0  ;;  %v1693_v7 = vadd.f32 %v6495_v8, %v1669_v1  ;;  %v1670_v9 = vmul.f32 %v6489_v5, %v1646_v47  ;;  %v1708_v13 = vmax.f32 %v1692_v3, 0.0  ;;  %v5732_v3 = vld [vmem:[%s7527_s6 + $0x1b8] sm:$0xff]  }
 0x340   :  { %v1647_v11 = vld [vmem:[#allocation2 + $0x68] sm:$0xff]  ;;  %v5733_v47 = vld [vmem:[%s7527_s6 + $0x178] sm:$0xff]  }
 0x341   :  { %5553 = vmatprep.mubr.bf16.mxu0 %v1718_v4  ;;  %v1709_v14 = vmax.f32 %v1693_v7, 0.0  ;;  %v1671_v15 = vmul.f32 %v6489_v5, %v1647_v11  ;;  %v1694_v18 = vadd.f32 %v6495_v8, %v1670_v9  ;;  %v5734_v4 = vld [vmem:[%s7527_s6 + $0x200] sm:$0xff]  }
 0x342   :  { %v1648_v2 = vld [vmem:[#allocation2 + $0x70] sm:$0xff]  ;;  %v1996_v11 = vld [vmem:[#allocation3 + $0x1] sm:$0xff]  ;;  %5225 = vmatprep.subr.bf16.mxu0 %v5734_v4 }
 0x343   :  { %v1719_v33 = vpack.c.bf16 %v1709_v14, %v1708_v13  ;;  %v1695_v63 = vadd.f32 %v6495_v8, %v1671_v15  ;;  %v1672_v10 = vmul.f32 %v6489_v5, %v1648_v2  ;;  %v1710_v21 = vmax.f32 %v1694_v18, 0.0  ;;  %v1964_v15 = vld [vmem:[#allocation3] sm:$0xff] }
 0x344   :  { %v1649_v17 = vld [vmem:[#allocation2 + $0x78] sm:$0xff]  ;;  %v2060_v18 = vld [vmem:[#allocation3 + $0x2] sm:$0xff] }
 0x345   :  { %5554 = vmatmul.mubr.bf16.gmra.mrb[56].mxu0 %v1719_v33  ;;  %v1711_v19 = vmax.f32 %v1695_v63, 0.0  ;;  %v1673_v29 = vmul.f32 %v6489_v5, %v1649_v17  ;;  %v1696_v35 = vadd.f32 %v6495_v8, %v1672_v10  ;;  %v5720_v5 = vld [vmem:[%s7527_s6 + $0x188] sm:$0xff]   ;;  %v5735_v2 = vld [vmem:[%s7527_s6 + $0x1c0] sm:$0xff]  }
 0x346   :  { %5163 = vmatprep.subr.bf16.mxu1 %v5720_v5  ;;  %5226 = vmatpush3.bf16.msra.mxu0 %v5735_v2 }
 0x347   :  { %v1720_v28 = vpack.c.bf16 %v1711_v19, %v1710_v21  ;;  %v1697_v37 = vadd.f32 %v6495_v8, %v1673_v29  ;;  %v1712_v6 = vmax.f32 %v1696_v35, 0.0  ;;  %v5721_v8 = vld [vmem:[%s7527_s6 + $0x148] sm:$0xff]  }
 0x348   :  { %5164 = vmatpush3.bf16.msra.mxu1 %v5721_v8 }
 0x349   :  { %5557 = vmatprep.mubr.bf16.mxu0 %v1720_v28  ;;  %v1713_v12 = vmax.f32 %v1697_v37, 0.0  ;;  %5165 = vmatprep.subr.bf16.mxu1 %v5722_v41 }
 0x34b   :  { %v1721_v20 = vpack.c.bf16 %v1713_v12, %v1712_v6 }
 0x34c   :  { %5166 = vmatpush3.bf16.msra.mxu1 %v5723_v26 }
 0x34d   :  { %5558 = vmatmul.mubr.bf16.gmra.mrb[60].mxu0 %v1721_v20  ;;  %5167 = vmatprep.subr.bf16.mxu1 %v5724_v27 }
 0x350   :  { %5168 = vmatpush3.bf16.msra.mxu1 %v5725_v30 }
 0x351   :  { %5169 = vmatprep.subr.bf16.mxu1 %v5726_v25 }
 0x354   :  { %5170 = vmatpush3.bf16.msra.mxu1 %v5727_v31 }
 0x355   :  { %5171 = vmatprep.subr.bf16.mxu1 %v5728_v32 }
 0x358   :  { %5172 = vmatpush3.bf16.msra.mxu1 %v5729_v34 }
 0x359   :  { %5173 = vmatprep.subr.bf16.mxu1 %v5730_v54 }
 0x35c   :  { %5174 = vmatpush3.bf16.msra.mxu1 %v5731_v55 }
 0x35d   :  { %5175 = vmatprep.subr.bf16.mxu1 %v5732_v3 }
 0x360   :  { %5176 = vmatpush3.bf16.msra.mxu1 %v5733_v47 }
 0x408   :  { %v5547_v16 = vpop.f32.mrb[48].mxu0 }
 0x409   :  { %v1894_v57 = vmul.f32 %v5547_v16, %v6580_v36  ;;  %v1821_v39 = vpop.f32.mrb[49].mxu0  ;;  %v6646_v16 = vld [vmem:[%s7527_s6 + $0x240] sm:$0xff]  }
 0x40a   :  { %v1892_v40 = vmul.f32 %v6580_v36, %v1821_v39  ;;  %v5548_v43 = vpop.f32.mrb[50].mxu0  ;;  %v5738_v39 = vld [vmem:[%s7527_s6 + $0x1c8] sm:$0xff]   ;;  %5561 = vmatprep.subr.bf16.mxu1 %v6646_v16 }
 0x40b   :  { %v1918_v44 = vadd.f32 %v6585_v24, %v1894_v57  ;;  %v1895_v45 = vmul.f32 %v5548_v43, %v6580_v36  ;;  %v1824_v38 = vpop.f32.mrb[51].mxu0  ;;  %v5737_v57 = vld [vmem:[%s7527_s6 + $0x208] sm:$0xff]  }
 0x40c   :  { %v1916_v48 = vadd.f32 %v6585_v24, %v1892_v40  ;;  %v1893_v49 = vmul.f32 %v6580_v36, %v1824_v38  ;;  %5227 = vmatprep.subr.bf16.mxu0 %v5737_v57 }
 0x40d   :  { %v1934_v51 = vmax.f32 %v1918_v44, 0.0  ;;  %v1919_v42 = vadd.f32 %v6585_v24, %v1895_v45  ;;  %5228 = vmatpush3.bf16.msra.mxu0 %v5738_v39  ;;  %v2004_v39 = vld [vmem:[#allocation3 + $0xa1] sm:$0xff] }
 0x40e   :  { %v1932_v52 = vmax.f32 %v1916_v48, 0.0  ;;  %v1917_v50 = vadd.f32 %v6585_v24, %v1893_v49  ;;  %v5739_v49 = vld [vmem:[%s7527_s6 + $0x210] sm:$0xff]  }
 0x40f   :  { %1950 = vst.msk [vmem:[#allocation3 + $0x31] sm:$0xff] %vm76_vm0, %v1934_v51  ;;  %v1935_v53 = vmax.f32 %v1919_v42, 0.0  ;;  %5229 = vmatprep.subr.bf16.mxu0 %v5739_v49  ;;  %v5745_v49 = vld [vmem:[%s7527_s6 + $0x1e0] sm:$0xff]  }
 0x410   :  { %1948 = vst.msk [vmem:[#allocation3 + $0x11] sm:$0xff] %vm76_vm0, %v1932_v52  ;;  %v1933_v56 = vmax.f32 %v1917_v50, 0.0  ;;  %v5551_v58 = vpop.f32.mrb[52].mxu0 }
 0x411   :  { %1951 = vst.msk [vmem:[#allocation3 + $0x41] sm:$0xff] %vm76_vm0, %v1935_v53  ;;  %v1898_v59 = vmul.f32 %v5551_v58, %v6580_v36  ;;  %v1837_v60 = vpop.f32.mrb[53].mxu0 }
 0x412   :  { %1949 = vst.msk [vmem:[#allocation3 + $0x21] sm:$0xff] %vm76_vm0, %v1933_v56  ;;  %v1896_v61 = vmul.f32 %v6580_v36, %v1837_v60  ;;  %v5552_v62 = vpop.f32.mrb[54].mxu0 }
 0x413   :  { %v1922_v0 = vadd.f32 %v6585_v24, %v1898_v59  ;;  %v1899_v46 = vmul.f32 %v5552_v62, %v6580_v36  ;;  %v1840_v1 = vpop.f32.mrb[55].mxu0  ;;  %v5740_v59 = vld [vmem:[%s7527_s6 + $0x1d0] sm:$0xff]  }
 0x414   :  { %v1920_v7 = vadd.f32 %v6585_v24, %v1896_v61  ;;  %v1897_v9 = vmul.f32 %v6580_v36, %v1840_v1  ;;  %5230 = vmatpush3.bf16.msra.mxu0 %v5740_v59 }
 0x415   :  { %v1938_v13 = vmax.f32 %v1922_v0, 0.0  ;;  %v1923_v14 = vadd.f32 %v6585_v24, %v1899_v46 }
 0x416   :  { %v1936_v33 = vmax.f32 %v1920_v7, 0.0  ;;  %v1921_v63 = vadd.f32 %v6585_v24, %v1897_v9  ;;  %v1999_v10 = vld [vmem:[#allocation3 + $0x31] sm:$0xff] }
 0x417   :  { %1954 = vst.msk [vmem:[#allocation3 + $0x71] sm:$0xff] %vm76_vm0, %v1938_v13  ;;  %v1939_v17 = vmax.f32 %v1923_v14, 0.0  ;;  %v1997_v21 = vld [vmem:[#allocation3 + $0x11] sm:$0xff] }
 0x418   :  { %v2092_v19 = vld [vmem:[#allocation3 + $0x10] sm:$0xff]  ;;  %1952 = vst.msk [vmem:[#allocation3 + $0x51] sm:$0xff] %vm76_vm0, %v1936_v33  ;;  %v1937_v35 = vmax.f32 %v1921_v63, 0.0  ;;  %v5555_v28 = vpop.f32.mrb[56].mxu0  ;;  %v2012_v37 = vpack.c.bf16 %v1997_v21, %v1996_v11  ;;  %v2000_v12 = vld [vmem:[#allocation3 + $0x41] sm:$0xff] }
 0x419   :  { %v6626_v29 = vld [vmem:[#allocation3 + $0x12] sm:$0xff]  ;;  %v1980_v22 = vpack.c.bf16 %v2092_v19, %v1964_v15  ;;  %1955 = vst.msk [vmem:[#allocation3 + $0x81] sm:$0xff] %vm76_vm0, %v1939_v17  ;;  %v1902_v5 = vmul.f32 %v5555_v28, %v6580_v36  ;;  %v1853_v8 = vpop.f32.mrb[57].mxu0  ;;  %v2093_v41 = vld [vmem:[#allocation3 + $0x20] sm:$0xff]  ;;  %v2173_v30 = vpack.c.bf16 %v2000_v12, %v1999_v10 }
 0x41a   :  { %v2094_v6 = vld [vmem:[#allocation3 + $0x30] sm:$0xff]  ;;  %v2076_v23 = vpack.c.bf16 %v6626_v29, %v2060_v18  ;;  %v1998_v26 = vld [vmem:[#allocation3 + $0x21] sm:$0xff]  ;;  %1953 = vst.msk [vmem:[#allocation3 + $0x61] sm:$0xff] %vm76_vm0, %v1937_v35  ;;  %v1900_v25 = vmul.f32 %v6580_v36, %v1853_v8  ;;  %v5556_v31 = vpop.f32.mrb[58].mxu0  ;;  %2028 = vrot.lane.b32.xlu1 %v2012_v37, %s5808_s24  ;;  %v2108_v32 = vpack.c.bf16 %v2093_v41, %v2092_v19  ;;  %v5742_v28 = vld [vmem:[%s7527_s6 + $0x218] sm:$0xff]  }
 0x41b   :  { %v6629_v20 = vld [vmem:[#allocation3 + $0x32] sm:$0xff]  ;;  %v6634_v27 = vld [vmem:[#allocation3 + $0x22] sm:$0xff]  ;;  %v6639_v34 = vpack.c.bf16 %v1999_v10, %v1998_v26  ;;  %1988 = vst.msk [vmem:[#allocation4] sm:$0xff] %vm76_vm0, %v1980_v22  ;;  %v1926_v40 = vadd.f32 %v6585_v24, %v1902_v5  ;;  %v1903_v43 = vmul.f32 %v5556_v31, %v6580_v36  ;;  %v1856_v44 = vpop.f32.mrb[59].mxu0  ;;  %v1981_v38 = vpack.c.bf16 %v2094_v6, %v2093_v41 }
 0x41c   :  { %2084 = vst.msk [vmem:[#allocation4 + $0x8] sm:$0xff] %vm76_vm0, %v2076_v23  ;;  %v2095_v45 = vld [vmem:[#allocation3 + $0x40] sm:$0xff]  ;;  %v2077_v48 = vpack.c.bf16 %v6629_v20, %v6634_v27  ;;  %2181 = vst.msk [vmem:[#allocation4 + $0x38] sm:$0xff] %vm76_vm0, %v2173_v30  ;;  %v1924_v51 = vadd.f32 %v6585_v24, %v1900_v25  ;;  %v1901_v42 = vmul.f32 %v6580_v36, %v1856_v44  ;;  %2124 = vrot.lane.b32.xlu0 %v2108_v32, %s5808_s24  ;;  %v2259_v13 = vld [vmem:[#allocation3 + $0x90] sm:$0xff] }
 0x41d   :  { %v2172_v52 = vpack.c.bf16 %v1998_v26, %v1997_v21  ;;  %v1942_v50 = vmax.f32 %v1926_v40, 0.0  ;;  %v1927_v53 = vadd.f32 %v6585_v24, %v1903_v43  ;;  %1989 = vst.msk [vmem:[#allocation4 + $0x28] sm:$0xff] %vm76_vm0, %v1981_v38  ;;  %2276 = vst.msk [vmem:[#allocation4 + $0x18] sm:$0xff] %vm76_vm0, %v1981_v38  ;;  %v2109_v56 = vpack.c.bf16 %v2095_v45, %v2094_v6  ;;  %v6674_v58 = vld [vmem:[#allocation3 + $0x42] sm:$0xff]  ;;  %v5743_v8 = vld [vmem:[%s7527_s6 + $0x1d8] sm:$0xff]  }
 0x41e   :  { %2085 = vst.msk [vmem:[#allocation4 + $0x30] sm:$0xff] %vm76_vm0, %v2077_v48  ;;  %2372 = vst.msk [vmem:[#allocation4 + $0x20] sm:$0xff] %vm76_vm0, %v2077_v48  ;;  %v1940_v54 = vmax.f32 %v1924_v51, 0.0  ;;  %v1925_v55 = vadd.f32 %v6585_v24, %v1901_v42  ;;  %2030 = vrot.lane.b32.xlu1 %v6639_v34, %s5808_s24  ;;  %v6690_v47 = vld [vmem:[#allocation3 + $0x71] sm:$0xff]  ;;  %5231 = vmatprep.subr.bf16.mxu0 %v5742_v28  ;;  %v5744_v25 = vld [vmem:[%s7527_s6 + $0x220] sm:$0xff]  }
 0x41f   :  { %2180 = vst.msk [vmem:[#allocation4 + $0x10] sm:$0xff] %vm76_vm0, %v2172_v52  ;;  %1958 = vst.msk [vmem:[#allocation3 + $0xd1] sm:$0xff] %vm76_vm0, %v1942_v50  ;;  %v1943_v60 = vmax.f32 %v1927_v53, 0.0  ;;  %v6681_v61 = vld [vmem:[#allocation3 + $0x51] sm:$0xff]  ;;  %v1972_v40 = vld [vmem:[#allocation3 + $0xa0] sm:$0xff]  ;;  %5232 = vmatpush3.bf16.msra.mxu0 %v5743_v8 }
 0x420   :  { %v2096_v62 = vld [vmem:[#allocation3 + $0x50] sm:$0xff]  ;;  %1956 = vst.msk [vmem:[#allocation3 + $0xb1] sm:$0xff] %vm76_vm0, %v1940_v54  ;;  %v1941_v46 = vmax.f32 %v1925_v55, 0.0  ;;  %2126 = vrot.lane.b32.xlu0 %v2109_v56, %s5808_s24  ;;  %v5559_v1 = vpop.f32.mrb[60].mxu0  ;;  %v6688_v3 = vpack.c.bf16 %v6681_v61, %v2000_v12  ;;  %v2099_v19 = vld [vmem:[#allocation3 + $0x80] sm:$0xff]  ;;  %5233 = vmatprep.subr.bf16.mxu0 %v5744_v25 }
 0x421   :  { %v6683_v0 = vld [vmem:[#allocation3 + $0x52] sm:$0xff]  ;;  %v1982_v9 = vpack.c.bf16 %v2096_v62, %v2095_v45  ;;  %1959 = vst.msk [vmem:[#allocation3 + $0xe1] sm:$0xff] %vm76_vm0, %v1943_v60  ;;  %v1906_v14 = vmul.f32 %v5559_v1, %v6580_v36  ;;  %v1869_v15 = vpop.f32.mrb[61].mxu0  ;;  %v2097_v18 = vld [vmem:[#allocation3 + $0x60] sm:$0xff]  ;;  %v2271_v44 = vpack.c.bf16 %v2259_v13, %v2099_v19  ;;  %v5747_v13 = vld [vmem:[%s7527_s6 + $0x228] sm:$0xff]  }
 0x422   :  { %v6692_v4 = vld [vmem:[#allocation3 + $0x70] sm:$0xff]  ;;  %v2078_v11 = vpack.c.bf16 %v6683_v0, %v6674_v58  ;;  %v2002_v2 = vld [vmem:[#allocation3 + $0x61] sm:$0xff]  ;;  %1957 = vst.msk [vmem:[#allocation3 + $0xc1] sm:$0xff] %vm76_vm0, %v1941_v46  ;;  %v1904_v63 = vmul.f32 %v6580_v36, %v1869_v15  ;;  %2032 = vrot.lane.b32.xlu1 %v6688_v3, %s5808_s24  ;;  %v5560_v10 = vpop.f32.mrb[62].mxu0  ;;  %v2110_v17 = vpack.c.bf16 %v2097_v18, %v2096_v62 }
 0x423   :  { %v6694_v7 = vld [vmem:[#allocation3 + $0x72] sm:$0xff]  ;;  %v6700_v33 = vld [vmem:[#allocation3 + $0x62] sm:$0xff]  ;;  %v6707_v21 = vpack.c.bf16 %v6690_v47, %v2002_v2  ;;  %1990 = vst.msk [vmem:[#allocation4 + $0x50] sm:$0xff] %vm76_vm0, %v1982_v9  ;;  %2277 = vst.msk [vmem:[#allocation4 + $0x40] sm:$0xff] %vm76_vm0, %v1982_v9  ;;  %v1930_v37 = vadd.f32 %v6585_v24, %v1906_v14  ;;  %v1907_v6 = vmul.f32 %v5560_v10, %v6580_v36  ;;  %v1872_v12 = vpop.f32.mrb[63].mxu0  ;;  %5234 = vmatpush3.bf16.msra.mxu0 %v5745_v49 }
 0x424   :  { %v6709_v35 = vld [vmem:[#allocation3 + $0x81] sm:$0xff]  ;;  %2086 = vst.msk [vmem:[#allocation4 + $0x58] sm:$0xff] %vm76_vm0, %v2078_v11  ;;  %2373 = vst.msk [vmem:[#allocation4 + $0x48] sm:$0xff] %vm76_vm0, %v2078_v11  ;;  %v1983_v23 = vpack.c.bf16 %v6692_v4, %v2097_v18  ;;  %v2079_v5 = vpack.c.bf16 %v6694_v7, %v6700_v33  ;;  %v2355_v41 = vld [vmem:[#allocation3 + $0x92] sm:$0xff]  ;;  %v1928_v26 = vadd.f32 %v6585_v24, %v1904_v63  ;;  %2128 = vrot.lane.b32.xlu0 %v2110_v17, %s5808_s24 }
 0x425   :  { %v6720_v22 = vld [vmem:[#allocation3 + $0x82] sm:$0xff]  ;;  %v1905_v30 = vmul.f32 %v6580_v36, %v1872_v12  ;;  %v2174_v31 = vpack.c.bf16 %v2002_v2, %v6681_v61  ;;  %v1946_v32 = vmax.f32 %v1930_v37, 0.0  ;;  %v1931_v57 = vadd.f32 %v6585_v24, %v1907_v6  ;;  %2279 = vst.msk [vmem:[#allocation4 + $0x90] sm:$0xff] %vm76_vm0, %v2271_v44  ;;  %5235 = vmatprep.subr.bf16.mxu0 %v5747_v13  ;;  %v5749_v10 = vld [vmem:[%s7527_s6 + $0x230] sm:$0xff]  }
 0x426   :  { %1991 = vst.msk [vmem:[#allocation4 + $0x78] sm:$0xff] %vm76_vm0, %v1983_v23  ;;  %2087 = vst.msk [vmem:[#allocation4 + $0x80] sm:$0xff] %vm76_vm0, %v2079_v5  ;;  %v2068_v43 = vld [vmem:[#allocation3 + $0xa2] sm:$0xff]  ;;  %v2175_v36 = vpack.c.bf16 %v6709_v35, %v6690_v47  ;;  %v1944_v45 = vmax.f32 %v1928_v26, 0.0  ;;  %2034 = vrot.lane.b32.xlu1 %v6707_v21, %s5808_s24  ;;  %v2111_v48 = vpack.c.bf16 %v2099_v19, %v6692_v4  ;;  %v2007_v55 = vld [vmem:[#allocation3 + $0xd1] sm:$0xff] }
 0x427   :  { %2278 = vst.msk [vmem:[#allocation4 + $0x68] sm:$0xff] %vm76_vm0, %v1983_v23  ;;  %2374 = vst.msk [vmem:[#allocation4 + $0x70] sm:$0xff] %vm76_vm0, %v2079_v5  ;;  %v1929_v38 = vadd.f32 %v6585_v24, %v1905_v30  ;;  %v2367_v51 = vpack.c.bf16 %v2355_v41, %v6720_v22  ;;  %v1947_v42 = vmax.f32 %v1931_v57, 0.0  ;;  %v2005_v52 = vld [vmem:[#allocation3 + $0xb1] sm:$0xff]  ;;  %v5748_v18 = vld [vmem:[%s7527_s6 + $0x1e8] sm:$0xff]  }
 0x428   :  { %2182 = vst.msk [vmem:[#allocation4 + $0x60] sm:$0xff] %vm76_vm0, %v2174_v31  ;;  %1962 = vst.msk [vmem:[#allocation3 + $0x111] sm:$0xff] %vm76_vm0, %v1946_v32  ;;  %v2100_v50 = vld [vmem:[#allocation3 + $0xb0] sm:$0xff]  ;;  %2130 = vrot.lane.b32.xlu0 %v2111_v48, %s5808_s24  ;;  %v2016_v54 = vpack.c.bf16 %v2005_v52, %v2004_v39  ;;  %v2008_v59 = vld [vmem:[#allocation3 + $0xe1] sm:$0xff]  ;;  %5236 = vmatpush3.bf16.msra.mxu0 %v5748_v18 }
 0x429   :  { %v6752_v53 = vld [vmem:[#allocation3 + $0xb2] sm:$0xff]  ;;  %2183 = vst.msk [vmem:[#allocation4 + $0x88] sm:$0xff] %vm76_vm0, %v2175_v36  ;;  %1960 = vst.msk [vmem:[#allocation3 + $0xf1] sm:$0xff] %vm76_vm0, %v1944_v45  ;;  %v1945_v24 = vmax.f32 %v1929_v38, 0.0  ;;  %v1984_v60 = vpack.c.bf16 %v2100_v50, %v1972_v40  ;;  %v2101_v62 = vld [vmem:[#allocation3 + $0xc0] sm:$0xff]  ;;  %v2177_v47 = vpack.c.bf16 %v2008_v59, %v2007_v55  ;;  %5237 = vmatprep.subr.bf16.mxu0 %v5749_v10 }
 0x42a   :  { %v2102_v56 = vld [vmem:[#allocation3 + $0xd0] sm:$0xff]  ;;  %v2080_v61 = vpack.c.bf16 %v6752_v53, %v2068_v43  ;;  %2375 = vst.msk [vmem:[#allocation4 + $0x98] sm:$0xff] %vm76_vm0, %v2367_v51  ;;  %1963 = vst.msk [vmem:[#allocation3 + $0x121] sm:$0xff] %vm76_vm0, %v1947_v42  ;;  %v2006_v46 = vld [vmem:[#allocation3 + $0xc1] sm:$0xff]  ;;  %2036 = vrot.lane.b32.xlu1 %v2016_v54, %s5808_s24  ;;  %v2112_v4 = vpack.c.bf16 %v2101_v62, %v2100_v50  ;;  %v2205_v54 = vpack.c.bf16 %v6674_v58, %v6629_v20 }
 0x42b   :  { %v6761_v1 = vld [vmem:[#allocation3 + $0xc2] sm:$0xff]  ;;  %1961 = vst.msk [vmem:[#allocation3 + $0x101] sm:$0xff] %vm76_vm0, %v1945_v24  ;;  %v6765_v9 = vld [vmem:[#allocation3 + $0xd2] sm:$0xff]  ;;  %1992 = vst.msk [vmem:[#allocation4 + $0xa0] sm:$0xff] %vm76_vm0, %v1984_v60  ;;  %v1985_v11 = vpack.c.bf16 %v2102_v56, %v2101_v62  ;;  %v2176_v2 = vpack.c.bf16 %v2006_v46, %v2005_v52  ;;  %v6779_v63 = vpack.c.bf16 %v2007_v55, %v2006_v46 }
 0x42c   :  { %2088 = vst.msk [vmem:[#allocation4 + $0xa8] sm:$0xff] %vm76_vm0, %v2080_v61  ;;  %v2103_v14 = vld [vmem:[#allocation3 + $0xe0] sm:$0xff]  ;;  %v2081_v15 = vpack.c.bf16 %v6765_v9, %v6761_v1  ;;  %2185 = vst.msk [vmem:[#allocation4 + $0xd8] sm:$0xff] %vm76_vm0, %v2177_v47  ;;  %2132 = vrot.lane.b32.xlu0 %v2112_v4, %s5808_s24  ;;  %v5750_v37 = vld [vmem:[%s7527_s6 + $0x1f0] sm:$0xff]   ;;  %v2204_v24 = vpack.c.bf16 %v6634_v27, %v6626_v29  ;;  %v2206_v55 = vpack.c.bf16 %v6700_v33, %v6683_v0 }
 0x42d   :  { %1993 = vst.msk [vmem:[#allocation4 + $0xc8] sm:$0xff] %vm76_vm0, %v1985_v11  ;;  %2280 = vst.msk [vmem:[#allocation4 + $0xb8] sm:$0xff] %vm76_vm0, %v1985_v11  ;;  %v2113_v17 = vpack.c.bf16 %v2103_v14, %v2102_v56  ;;  %v6791_v28 = vld [vmem:[#allocation3 + $0xe2] sm:$0xff]  ;;  %v2267_v6 = vld [vmem:[#allocation3 + $0x130] sm:$0xff]  ;;  %5238 = vmatpush3.bf16.msra.mxu0 %v5750_v37  ;;  %v2207_v56 = vpack.c.bf16 %v6720_v22, %v6694_v7  ;;  %v2208_v58 = vpack.c.bf16 %v6761_v1, %v6752_v53 }
 0x42e   :  { %2089 = vst.msk [vmem:[#allocation4 + $0xd0] sm:$0xff] %vm76_vm0, %v2081_v15  ;;  %2184 = vst.msk [vmem:[#allocation4 + $0xb0] sm:$0xff] %vm76_vm0, %v2176_v2  ;;  %2038 = vrot.lane.b32.xlu1 %v6779_v63, %s5808_s24  ;;  %v2363_v12 = vld [vmem:[#allocation3 + $0x132] sm:$0xff]  ;;  %v2209_v0 = vpack.c.bf16 %v6791_v28, %v6765_v9  ;;  %v5741_v46 = vld [vmem:[%s7527_s6 + $0x248] sm:$0xff]  }
 0x42f   :  { %2376 = vst.msk [vmem:[#allocation4 + $0xc0] sm:$0xff] %vm76_vm0, %v2081_v15  ;;  %v2011_v19 = vld [vmem:[#allocation3 + $0x111] sm:$0xff]  ;;  %v5754_v10 = vld [vmem:[%s7527_s6 + $0x260] sm:$0xff]  }
 0x430   :  { %v2009_v23 = vld [vmem:[#allocation3 + $0xf1] sm:$0xff]  ;;  %2134 = vrot.lane.b32.xlu0 %v2113_v17, %s5808_s24 }
 0x431   :  { %v2104_v5 = vld [vmem:[#allocation3 + $0xf0] sm:$0xff]  ;;  %v2018_v26 = vpack.c.bf16 %v2009_v23, %v2008_v59  ;;  %v2107_v30 = vld [vmem:[#allocation3 + $0x120] sm:$0xff]  ;;  %v5752_v48 = vld [vmem:[%s7527_s6 + $0x238] sm:$0xff]  }
 0x432   :  { %v2106_v8 = vld [vmem:[#allocation3 + $0x110] sm:$0xff]  ;;  %v6799_v25 = vld [vmem:[#allocation3 + $0x122] sm:$0xff]  ;;  %v1986_v32 = vpack.c.bf16 %v2104_v5, %v2103_v14  ;;  %v5753_v51 = vld [vmem:[%s7527_s6 + $0x1f8] sm:$0xff]   ;;  %v2275_v52 = vpack.c.bf16 %v2267_v6, %v2107_v30  ;;  %5239 = vmatprep.subr.bf16.mxu0 %v5752_v48 }
 0x433   :  { %v6796_v41 = vld [vmem:[#allocation3 + $0xf2] sm:$0xff]  ;;  %v6801_v31 = vld [vmem:[#allocation3 + $0x121] sm:$0xff]  ;;  %2040 = vrot.lane.b32.xlu1 %v2018_v26, %s5808_s24  ;;  %v2371_v50 = vpack.c.bf16 %v2363_v12, %v6799_v25  ;;  %5240 = vmatpush3.bf16.msra.mxu0 %v5753_v51  ;;  %v2115_v27 = vpack.c.bf16 %v2107_v30, %v2106_v8 }
 0x434   :  { %v2082_v57 = vpack.c.bf16 %v6796_v41, %v6791_v28  ;;  %v2105_v39 = vld [vmem:[#allocation3 + $0x100] sm:$0xff]  ;;  %v2179_v36 = vpack.c.bf16 %v6801_v31, %v2011_v19  ;;  %v2202_v45 = vld [vmem:[#allocation3 + $0x112] sm:$0xff]  ;;  %1994 = vst.msk [vmem:[#allocation4 + $0xf0] sm:$0xff] %vm76_vm0, %v1986_v32  ;;  %2281 = vst.msk [vmem:[#allocation4 + $0xe0] sm:$0xff] %vm76_vm0, %v1986_v32 }
 0x435   :  { %v2010_v40 = vld [vmem:[#allocation3 + $0x101] sm:$0xff]  ;;  %v2114_v44 = vpack.c.bf16 %v2105_v39, %v2104_v5  ;;  %v1987_v38 = vpack.c.bf16 %v2106_v8, %v2105_v39  ;;  %2283 = vst.msk [vmem:[#allocation4 + $0x130] sm:$0xff] %vm76_vm0, %v2275_v52  ;;  %2379 = vst.msk [vmem:[#allocation4 + $0x138] sm:$0xff] %vm76_vm0, %v2371_v50  ;;  %v2299_v7 = vld [vmem:[#allocation3 + $0x131] sm:$0xff]  ;;  %v2211_v33 = vpack.c.bf16 %v6799_v25, %v2202_v45 }
 0x436   :  { %v2201_v43 = vld [vmem:[#allocation3 + $0x102] sm:$0xff]  ;;  %2090 = vst.msk [vmem:[#allocation4 + $0xf8] sm:$0xff] %vm76_vm0, %v2082_v57  ;;  %2377 = vst.msk [vmem:[#allocation4 + $0xe8] sm:$0xff] %vm76_vm0, %v2082_v57  ;;  %v2178_v42 = vpack.c.bf16 %v2010_v40, %v2009_v23  ;;  %v2019_v29 = vpack.c.bf16 %v2011_v19, %v2010_v40  ;;  %v5746_v11 = vld [vmem:[%s7527_s6 + $0x250] sm:$0xff]  }
 0x437   :  { %v2083_v49 = vpack.c.bf16 %v2202_v45, %v2201_v43  ;;  %2187 = vst.msk [vmem:[#allocation4 + $0x128] sm:$0xff] %vm76_vm0, %v2179_v36  ;;  %2136 = vrot.lane.b32.xlu0 %v2114_v44, %s5808_s24  ;;  %1995 = vst.msk [vmem:[#allocation4 + $0x118] sm:$0xff] %vm76_vm0, %v1987_v38  ;;  %2220 = vrot.lane.b32.xlu1 %v2204_v24, %s5808_s24  ;;  %v5755_v28 = vld [vmem:[%s7527_s6 + $0x268] sm:$0xff]   ;;  %v5756_v5 = vld [vmem:[%s7527_s6 + $0x270] sm:$0xff]  }
 0x438   :  { %2282 = vst.msk [vmem:[#allocation4 + $0x108] sm:$0xff] %vm76_vm0, %v1987_v38  ;;  %2186 = vst.msk [vmem:[#allocation4 + $0x100] sm:$0xff] %vm76_vm0, %v2178_v42 }
 0x439   :  { %2091 = vst.msk [vmem:[#allocation4 + $0x120] sm:$0xff] %vm76_vm0, %v2083_v49  ;;  %2378 = vst.msk [vmem:[#allocation4 + $0x110] sm:$0xff] %vm76_vm0, %v2083_v49 }
 0x43b   :  { %2316 = vrot.lane.b32.xlu0 %v6639_v34, %s5808_s24  ;;  %2042 = vrot.lane.b32.xlu1 %v2019_v29, %s5808_s24  ;;  %v2291_v34 = vld [vmem:[#allocation3 + $0x91] sm:$0xff] }
 0x43c   :  { %v2303_v20 = vpack.c.bf16 %v2291_v34, %v6709_v35 }
 0x43f   :  { %2138 = vrot.lane.b32.xlu0 %v2115_v27, %s5808_s24  ;;  %2222 = vrot.lane.b32.xlu1 %v2205_v54, %s5808_s24 }
 0x443   :  { %2318 = vrot.lane.b32.xlu0 %v6688_v3, %s5808_s24  ;;  %2224 = vrot.lane.b32.xlu1 %v2206_v55, %s5808_s24  ;;  %v2210_v3 = vpack.c.bf16 %v2201_v43, %v6796_v41 }
 0x447   :  { %2320 = vrot.lane.b32.xlu0 %v6707_v21, %s5808_s24  ;;  %2226 = vrot.lane.b32.xlu1 %v2207_v56, %s5808_s24  ;;  %v2307_v21 = vpack.c.bf16 %v2299_v7, %v6801_v31 }
 0x44b   :  { %2322 = vrot.lane.b32.xlu0 %v2303_v20, %s5808_s24  ;;  %2228 = vrot.lane.b32.xlu1 %v2208_v58, %s5808_s24 }
 0x44f   :  { %2324 = vrot.lane.b32.xlu0 %v6779_v63, %s5808_s24  ;;  %2230 = vrot.lane.b32.xlu1 %v2209_v0, %s5808_s24 }
 0x453   :  { %2326 = vrot.lane.b32.xlu0 %v2018_v26, %s5808_s24  ;;  %2232 = vrot.lane.b32.xlu1 %v2210_v3, %s5808_s24  ;;  %v5757_v26 = vld [vmem:[%s7527_s6 + $0x278] sm:$0xff]  }
 0x457   :  { %2328 = vrot.lane.b32.xlu0 %v2019_v29, %s5808_s24  ;;  %2234 = vrot.lane.b32.xlu1 %v2211_v33, %s5808_s24 }
 0x45b   :  { %2330 = vrot.lane.b32.xlu0 %v2307_v21, %s5808_s24 }
 0x48c   :  { %v2029_v35 = vpop.permute.xlu1 %2028 }
 0x48d   :  { %2052 = vst.msk [vmem:[#allocation4] sm:$0xff] %vm572_vm3, %v2029_v35  ;;  %v2384_v35 = vld [vmem:[#allocation4 + $0x20] sm:$0xff] }
 0x48e   :  { %v2125_v22 = vpop.permute.xlu0 %2124 }
 0x48f   :  { %2148 = vst.msk [vmem:[#allocation4 + $0x8] sm:$0xff] %vm572_vm3, %v2125_v22 }
 0x490   :  { %v2031_v53 = vpop.permute.xlu1 %2030 }
 0x491   :  { %2053 = vst.msk [vmem:[#allocation4 + $0x28] sm:$0xff] %vm572_vm3, %v2031_v53 }
 0x492   :  { %v2127_v59 = vpop.permute.xlu0 %2126 }
 0x493   :  { %2149 = vst.msk [vmem:[#allocation4 + $0x30] sm:$0xff] %vm572_vm3, %v2127_v59  ;;  %v2389_v59 = vld [vmem:[#allocation4 + $0x48] sm:$0xff] }
 0x494   :  { %v2033_v60 = vpop.permute.xlu1 %2032  ;;  %v2380_v1 = vld [vmem:[#allocation4] sm:$0xff] }
 0x495   :  { %2054 = vst.msk [vmem:[#allocation4 + $0x50] sm:$0xff] %vm572_vm3, %v2033_v60  ;;  %v2394_v60 = vld [vmem:[#allocation4 + $0x70] sm:$0xff] }
 0x496   :  { %v2129_v61 = vpop.permute.xlu0 %2128  ;;  %v2381_v62 = vld [vmem:[#allocation4 + $0x8] sm:$0xff] }
 0x497   :  { %2150 = vst.msk [vmem:[#allocation4 + $0x58] sm:$0xff] %vm572_vm3, %v2129_v61  ;;  %2773 = vmatprep.mubr.bf16.mxu1 %v2381_v62 }
 0x498   :  { %v2035_v47 = vpop.permute.xlu1 %2034  ;;  %2774 = vmatmul.mubr.bf16.vlgmr.msra.gmra.mrb[48].mxu1 %v2380_v1  ;;  %v2385_v15 = vld [vmem:[#allocation4 + $0x28] sm:$0xff]  ;;  %v2404_v1 = vld [vmem:[#allocation4 + $0xc0] sm:$0xff] }
 0x499   :  { %2055 = vst.msk [vmem:[#allocation4 + $0x78] sm:$0xff] %vm572_vm3, %v2035_v47  ;;  %5562 = vmatpush3.bf16.msra.mxu1 %v6646_v16  ;;  %v5751_v16 = vld [vmem:[%s7527_s6 + $0x258] sm:$0xff]  }
 0x49a   :  { %v2131_v4 = vpop.permute.xlu0 %2130  ;;  %v2386_v9 = vld [vmem:[#allocation4 + $0x30] sm:$0xff]  ;;  %5563 = vmatprep.subr.bf16.mxu1 %v5741_v46 }
 0x49b   :  { %2151 = vst.msk [vmem:[#allocation4 + $0x80] sm:$0xff] %vm572_vm3, %v2131_v4  ;;  %2781 = vmatprep.mubr.bf16.mxu1 %v2386_v9  ;;  %v2409_v9 = vld [vmem:[#allocation4 + $0xe8] sm:$0xff] }
 0x49c   :  { %v2037_v13 = vpop.permute.xlu1 %2036  ;;  %v2390_v37 = vld [vmem:[#allocation4 + $0x50] sm:$0xff] }
 0x49d   :  { %2056 = vst.msk [vmem:[#allocation4 + $0xa0] sm:$0xff] %vm572_vm3, %v2037_v13  ;;  %5564 = vmatpush3.bf16.msra.mxu1 %v5741_v46  ;;  %v2399_v46 = vld [vmem:[#allocation4 + $0x98] sm:$0xff] }
 0x49e   :  { %v2133_v14 = vpop.permute.xlu0 %2132  ;;  %5565 = vmatprep.subr.bf16.mxu1 %v5746_v11  ;;  %v2391_v2 = vld [vmem:[#allocation4 + $0x58] sm:$0xff] }
 0x49f   :  { %2152 = vst.msk [vmem:[#allocation4 + $0xa8] sm:$0xff] %vm572_vm3, %v2133_v14  ;;  %v2419_v14 = vld [vmem:[#allocation4 + $0x138] sm:$0xff] }
 0x4a0   :  { %v2039_v18 = vpop.permute.xlu1 %2038  ;;  %2782 = vmatmul.mubr.bf16.gmra.mrb[52].mxu1 %v2385_v15  ;;  %v2395_v30 = vld [vmem:[#allocation4 + $0x78] sm:$0xff]  ;;  %v5759_v15 = vld [vmem:[%s7523_s3 + $0x88] sm:$0xff]  }
 0x4a1   :  { %2057 = vst.msk [vmem:[#allocation4 + $0xc8] sm:$0xff] %vm572_vm3, %v2039_v18  ;;  %2789 = vmatprep.mubr.bf16.mxu1 %v2391_v2  ;;  %5566 = vmatpush3.bf16.msra.mxu1 %v5746_v11  ;;  %v2414_v11 = vld [vmem:[#allocation4 + $0x110] sm:$0xff]  ;;  %v5761_v2 = vld [vmem:[%s7523_s3 + $0x98] sm:$0xff]  }
 0x4a2   :  { %v2135_v63 = vpop.permute.xlu0 %2134  ;;  %5567 = vmatprep.subr.bf16.mxu1 %v5751_v16  ;;  %v2396_v12 = vld [vmem:[#allocation4 + $0x80] sm:$0xff]  ;;  %v5760_v18 = vld [vmem:[%s7523_s3 + $0x90] sm:$0xff]  }
 0x4a3   :  { %2153 = vst.msk [vmem:[#allocation4 + $0xd0] sm:$0xff] %vm572_vm3, %v2135_v63  ;;  %v5762_v63 = vld [vmem:[%s7523_s3 + $0xa0] sm:$0xff]  }
 0x4a4   :  { %v2400_v36 = vld [vmem:[#allocation4 + $0xa0] sm:$0xff] }
 0x4a5   :  { %v2041_v17 = vpop.permute.xlu1 %2040  ;;  %5568 = vmatpush3.bf16.msra.mxu1 %v5751_v16  ;;  %v5758_v16 = vld [vmem:[%s7523_s3 + $0x80] sm:$0xff]  }
 0x4a6   :  { %2058 = vst.msk [vmem:[#allocation4 + $0xf0] sm:$0xff] %vm572_vm3, %v2041_v17  ;;  %5569 = vmatprep.subr.bf16.mxu1 %v5754_v10  ;;  %v2401_v31 = vld [vmem:[#allocation4 + $0xa8] sm:$0xff]  ;;  %5593 = vmatprep.subr.bf16.mxu0 %v5758_v16 }
 0x4a8   :  { %2790 = vmatmul.mubr.bf16.gmra.mrb[56].mxu1 %v2390_v37  ;;  %v2405_v50 = vld [vmem:[#allocation4 + $0xc8] sm:$0xff] }
 0x4a9   :  { %v2137_v19 = vpop.permute.xlu0 %2136  ;;  %v2221_v6 = vpop.permute.xlu1 %2220  ;;  %2797 = vmatprep.mubr.bf16.mxu1 %v2396_v12  ;;  %5570 = vmatpush3.bf16.msra.mxu1 %v5754_v10  ;;  %v5763_v10 = vld [vmem:[%s7523_s3 + $0xa8] sm:$0xff]  }
 0x4aa   :  { %2154 = vst.msk [vmem:[#allocation4 + $0xf8] sm:$0xff] %vm572_vm3, %v2137_v19  ;;  %2244 = vst.msk [vmem:[#allocation4 + $0x10] sm:$0xff] %vm572_vm3, %v2221_v6  ;;  %5571 = vmatprep.subr.bf16.mxu1 %v5755_v28  ;;  %v2406_v45 = vld [vmem:[#allocation4 + $0xd0] sm:$0xff] }
 0x4ad   :  { %v2317_v23 = vpop.permute.xlu0 %2316  ;;  %v2043_v8 = vpop.permute.xlu1 %2042  ;;  %5572 = vmatpush3.bf16.msra.mxu1 %v5755_v28  ;;  %v2410_v20 = vld [vmem:[#allocation4 + $0xf0] sm:$0xff] }
 0x4ae   :  { %2340 = vst.msk [vmem:[#allocation4 + $0x18] sm:$0xff] %vm572_vm3, %v2317_v23  ;;  %2059 = vst.msk [vmem:[#allocation4 + $0x118] sm:$0xff] %vm572_vm3, %v2043_v8  ;;  %5573 = vmatprep.subr.bf16.mxu1 %v5756_v5 }
 0x4b0   :  { %2798 = vmatmul.mubr.bf16.gmra.mrb[60].mxu1 %v2395_v30 }
 0x4b1   :  { %v2139_v41 = vpop.permute.xlu0 %2138  ;;  %v2223_v25 = vpop.permute.xlu1 %2222  ;;  %2805 = vmatprep.mubr.bf16.mxu1 %v2401_v31  ;;  %5574 = vmatpush3.bf16.msra.mxu1 %v5756_v5  ;;  %v2382_v39 = vld [vmem:[#allocation4 + $0x10] sm:$0xff]  ;;  %v2411_v29 = vld [vmem:[#allocation4 + $0xf8] sm:$0xff] }
 0x4b2   :  { %2155 = vst.msk [vmem:[#allocation4 + $0x120] sm:$0xff] %vm572_vm3, %v2139_v41  ;;  %2245 = vst.msk [vmem:[#allocation4 + $0x38] sm:$0xff] %vm572_vm3, %v2223_v25  ;;  %5575 = vmatprep.subr.bf16.mxu1 %v5757_v26 }
 0x4b5   :  { %v2319_v32 = vpop.permute.xlu0 %2318  ;;  %v2383_v57 = vld [vmem:[#allocation4 + $0x18] sm:$0xff]  ;;  %v2225_v40 = vpop.permute.xlu1 %2224  ;;  %5576 = vmatpush3.bf16.msra.mxu1 %v5757_v26 }
 0x4b6   :  { %2341 = vst.msk [vmem:[#allocation4 + $0x40] sm:$0xff] %vm572_vm3, %v2319_v32  ;;  %2870 = vmatprep.mubr.bf16.mxu0 %v2383_v57  ;;  %2246 = vst.msk [vmem:[#allocation4 + $0x60] sm:$0xff] %vm572_vm3, %v2225_v40  ;;  %v2415_v21 = vld [vmem:[#allocation4 + $0x118] sm:$0xff] }
 0x4b7   :  { %2871 = vmatmul.mubr.bf16.vlgmr.msra.gmra.mrb[64].mxu0 %v2382_v39 }
 0x4b8   :  { %2806 = vmatmul.mubr.bf16.gmra.mrb[64].mxu1 %v2400_v36  ;;  %5594 = vmatpush3.bf16.msra.mxu0 %v5758_v16 }
 0x4b9   :  { %v2321_v43 = vpop.permute.xlu0 %2320  ;;  %v2227_v44 = vpop.permute.xlu1 %2226  ;;  %2813 = vmatprep.mubr.bf16.mxu1 %v2406_v45  ;;  %v2387_v49 = vld [vmem:[#allocation4 + $0x38] sm:$0xff]  ;;  %v2416_v0 = vld [vmem:[#allocation4 + $0x120] sm:$0xff]  ;;  %5595 = vmatprep.subr.bf16.mxu0 %v5759_v15 }
 0x4ba   :  { %2342 = vst.msk [vmem:[#allocation4 + $0x68] sm:$0xff] %vm572_vm3, %v2321_v43  ;;  %2247 = vst.msk [vmem:[#allocation4 + $0x88] sm:$0xff] %vm572_vm3, %v2227_v44 }
 0x4bc   :  { %5596 = vmatpush3.bf16.msra.mxu0 %v5759_v15 }
 0x4bd   :  { %v2323_v38 = vpop.permute.xlu0 %2322  ;;  %v2388_v48 = vld [vmem:[#allocation4 + $0x40] sm:$0xff]  ;;  %v2229_v51 = vpop.permute.xlu1 %2228  ;;  %5597 = vmatprep.subr.bf16.mxu0 %v5760_v18 }
 0x4be   :  { %2343 = vst.msk [vmem:[#allocation4 + $0x90] sm:$0xff] %vm572_vm3, %v2323_v38  ;;  %2878 = vmatprep.mubr.bf16.mxu0 %v2388_v48  ;;  %2248 = vst.msk [vmem:[#allocation4 + $0xb0] sm:$0xff] %vm572_vm3, %v2229_v51  ;;  %v2392_v54 = vld [vmem:[#allocation4 + $0x60] sm:$0xff] }
 0x4bf   :  { %2879 = vmatmul.mubr.bf16.gmra.mrb[68].mxu0 %v2387_v49 }
 0x4c0   :  { %2814 = vmatmul.mubr.bf16.gmra.mrb[68].mxu1 %v2405_v50  ;;  %5598 = vmatpush3.bf16.msra.mxu0 %v5760_v18 }
 0x4c1   :  { %v2325_v42 = vpop.permute.xlu0 %2324  ;;  %v2393_v52 = vld [vmem:[#allocation4 + $0x68] sm:$0xff]  ;;  %v2231_v24 = vpop.permute.xlu1 %2230  ;;  %2821 = vmatprep.mubr.bf16.mxu1 %v2411_v29  ;;  %5599 = vmatprep.subr.bf16.mxu0 %v5761_v2 }
 0x4c2   :  { %2344 = vst.msk [vmem:[#allocation4 + $0xb8] sm:$0xff] %vm572_vm3, %v2325_v42  ;;  %2886 = vmatprep.mubr.bf16.mxu0 %v2393_v52  ;;  %2249 = vst.msk [vmem:[#allocation4 + $0xd8] sm:$0xff] %vm572_vm3, %v2231_v24  ;;  %v2397_v7 = vld [vmem:[#allocation4 + $0x88] sm:$0xff] }
 0x4c4   :  { %5600 = vmatpush3.bf16.msra.mxu0 %v5761_v2 }
 0x4c5   :  { %v2327_v27 = vpop.permute.xlu0 %2326  ;;  %v2233_v55 = vpop.permute.xlu1 %2232  ;;  %v2398_v34 = vld [vmem:[#allocation4 + $0x90] sm:$0xff]  ;;  %5601 = vmatprep.subr.bf16.mxu0 %v5762_v63 }
 0x4c6   :  { %2345 = vst.msk [vmem:[#allocation4 + $0xe0] sm:$0xff] %vm572_vm3, %v2327_v27  ;;  %2250 = vst.msk [vmem:[#allocation4 + $0x100] sm:$0xff] %vm572_vm3, %v2233_v55  ;;  %v2402_v22 = vld [vmem:[#allocation4 + $0xb0] sm:$0xff] }
 0x4c7   :  { %2887 = vmatmul.mubr.bf16.gmra.mrb[72].mxu0 %v2392_v54 }
 0x4c8   :  { %2894 = vmatprep.mubr.bf16.mxu0 %v2398_v34  ;;  %2822 = vmatmul.mubr.bf16.gmra.mrb[72].mxu1 %v2410_v20 }
 0x4c9   :  { %v2329_v56 = vpop.permute.xlu0 %2328  ;;  %v2235_v58 = vpop.permute.xlu1 %2234  ;;  %2829 = vmatprep.mubr.bf16.mxu1 %v2416_v0  ;;  %v2403_v33 = vld [vmem:[#allocation4 + $0xb8] sm:$0xff]  ;;  %5602 = vmatpush3.bf16.msra.mxu0 %v5762_v63 }
 0x4ca   :  { %2346 = vst.msk [vmem:[#allocation4 + $0x108] sm:$0xff] %vm572_vm3, %v2329_v56  ;;  %2251 = vst.msk [vmem:[#allocation4 + $0x128] sm:$0xff] %vm572_vm3, %v2235_v58  ;;  %v2407_v61 = vld [vmem:[#allocation4 + $0xd8] sm:$0xff]  ;;  %5603 = vmatprep.subr.bf16.mxu0 %v5763_v10 }
 0x4cd   :  { %v2331_v3 = vpop.permute.xlu0 %2330  ;;  %v2408_v53 = vld [vmem:[#allocation4 + $0xe0] sm:$0xff]  ;;  %5604 = vmatpush3.bf16.msra.mxu0 %v5763_v10 }
 0x4ce   :  { %2347 = vst.msk [vmem:[#allocation4 + $0x130] sm:$0xff] %vm572_vm3, %v2331_v3  ;;  %v2412_v47 = vld [vmem:[#allocation4 + $0x100] sm:$0xff] }
 0x4cf   :  { %2895 = vmatmul.mubr.bf16.gmra.mrb[76].mxu0 %v2397_v7 }
 0x4d0   :  { %2902 = vmatprep.mubr.bf16.mxu0 %v2403_v33  ;;  %2830 = vmatmul.mubr.bf16.gmra.mrb[76].mxu1 %v2415_v21 }
 0x4d1   :  { %5577 = vmatprep.mubr.bf16.mxu1 %v2384_v35  ;;  %v2413_v62 = vld [vmem:[#allocation4 + $0x108] sm:$0xff] }
 0x4d2   :  { %v2417_v13 = vld [vmem:[#allocation4 + $0x128] sm:$0xff] }
 0x4d5   :  { %v2418_v4 = vld [vmem:[#allocation4 + $0x130] sm:$0xff] }
 0x4d7   :  { %2903 = vmatmul.mubr.bf16.gmra.mrb[80].mxu0 %v2402_v22 }
 0x4d8   :  { %2910 = vmatprep.mubr.bf16.mxu0 %v2408_v53  ;;  %5578 = vmatmul.mubr.bf16.vlgmr.msra.gmra.mrb[80].mxu1 %v2389_v59 }
 0x4d9   :  { %5581 = vmatprep.mubr.bf16.mxu1 %v2394_v60 }
 0x4df   :  { %2911 = vmatmul.mubr.bf16.gmra.mrb[84].mxu0 %v2407_v61 }
 0x4e0   :  { %2918 = vmatprep.mubr.bf16.mxu0 %v2413_v62  ;;  %5582 = vmatmul.mubr.bf16.gmra.mrb[84].mxu1 %v2399_v46 }
 0x4e1   :  { %5585 = vmatprep.mubr.bf16.mxu1 %v2404_v1 }
 0x4e7   :  { %2919 = vmatmul.mubr.bf16.gmra.mrb[88].mxu0 %v2412_v47 }
 0x4e8   :  { %2926 = vmatprep.mubr.bf16.mxu0 %v2418_v4  ;;  %5586 = vmatmul.mubr.bf16.gmra.mrb[88].mxu1 %v2409_v9 }
 0x4e9   :  { %5589 = vmatprep.mubr.bf16.mxu1 %v2414_v11 }
 0x4ef   :  { %2927 = vmatmul.mubr.bf16.gmra.mrb[92].mxu0 %v2417_v13 }
 0x4f0   :  { %5590 = vmatmul.mubr.bf16.gmra.mrb[92].mxu1 %v2419_v14 }
 0x56b   :  { %v5177_v17 = vpop.f32.mrb[48].mxu1 }
 0x56c   :  { %v5178_v19 = vpop.f32.mrb[49].mxu1 }
 0x56d   :  { %v5179_v28 = vadd.f32 %v5178_v19, %v5177_v17  ;;  %v5180_v37 = vpop.f32.mrb[50].mxu1 }
 0x56e   :  { %v5181_v6 = vpop.f32.mrb[51].mxu1 }
 0x56f   :  { %v5182_v12 = vadd.f32 %v5181_v6, %v5180_v37 }
 0x573   :  { %v5183_v23 = vpop.f32.mrb[52].mxu1 }
 0x574   :  { %v5184_v5 = vpop.f32.mrb[53].mxu1 }
 0x575   :  { %v5185_v8 = vadd.f32 %v5184_v5, %v5183_v23  ;;  %v5186_v41 = vpop.f32.mrb[54].mxu1 }
 0x576   :  { %v5187_v26 = vpop.f32.mrb[55].mxu1 }
 0x577   :  { %v5188_v30 = vadd.f32 %v5187_v26, %v5186_v41 }
 0x57b   :  { %v5189_v25 = vpop.f32.mrb[56].mxu1 }
 0x57c   :  { %v5190_v31 = vpop.f32.mrb[57].mxu1 }
 0x57d   :  { %v5191_v32 = vadd.f32 %v5190_v31, %v5189_v25  ;;  %v5192_v57 = vpop.f32.mrb[58].mxu1 }
 0x57e   :  { %v5193_v39 = vpop.f32.mrb[59].mxu1 }
 0x57f   :  { %v5194_v40 = vadd.f32 %v5193_v39, %v5192_v57  ;;  %v5764_v57 = vld [vmem:[%s7523_s3 + $0xb0] sm:$0xff]  }
 0x580   :  { %5605 = vmatprep.subr.bf16.mxu0 %v5764_v57 }
 0x581   :  { %5606 = vmatpush3.bf16.msra.mxu0 %v5764_v57 }
 0x583   :  { %v5195_v43 = vpop.f32.mrb[60].mxu1 }
 0x584   :  { %v5196_v36 = vpop.f32.mrb[61].mxu1 }
 0x585   :  { %v5197_v44 = vadd.f32 %v5196_v36, %v5195_v43  ;;  %v5198_v45 = vpop.f32.mrb[62].mxu1 }
 0x586   :  { %v5199_v38 = vpop.f32.mrb[63].mxu1 }
 0x587   :  { %v5200_v48 = vadd.f32 %v5199_v38, %v5198_v45 }
 0x58a   :  { %v5241_v49 = vpop.f32.mrb[64].mxu0 }
 0x58b   :  { %v5242_v51 = vpop.f32.mrb[65].mxu0  ;;  %v5201_v29 = vpop.f32.mrb[64].mxu1 }
 0x58c   :  { %v5243_v42 = vadd.f32 %v5242_v51, %v5241_v49  ;;  %v5244_v52 = vpop.f32.mrb[66].mxu0  ;;  %v5202_v54 = vpop.f32.mrb[65].mxu1 }
 0x58d   :  { %v5245_v50 = vpop.f32.mrb[67].mxu0  ;;  %v5203_v55 = vadd.f32 %v5202_v54, %v5201_v29  ;;  %v5204_v34 = vpop.f32.mrb[66].mxu1 }
 0x58e   :  { %v5246_v24 = vadd.f32 %v5245_v50, %v5244_v52  ;;  %v2873_v27 = vadd.f32 %v5243_v42, %v5179_v28  ;;  %v5205_v20 = vpop.f32.mrb[67].mxu1 }
 0x58f   :  { %v5206_v58 = vadd.f32 %v5205_v20, %v5204_v34  ;;  %v5765_v34 = vld [vmem:[%s7523_s3 + $0xb8] sm:$0xff]  }
 0x590   :  { %v6937_v56 = vadd.f32 %v5246_v24, %v5182_v12  ;;  %5607 = vmatprep.subr.bf16.mxu0 %v5765_v34 }
 0x591   :  { %5608 = vmatpush3.bf16.msra.mxu0 %v5765_v34 }
 0x592   :  { %v5247_v0 = vpop.f32.mrb[68].mxu0 }
 0x593   :  { %v5248_v3 = vpop.f32.mrb[69].mxu0  ;;  %v5207_v22 = vpop.f32.mrb[68].mxu1 }
 0x594   :  { %v5249_v7 = vadd.f32 %v5248_v3, %v5247_v0  ;;  %v5250_v33 = vpop.f32.mrb[70].mxu0  ;;  %v5208_v59 = vpop.f32.mrb[69].mxu1 }
 0x595   :  { %v5251_v21 = vpop.f32.mrb[71].mxu0  ;;  %v6939_v60 = vadd.f32 %v5208_v59, %v5207_v22  ;;  %v5210_v61 = vpop.f32.mrb[70].mxu1 }
 0x596   :  { %v5252_v35 = vadd.f32 %v5251_v21, %v5250_v33  ;;  %v2881_v53 = vadd.f32 %v5249_v7, %v5185_v8  ;;  %v5211_v46 = vpop.f32.mrb[71].mxu1 }
 0x597   :  { %v6941_v1 = vadd.f32 %v5211_v46, %v5210_v61 }
 0x598   :  { %v2884_v62 = vadd.f32 %v5252_v35, %v5188_v30 }
 0x59a   :  { %v5253_v47 = vpop.f32.mrb[72].mxu0 }
 0x59b   :  { %v5254_v4 = vpop.f32.mrb[73].mxu0  ;;  %v5213_v16 = vpop.f32.mrb[72].mxu1 }
 0x59c   :  { %v5255_v9 = vadd.f32 %v5254_v4, %v5253_v47  ;;  %v5256_v11 = vpop.f32.mrb[74].mxu0  ;;  %v5214_v18 = vpop.f32.mrb[73].mxu1 }
 0x59d   :  { %v5257_v13 = vpop.f32.mrb[75].mxu0  ;;  %v6943_v2 = vadd.f32 %v5214_v18, %v5213_v16  ;;  %v5216_v63 = vpop.f32.mrb[74].mxu1 }
 0x59e   :  { %v5258_v14 = vadd.f32 %v5257_v13, %v5256_v11  ;;  %v2889_v15 = vadd.f32 %v5255_v9, %v5191_v32  ;;  %v5217_v17 = vpop.f32.mrb[75].mxu1 }
 0x59f   :  { %v6945_v19 = vadd.f32 %v5217_v17, %v5216_v63 }
 0x5a0   :  { %v2892_v10 = vadd.f32 %v5258_v14, %v5194_v40 }
 0x5a2   :  { %v5259_v28 = vpop.f32.mrb[76].mxu0 }
 0x5a3   :  { %v5260_v37 = vpop.f32.mrb[77].mxu0  ;;  %v5219_v8 = vpop.f32.mrb[76].mxu1 }
 0x5a4   :  { %v5261_v6 = vadd.f32 %v5260_v37, %v5259_v28  ;;  %v5262_v12 = vpop.f32.mrb[78].mxu0  ;;  %v5220_v26 = vpop.f32.mrb[77].mxu1 }
 0x5a5   :  { %v5263_v23 = vpop.f32.mrb[79].mxu0  ;;  %v6947_v30 = vadd.f32 %v5220_v26, %v5219_v8  ;;  %v5222_v25 = vpop.f32.mrb[78].mxu1 }
 0x5a6   :  { %v5264_v5 = vadd.f32 %v5263_v23, %v5262_v12  ;;  %v2897_v41 = vadd.f32 %v5261_v6, %v5197_v44  ;;  %v5223_v32 = vpop.f32.mrb[79].mxu1 }
 0x5a7   :  { %v6952_v39 = vadd.f32 %v5223_v32, %v5222_v25 }
 0x5a8   :  { %v2900_v31 = vadd.f32 %v5264_v5, %v5200_v48 }
 0x5aa   :  { %v5265_v40 = vpop.f32.mrb[80].mxu0 }
 0x5ab   :  { %v5266_v43 = vpop.f32.mrb[81].mxu0  ;;  %v5579_v49 = vpop.f32.mrb[80].mxu1 }
 0x5ac   :  { %v5267_v36 = vadd.f32 %v5266_v43, %v5265_v40  ;;  %v5268_v45 = vpop.f32.mrb[82].mxu0  ;;  %v2978_v42 = vadd.f32 %v5579_v49, %v2881_v53  ;;  %v2969_v52 = vpop.f32.mrb[81].mxu1 }
 0x5ad   :  { %v5269_v38 = vpop.f32.mrb[83].mxu0  ;;  %v2970_v48 = vadd.f32 %v2969_v52, %v2873_v27  ;;  %v5580_v50 = vpop.f32.mrb[82].mxu1 }
 0x5ae   :  { %v5270_v44 = vadd.f32 %v5269_v38, %v5268_v45  ;;  %v2905_v51 = vadd.f32 %v5267_v36, %v5203_v55  ;;  %v2981_v29 = vadd.f32 %v5580_v50, %v2884_v62  ;;  %v2972_v54 = vpop.f32.mrb[83].mxu1 }
 0x5af   :  { %v2973_v20 = vadd.f32 %v2972_v54, %v6937_v56  ;;  %3048 = vrot.lane.b32.xlu0 %v2970_v48, %s5810_s26 }
 0x5b0   :  { %v2908_v24 = vadd.f32 %v5270_v44, %v5206_v58  ;;  %v6986_v44 = vld [vmem:[%s7525_s1 + $0x2] ss:$0 sm:$0xff] }
 0x5b1   :  { %3050 = vrot.lane.b32.xlu1 %v2973_v20, %s5810_s26 }
 0x5b2   :  { %v5271_v0 = vpop.f32.mrb[84].mxu0 }
 0x5b3   :  { %v5272_v3 = vpop.f32.mrb[85].mxu0  ;;  %v5583_v33 = vpop.f32.mrb[84].mxu1  ;;  %3052 = vrot.lane.b32.xlu0 %v2978_v42, %s5810_s26  ;;  %v6992_v42 = vld [vmem:[%s7526_s2 + $0x2] ss:$0 sm:$0xff] }
 0x5b4   :  { %v5273_v55 = vadd.f32 %v5272_v3, %v5271_v0  ;;  %v5274_v27 = vpop.f32.mrb[86].mxu0  ;;  %v2994_v35 = vadd.f32 %v5583_v33, %v2897_v41  ;;  %v2985_v56 = vpop.f32.mrb[85].mxu1 }
 0x5b5   :  { %v5275_v58 = vpop.f32.mrb[87].mxu0  ;;  %v2986_v22 = vadd.f32 %v2985_v56, %v2889_v15  ;;  %v5584_v53 = vpop.f32.mrb[86].mxu1  ;;  %3054 = vrot.lane.b32.xlu1 %v2981_v29, %s5810_s26 }
 0x5b6   :  { %v5276_v7 = vadd.f32 %v5275_v58, %v5274_v27  ;;  %v2913_v21 = vadd.f32 %v5273_v55, %v6939_v60  ;;  %v2997_v61 = vadd.f32 %v5584_v53, %v2900_v31  ;;  %v2988_v62 = vpop.f32.mrb[87].mxu1 }
 0x5b7   :  { %v2989_v46 = vadd.f32 %v2988_v62, %v2892_v10  ;;  %3056 = vrot.lane.b32.xlu0 %v2986_v22, %s5810_s26 }
 0x5b8   :  { %v2916_v59 = vadd.f32 %v5276_v7, %v6941_v1 }
 0x5b9   :  { %3058 = vrot.lane.b32.xlu1 %v2989_v46, %s5810_s26 }
 0x5ba   :  { %v5277_v47 = vpop.f32.mrb[88].mxu0 }
 0x5bb   :  { %v5278_v4 = vpop.f32.mrb[89].mxu0  ;;  %v5587_v14 = vpop.f32.mrb[88].mxu1  ;;  %3060 = vrot.lane.b32.xlu0 %v2994_v35, %s5810_s26 }
 0x5bc   :  { %v5279_v9 = vadd.f32 %v5278_v4, %v5277_v47  ;;  %v5280_v11 = vpop.f32.mrb[90].mxu0  ;;  %v3010_v15 = vadd.f32 %v5587_v14, %v2913_v21  ;;  %v3001_v1 = vpop.f32.mrb[89].mxu1 }
 0x5bd   :  { %v5281_v60 = vpop.f32.mrb[91].mxu0  ;;  %v3002_v18 = vadd.f32 %v3001_v1, %v2905_v51  ;;  %v5588_v63 = vpop.f32.mrb[90].mxu1  ;;  %3062 = vrot.lane.b32.xlu1 %v2997_v61, %s5810_s26 }
 0x5be   :  { %v5282_v13 = vadd.f32 %v5281_v60, %v5280_v11  ;;  %v2921_v16 = vadd.f32 %v5279_v9, %v6943_v2  ;;  %v3013_v17 = vadd.f32 %v5588_v63, %v2916_v59  ;;  %v3004_v28 = vpop.f32.mrb[91].mxu1 }
 0x5bf   :  { %v3005_v37 = vadd.f32 %v3004_v28, %v2908_v24  ;;  %3064 = vrot.lane.b32.xlu0 %v3002_v18, %s5810_s26 }
 0x5c0   :  { %v2924_v10 = vadd.f32 %v5282_v13, %v6945_v19 }
 0x5c1   :  { %3066 = vrot.lane.b32.xlu1 %v3005_v37, %s5810_s26 }
 0x5c2   :  { %v5283_v6 = vpop.f32.mrb[92].mxu0 }
 0x5c3   :  { %v5284_v12 = vpop.f32.mrb[93].mxu0  ;;  %v5591_v26 = vpop.f32.mrb[92].mxu1  ;;  %3068 = vrot.lane.b32.xlu0 %v3010_v15, %s5810_s26 }
 0x5c4   :  { %v5285_v23 = vadd.f32 %v5284_v12, %v5283_v6  ;;  %v5286_v5 = vpop.f32.mrb[94].mxu0  ;;  %v3017_v25 = vpop.f32.mrb[93].mxu1 }
 0x5c5   :  { %v5287_v2 = vpop.f32.mrb[95].mxu0  ;;  %v3018_v31 = vadd.f32 %v3017_v25, %v2921_v16  ;;  %v5592_v57 = vpop.f32.mrb[94].mxu1  ;;  %3070 = vrot.lane.b32.xlu1 %v3013_v17, %s5810_s26 }
 0x5c6   :  { %v5288_v8 = vadd.f32 %v5287_v2, %v5286_v5  ;;  %v2929_v41 = vadd.f32 %v5285_v23, %v6947_v30  ;;  %v3020_v40 = vpop.f32.mrb[95].mxu1 }
 0x5c7   :  { %v3021_v36 = vadd.f32 %v3020_v40, %v2924_v10  ;;  %3072 = vrot.lane.b32.xlu0 %v3018_v31, %s5810_s26 }
 0x5c8   :  { %v3026_v19 = vadd.f32 %v5591_v26, %v2929_v41  ;;  %v2932_v32 = vadd.f32 %v5288_v8, %v6952_v39 }
 0x5c9   :  { %3074 = vrot.lane.b32.xlu1 %v3021_v36, %s5810_s26 }
 0x5ca   :  { %v3029_v43 = vadd.f32 %v5592_v57, %v2932_v32 }
 0x5cb   :  { %3076 = vrot.lane.b32.xlu0 %v3026_v19, %s5810_s26 }
 0x5cd   :  { %3078 = vrot.lane.b32.xlu1 %v3029_v43, %s5810_s26 }
 0x621   :  { %v3049_v30 = vpop.permute.xlu0 %3048 }
 0x622   :  { %3097 = vst.msk [vmem:[#allocation2] sm:$0xff] %vm3096_vm5, %v3049_v30 }
 0x623   :  { %v3051_v45 = vpop.permute.xlu1 %3050 }
 0x624   :  { %3098 = vst.msk [vmem:[#allocation2 + $0x8] sm:$0xff] %vm3096_vm5, %v3051_v45 }
 0x625   :  { %v3053_v39 = vpop.permute.xlu0 %3052 }
 0x626   :  { %3099 = vst.msk [vmem:[#allocation2 + $0x10] sm:$0xff] %vm3096_vm5, %v3053_v39 }
 0x627   :  { %v3055_v38 = vpop.permute.xlu1 %3054 }
 0x628   :  { %3100 = vst.msk [vmem:[#allocation2 + $0x18] sm:$0xff] %vm3096_vm5, %v3055_v38 }
 0x629   :  { %v3057_v49 = vpop.permute.xlu0 %3056  ;;  %v3113_v51 = vld [vmem:[#allocation2] sm:$0xff] }
 0x62a   :  { %3101 = vst.msk [vmem:[#allocation2 + $0x20] sm:$0xff] %vm3096_vm5, %v3057_v49  ;;  %v3137_v52 = vmul.f32 %v6986_v44, %v3113_v51 }
 0x62b   :  { %v3059_v48 = vpop.permute.xlu1 %3058  ;;  %v3114_v50 = vld [vmem:[#allocation2 + $0x8] sm:$0xff] }
 0x62c   :  { %3102 = vst.msk [vmem:[#allocation2 + $0x28] sm:$0xff] %vm3096_vm5, %v3059_v48  ;;  %v3138_v24 = vmul.f32 %v6986_v44, %v3114_v50  ;;  %v3161_v29 = vadd.f32 %v6992_v42, %v3137_v52 }
 0x62d   :  { %v3061_v54 = vpop.permute.xlu0 %3060  ;;  %v3115_v34 = vld [vmem:[#allocation2 + $0x10] sm:$0xff] }
 0x62e   :  { %3103 = vst.msk [vmem:[#allocation2 + $0x30] sm:$0xff] %vm3096_vm5, %v3061_v54  ;;  %v3162_v20 = vadd.f32 %v6992_v42, %v3138_v24  ;;  %v3139_v0 = vmul.f32 %v6986_v44, %v3115_v34  ;;  %v3177_v27 = vmax.f32 %v3161_v29, 0.0 }
 0x62f   :  { %v3063_v3 = vpop.permute.xlu1 %3062  ;;  %v3116_v55 = vld [vmem:[#allocation2 + $0x18] sm:$0xff] }
 0x630   :  { %3104 = vst.msk [vmem:[#allocation2 + $0x38] sm:$0xff] %vm3096_vm5, %v3063_v3  ;;  %v3178_v58 = vmax.f32 %v3162_v20, 0.0  ;;  %v3140_v7 = vmul.f32 %v6986_v44, %v3116_v55  ;;  %v3163_v33 = vadd.f32 %v6992_v42, %v3139_v0 }
 0x631   :  { %v3065_v21 = vpop.permute.xlu0 %3064  ;;  %v3117_v35 = vld [vmem:[#allocation2 + $0x20] sm:$0xff] }
 0x632   :  { %3105 = vst.msk [vmem:[#allocation2 + $0x40] sm:$0xff] %vm3096_vm5, %v3065_v21  ;;  %v3193_v56 = vpack.c.bf16 %v3178_v58, %v3177_v27  ;;  %v3164_v22 = vadd.f32 %v6992_v42, %v3140_v7  ;;  %v3141_v53 = vmul.f32 %v6986_v44, %v3117_v35  ;;  %v3179_v62 = vmax.f32 %v3163_v33, 0.0 }
 0x633   :  { %v3067_v59 = vpop.permute.xlu1 %3066  ;;  %v3118_v61 = vld [vmem:[#allocation2 + $0x28] sm:$0xff] }
 0x634   :  { %3106 = vst.msk [vmem:[#allocation2 + $0x48] sm:$0xff] %vm3096_vm5, %v3067_v59  ;;  %5609 = vmatprep.mubr.bf16.mxu0 %v3193_v56  ;;  %v3180_v46 = vmax.f32 %v3164_v22, 0.0  ;;  %v3142_v47 = vmul.f32 %v6986_v44, %v3118_v61  ;;  %v3165_v4 = vadd.f32 %v6992_v42, %v3141_v53  ;;  %v5766_v59 = vld [vmem:[%s7527_s6 + $0x2c0] sm:$0xff]  }
 0x635   :  { %v3069_v9 = vpop.permute.xlu0 %3068  ;;  %v3119_v11 = vld [vmem:[#allocation2 + $0x30] sm:$0xff]  ;;  %v5767_v61 = vld [vmem:[%s7527_s6 + $0x280] sm:$0xff]   ;;  %5321 = vmatprep.subr.bf16.mxu1 %v5766_v59 }
 0x636   :  { %3107 = vst.msk [vmem:[#allocation2 + $0x50] sm:$0xff] %vm3096_vm5, %v3069_v9  ;;  %v3194_v60 = vpack.c.bf16 %v3180_v46, %v3179_v62  ;;  %v3166_v13 = vadd.f32 %v6992_v42, %v3142_v47  ;;  %v3143_v14 = vmul.f32 %v6986_v44, %v3119_v11  ;;  %v3181_v1 = vmax.f32 %v3165_v4, 0.0  ;;  %5322 = vmatpush3.bf16.msra.mxu1 %v5767_v61  ;;  %v5776_v62 = vld [vmem:[%s7527_s6 + $0x340] sm:$0xff]   ;;  %v5770_v47 = vld [vmem:[%s7527_s6 + $0x2d0] sm:$0xff]   ;;  %v5780_v4 = vld [vmem:[%s7527_s6 + $0x348] sm:$0xff]  }
 0x637   :  { %v3071_v16 = vpop.permute.xlu1 %3070  ;;  %v3120_v15 = vld [vmem:[#allocation2 + $0x38] sm:$0xff]  ;;  %v5777_v46 = vld [vmem:[%s7527_s6 + $0x300] sm:$0xff]   ;;  %5385 = vmatprep.subr.bf16.mxu0 %v5776_v62  ;;  %v5771_v9 = vld [vmem:[%s7527_s6 + $0x290] sm:$0xff]  }
 0x638   :  { %3108 = vst.msk [vmem:[#allocation2 + $0x58] sm:$0xff] %vm3096_vm5, %v3071_v16  ;;  %5610 = vmatmul.mubr.bf16.vlgmr.msra.gmra.mrb[96].mxu0 %v3194_v60  ;;  %v3182_v18 = vmax.f32 %v3166_v13, 0.0  ;;  %v3144_v63 = vmul.f32 %v6986_v44, %v3120_v15  ;;  %v3167_v10 = vadd.f32 %v6992_v42, %v3143_v14  ;;  %v5772_v11 = vld [vmem:[%s7527_s6 + $0x2d8] sm:$0xff]   ;;  %v5774_v13 = vld [vmem:[%s7527_s6 + $0x2e0] sm:$0xff]   ;;  %v5778_v16 = vld [vmem:[%s7527_s6 + $0x2e8] sm:$0xff]  }
 0x639   :  { %v3073_v17 = vpop.permute.xlu0 %3072  ;;  %v3121_v28 = vld [vmem:[#allocation2 + $0x40] sm:$0xff]  ;;  %5386 = vmatpush3.bf16.msra.mxu0 %v5777_v46  ;;  %v5773_v60 = vld [vmem:[%s7527_s6 + $0x298] sm:$0xff]   ;;  %v5779_v15 = vld [vmem:[%s7527_s6 + $0x2a8] sm:$0xff]  }
 0x63a   :  { %3109 = vst.msk [vmem:[#allocation2 + $0x60] sm:$0xff] %vm3096_vm5, %v3073_v17  ;;  %v3195_v37 = vpack.c.bf16 %v3182_v18, %v3181_v1  ;;  %v3168_v6 = vadd.f32 %v6992_v42, %v3144_v63  ;;  %v3145_v12 = vmul.f32 %v6986_v44, %v3121_v28  ;;  %v3183_v2 = vmax.f32 %v3167_v10, 0.0  ;;  %5387 = vmatprep.subr.bf16.mxu0 %v5780_v4  ;;  %v5775_v14 = vld [vmem:[%s7527_s6 + $0x2a0] sm:$0xff]  }
 0x63b   :  { %v3075_v23 = vpop.permute.xlu1 %3074  ;;  %v3122_v5 = vld [vmem:[#allocation2 + $0x48] sm:$0xff]  ;;  %v7086_v1 = vld [vmem:[%s7528_s4 + $0x2] ss:$0 sm:$0xff] }
 0x63c   :  { %3110 = vst.msk [vmem:[#allocation2 + $0x68] sm:$0xff] %vm3096_vm5, %v3075_v23  ;;  %5613 = vmatprep.mubr.bf16.mxu0 %v3195_v37  ;;  %v3184_v8 = vmax.f32 %v3168_v6, 0.0  ;;  %v3146_v41 = vmul.f32 %v6986_v44, %v3122_v5  ;;  %v3169_v26 = vadd.f32 %v6992_v42, %v3145_v12  ;;  %v7091_v63 = vld [vmem:[%s7529_s5 + $0x2] ss:$0 sm:$0xff] }
 0x63d   :  { %v3077_v25 = vpop.permute.xlu0 %3076  ;;  %v3123_v19 = vld [vmem:[#allocation2 + $0x50] sm:$0xff] }
 0x63e   :  { %3111 = vst.msk [vmem:[#allocation2 + $0x70] sm:$0xff] %vm3096_vm5, %v3077_v25  ;;  %v3196_v31 = vpack.c.bf16 %v3184_v8, %v3183_v2  ;;  %v3170_v32 = vadd.f32 %v6992_v42, %v3146_v41  ;;  %v3147_v57 = vmul.f32 %v6986_v44, %v3123_v19  ;;  %v3185_v36 = vmax.f32 %v3169_v26, 0.0  ;;  %v5781_v26 = vld [vmem:[%s7527_s6 + $0x308] sm:$0xff]  }
 0x63f   :  { %v3079_v40 = vpop.permute.xlu1 %3078  ;;  %v3124_v43 = vld [vmem:[#allocation2 + $0x58] sm:$0xff]  ;;  %5388 = vmatpush3.bf16.msra.mxu0 %v5781_v26  ;;  %v5793_v26 = vld [vmem:[%s7527_s6 + $0x368] sm:$0xff]  }
 0x640   :  { %3112 = vst.msk [vmem:[#allocation2 + $0x78] sm:$0xff] %vm3096_vm5, %v3079_v40  ;;  %5614 = vmatmul.mubr.bf16.gmra.mrb[100].mxu0 %v3196_v31  ;;  %v3186_v30 = vmax.f32 %v3170_v32, 0.0  ;;  %v3148_v45 = vmul.f32 %v6986_v44, %v3124_v43  ;;  %v3171_v39 = vadd.f32 %v6992_v42, %v3147_v57  ;;  %v5782_v32 = vld [vmem:[%s7527_s6 + $0x2f0] sm:$0xff]  }
 0x641   :  { %v3125_v38 = vld [vmem:[#allocation2 + $0x60] sm:$0xff]  ;;  %v5783_v57 = vld [vmem:[%s7527_s6 + $0x2b0] sm:$0xff]  }
 0x642   :  { %v3197_v49 = vpack.c.bf16 %v3186_v30, %v3185_v36  ;;  %v3172_v51 = vadd.f32 %v6992_v42, %v3148_v45  ;;  %v3149_v52 = vmul.f32 %v6986_v44, %v3125_v38  ;;  %v3187_v50 = vmax.f32 %v3171_v39, 0.0  ;;  %v5784_v40 = vld [vmem:[%s7527_s6 + $0x350] sm:$0xff]  }
 0x643   :  { %v3126_v48 = vld [vmem:[#allocation2 + $0x68] sm:$0xff]  ;;  %5389 = vmatprep.subr.bf16.mxu0 %v5784_v40  ;;  %v5785_v39 = vld [vmem:[%s7527_s6 + $0x310] sm:$0xff]  }
 0x644   :  { %5617 = vmatprep.mubr.bf16.mxu0 %v3197_v49  ;;  %v3188_v24 = vmax.f32 %v3172_v51, 0.0  ;;  %v3150_v29 = vmul.f32 %v6986_v44, %v3126_v48  ;;  %v3173_v54 = vadd.f32 %v6992_v42, %v3149_v52  ;;  %5390 = vmatpush3.bf16.msra.mxu0 %v5785_v39 }
 0x645   :  { %v3127_v34 = vld [vmem:[#allocation2 + $0x70] sm:$0xff] }
 0x646   :  { %v3198_v20 = vpack.c.bf16 %v3188_v24, %v3187_v50  ;;  %v3174_v0 = vadd.f32 %v6992_v42, %v3150_v29  ;;  %v3151_v3 = vmul.f32 %v6986_v44, %v3127_v34  ;;  %v3189_v27 = vmax.f32 %v3173_v54, 0.0  ;;  %v5786_v50 = vld [vmem:[%s7527_s6 + $0x2f8] sm:$0xff]  }
 0x647   :  { %v3128_v55 = vld [vmem:[#allocation2 + $0x78] sm:$0xff] }
 0x648   :  { %5618 = vmatmul.mubr.bf16.gmra.mrb[104].mxu0 %v3198_v20  ;;  %v3190_v58 = vmax.f32 %v3174_v0, 0.0  ;;  %v3152_v7 = vmul.f32 %v6986_v44, %v3128_v55  ;;  %v3175_v33 = vadd.f32 %v6992_v42, %v3151_v3  ;;  %v5768_v44 = vld [vmem:[%s7527_s6 + $0x2c8] sm:$0xff]   ;;  %v5787_v24 = vld [vmem:[%s7527_s6 + $0x2b8] sm:$0xff]   ;;  %v3443_v55 = vld [vmem:[#allocation3] sm:$0xff] }
 0x649   :  { %5323 = vmatprep.subr.bf16.mxu1 %v5768_v44  ;;  %v5788_v29 = vld [vmem:[%s7527_s6 + $0x358] sm:$0xff]   ;;  %v3475_v20 = vld [vmem:[#allocation3 + $0x1] sm:$0xff] }
 0x64a   :  { %v3199_v21 = vpack.c.bf16 %v3190_v58, %v3189_v27  ;;  %v3176_v35 = vadd.f32 %v6992_v42, %v3152_v7  ;;  %v3191_v56 = vmax.f32 %v3175_v33, 0.0  ;;  %v5769_v42 = vld [vmem:[%s7527_s6 + $0x288] sm:$0xff]   ;;  %5391 = vmatprep.subr.bf16.mxu0 %v5788_v29  ;;  %v5789_v58 = vld [vmem:[%s7527_s6 + $0x318] sm:$0xff]  }
 0x64b   :  { %5324 = vmatpush3.bf16.msra.mxu1 %v5769_v42  ;;  %v3539_v27 = vld [vmem:[#allocation3 + $0x2] sm:$0xff]  ;;  %5392 = vmatpush3.bf16.msra.mxu0 %v5789_v58 }
 0x64c   :  { %5621 = vmatprep.mubr.bf16.mxu0 %v3199_v21  ;;  %v3192_v22 = vmax.f32 %v3176_v35, 0.0  ;;  %5325 = vmatprep.subr.bf16.mxu1 %v5770_v47 }
 0x64e   :  { %v3200_v53 = vpack.c.bf16 %v3192_v22, %v3191_v56 }
 0x64f   :  { %5326 = vmatpush3.bf16.msra.mxu1 %v5771_v9 }
 0x650   :  { %5622 = vmatmul.mubr.bf16.gmra.mrb[108].mxu0 %v3200_v53  ;;  %5327 = vmatprep.subr.bf16.mxu1 %v5772_v11 }
 0x653   :  { %5328 = vmatpush3.bf16.msra.mxu1 %v5773_v60 }
 0x654   :  { %5329 = vmatprep.subr.bf16.mxu1 %v5774_v13 }
 0x657   :  { %5330 = vmatpush3.bf16.msra.mxu1 %v5775_v14 }
 0x658   :  { %5331 = vmatprep.subr.bf16.mxu1 %v5778_v16 }
 0x65b   :  { %5332 = vmatpush3.bf16.msra.mxu1 %v5779_v15 }
 0x65c   :  { %5333 = vmatprep.subr.bf16.mxu1 %v5782_v32 }
 0x65f   :  { %5334 = vmatpush3.bf16.msra.mxu1 %v5783_v57 }
 0x660   :  { %5335 = vmatprep.subr.bf16.mxu1 %v5786_v50 }
 0x663   :  { %5336 = vmatpush3.bf16.msra.mxu1 %v5787_v24 }
 0x70b   :  { %v5611_v18 = vpop.f32.mrb[96].mxu0 }
 0x70c   :  { %v3373_v10 = vmul.f32 %v5611_v18, %v7086_v1  ;;  %v3300_v17 = vpop.f32.mrb[97].mxu0 }
 0x70d   :  { %v3371_v28 = vmul.f32 %v7086_v1, %v3300_v17  ;;  %v5612_v37 = vpop.f32.mrb[98].mxu0 }
 0x70e   :  { %v3397_v6 = vadd.f32 %v7091_v63, %v3373_v10  ;;  %v3374_v12 = vmul.f32 %v5612_v37, %v7086_v1  ;;  %v3303_v23 = vpop.f32.mrb[99].mxu0  ;;  %v5791_v37 = vld [vmem:[%s7527_s6 + $0x360] sm:$0xff]  }
 0x70f   :  { %v3395_v5 = vadd.f32 %v7091_v63, %v3371_v28  ;;  %v3372_v2 = vmul.f32 %v7086_v1, %v3303_v23  ;;  %v7161_v28 = vld [vmem:[%s7527_s6 + $0x380] sm:$0xff]   ;;  %5393 = vmatprep.subr.bf16.mxu0 %v5791_v37 }
 0x710   :  { %v3413_v8 = vmax.f32 %v3397_v6, 0.0  ;;  %v3398_v41 = vadd.f32 %v7091_v63, %v3374_v12  ;;  %v5792_v6 = vld [vmem:[%s7527_s6 + $0x320] sm:$0xff]   ;;  %5625 = vmatprep.subr.bf16.mxu1 %v7161_v28 }
 0x711   :  { %v3411_v25 = vmax.f32 %v3395_v5, 0.0  ;;  %v3396_v19 = vadd.f32 %v7091_v63, %v3372_v2  ;;  %5394 = vmatpush3.bf16.msra.mxu0 %v5792_v6 }
 0x712   :  { %3429 = vst.msk [vmem:[#allocation3 + $0x31] sm:$0xff] %vm76_vm0, %v3413_v8  ;;  %v3414_v31 = vmax.f32 %v3398_v41, 0.0  ;;  %5395 = vmatprep.subr.bf16.mxu0 %v5793_v26 }
 0x713   :  { %3427 = vst.msk [vmem:[#allocation3 + $0x11] sm:$0xff] %vm76_vm0, %v3411_v25  ;;  %v3412_v43 = vmax.f32 %v3396_v19, 0.0  ;;  %v5615_v36 = vpop.f32.mrb[100].mxu0 }
 0x714   :  { %3430 = vst.msk [vmem:[#allocation3 + $0x41] sm:$0xff] %vm76_vm0, %v3414_v31  ;;  %v3377_v30 = vmul.f32 %v5615_v36, %v7086_v1  ;;  %v3316_v45 = vpop.f32.mrb[101].mxu0 }
 0x715   :  { %3428 = vst.msk [vmem:[#allocation3 + $0x21] sm:$0xff] %vm76_vm0, %v3412_v43  ;;  %v3375_v38 = vmul.f32 %v7086_v1, %v3316_v45  ;;  %v5616_v49 = vpop.f32.mrb[102].mxu0 }
 0x716   :  { %v3401_v51 = vadd.f32 %v7091_v63, %v3377_v30  ;;  %v3378_v52 = vmul.f32 %v5616_v49, %v7086_v1  ;;  %v3319_v48 = vpop.f32.mrb[103].mxu0 }
 0x717   :  { %v3399_v54 = vadd.f32 %v7091_v63, %v3375_v38  ;;  %v3376_v34 = vmul.f32 %v7086_v1, %v3319_v48  ;;  %v5794_v38 = vld [vmem:[%s7527_s6 + $0x328] sm:$0xff]  }
 0x718   :  { %v3417_v0 = vmax.f32 %v3401_v51, 0.0  ;;  %v3402_v3 = vadd.f32 %v7091_v63, %v3378_v52  ;;  %5396 = vmatpush3.bf16.msra.mxu0 %v5794_v38 }
 0x719   :  { %v3415_v7 = vmax.f32 %v3399_v54, 0.0  ;;  %v3400_v33 = vadd.f32 %v7091_v63, %v3376_v34  ;;  %v3478_v21 = vld [vmem:[#allocation3 + $0x31] sm:$0xff] }
 0x71a   :  { %3433 = vst.msk [vmem:[#allocation3 + $0x71] sm:$0xff] %vm76_vm0, %v3417_v0  ;;  %v3418_v35 = vmax.f32 %v3402_v3, 0.0  ;;  %v3476_v56 = vld [vmem:[#allocation3 + $0x11] sm:$0xff] }
 0x71b   :  { %v3571_v22 = vld [vmem:[#allocation3 + $0x10] sm:$0xff]  ;;  %3431 = vst.msk [vmem:[#allocation3 + $0x51] sm:$0xff] %vm76_vm0, %v3415_v7  ;;  %v3416_v59 = vmax.f32 %v3400_v33, 0.0  ;;  %v5619_v61 = vpop.f32.mrb[104].mxu0  ;;  %v3491_v44 = vpack.c.bf16 %v3476_v56, %v3475_v20  ;;  %v3479_v62 = vld [vmem:[#allocation3 + $0x41] sm:$0xff] }
 0x71c   :  { %v7141_v53 = vld [vmem:[#allocation3 + $0x12] sm:$0xff]  ;;  %v3459_v47 = vpack.c.bf16 %v3571_v22, %v3443_v55  ;;  %3434 = vst.msk [vmem:[#allocation3 + $0x81] sm:$0xff] %vm76_vm0, %v3418_v35  ;;  %v3381_v9 = vmul.f32 %v5619_v61, %v7086_v1  ;;  %v3332_v11 = vpop.f32.mrb[105].mxu0  ;;  %v3572_v60 = vld [vmem:[#allocation3 + $0x20] sm:$0xff]  ;;  %v3652_v16 = vpack.c.bf16 %v3479_v62, %v3478_v21 }
 0x71d   :  { %v3573_v42 = vld [vmem:[#allocation3 + $0x30] sm:$0xff]  ;;  %v3555_v4 = vpack.c.bf16 %v7141_v53, %v3539_v27  ;;  %v3477_v13 = vld [vmem:[#allocation3 + $0x21] sm:$0xff]  ;;  %3432 = vst.msk [vmem:[#allocation3 + $0x61] sm:$0xff] %vm76_vm0, %v3416_v59  ;;  %v3379_v15 = vmul.f32 %v7086_v1, %v3332_v11  ;;  %3507 = vrot.lane.b32.xlu1 %v3491_v44, %s5808_s24  ;;  %v5620_v18 = vpop.f32.mrb[106].mxu0  ;;  %v3587_v10 = vpack.c.bf16 %v3572_v60, %v3571_v22 }
 0x71e   :  { %v7144_v46 = vld [vmem:[#allocation3 + $0x32] sm:$0xff]  ;;  %v7149_v14 = vld [vmem:[#allocation3 + $0x22] sm:$0xff]  ;;  %v7154_v17 = vpack.c.bf16 %v3478_v21, %v3477_v13  ;;  %3467 = vst.msk [vmem:[#allocation4] sm:$0xff] %vm76_vm0, %v3459_v47  ;;  %v3405_v12 = vadd.f32 %v7091_v63, %v3381_v9  ;;  %v3382_v23 = vmul.f32 %v5620_v18, %v7086_v1  ;;  %v3335_v5 = vpop.f32.mrb[107].mxu0  ;;  %v3460_v8 = vpack.c.bf16 %v3573_v42, %v3572_v60 }
 0x71f   :  { %3563 = vst.msk [vmem:[#allocation4 + $0x8] sm:$0xff] %vm76_vm0, %v3555_v4  ;;  %v3574_v2 = vld [vmem:[#allocation3 + $0x40] sm:$0xff]  ;;  %v3556_v41 = vpack.c.bf16 %v7144_v46, %v7149_v14  ;;  %3660 = vst.msk [vmem:[#allocation4 + $0x38] sm:$0xff] %vm76_vm0, %v3652_v16  ;;  %v3403_v19 = vadd.f32 %v7091_v63, %v3379_v15  ;;  %v3380_v31 = vmul.f32 %v7086_v1, %v3335_v5  ;;  %3603 = vrot.lane.b32.xlu0 %v3587_v10, %s5808_s24  ;;  %v3738_v55 = vld [vmem:[#allocation3 + $0x90] sm:$0xff] }
 0x720   :  { %v3827_v25 = vld [vmem:[#allocation3 + $0x22] sm:$0xff]  ;;  %v3651_v32 = vpack.c.bf16 %v3477_v13, %v3476_v56  ;;  %v3421_v57 = vmax.f32 %v3405_v12, 0.0  ;;  %v3406_v40 = vadd.f32 %v7091_v63, %v3382_v23  ;;  %3468 = vst.msk [vmem:[#allocation4 + $0x28] sm:$0xff] %vm76_vm0, %v3460_v8  ;;  %3755 = vst.msk [vmem:[#allocation4 + $0x18] sm:$0xff] %vm76_vm0, %v3460_v8  ;;  %v3588_v45 = vpack.c.bf16 %v3574_v2, %v3573_v42  ;;  %v5796_v42 = vld [vmem:[%s7527_s6 + $0x370] sm:$0xff]  }
 0x721   :  { %3564 = vst.msk [vmem:[#allocation4 + $0x30] sm:$0xff] %vm76_vm0, %v3556_v41  ;;  %v3843_v43 = vpack.c.bf16 %v7144_v46, %v3827_v25  ;;  %v3419_v36 = vmax.f32 %v3403_v19, 0.0  ;;  %v3404_v30 = vadd.f32 %v7091_v63, %v3380_v31  ;;  %3509 = vrot.lane.b32.xlu1 %v7154_v17, %s5808_s24  ;;  %v7189_v39 = vld [vmem:[#allocation3 + $0x42] sm:$0xff]  ;;  %v7206_v54 = vld [vmem:[#allocation3 + $0x71] sm:$0xff]  ;;  %5397 = vmatprep.subr.bf16.mxu0 %v5796_v42 }
 0x722   :  { %3659 = vst.msk [vmem:[#allocation4 + $0x10] sm:$0xff] %vm76_vm0, %v3651_v32  ;;  %3437 = vst.msk [vmem:[#allocation3 + $0xd1] sm:$0xff] %vm76_vm0, %v3421_v57  ;;  %v3422_v49 = vmax.f32 %v3406_v40, 0.0  ;;  %v7196_v51 = vld [vmem:[#allocation3 + $0x51] sm:$0xff]  ;;  %v3451_v23 = vld [vmem:[#allocation3 + $0xa0] sm:$0xff] }
 0x723   :  { %v3575_v52 = vld [vmem:[#allocation3 + $0x50] sm:$0xff]  ;;  %3851 = vst.msk [vmem:[#allocation4 + $0x20] sm:$0xff] %vm76_vm0, %v3843_v43  ;;  %3435 = vst.msk [vmem:[#allocation3 + $0xb1] sm:$0xff] %vm76_vm0, %v3419_v36  ;;  %v3420_v50 = vmax.f32 %v3404_v30, 0.0  ;;  %3605 = vrot.lane.b32.xlu0 %v3588_v45, %s5808_s24  ;;  %v5623_v24 = vpop.f32.mrb[108].mxu0  ;;  %v7204_v29 = vpack.c.bf16 %v7196_v51, %v3479_v62  ;;  %v3578_v61 = vld [vmem:[#allocation3 + $0x80] sm:$0xff]  ;;  %v3683_v36 = vpack.c.bf16 %v7149_v14, %v7141_v53 }
 0x724   :  { %v7198_v48 = vld [vmem:[#allocation3 + $0x52] sm:$0xff]  ;;  %v3461_v0 = vpack.c.bf16 %v3575_v52, %v3574_v2  ;;  %3438 = vst.msk [vmem:[#allocation3 + $0xe1] sm:$0xff] %vm76_vm0, %v3422_v49  ;;  %v3385_v27 = vmul.f32 %v5623_v24, %v7086_v1  ;;  %v3348_v58 = vpop.f32.mrb[109].mxu0  ;;  %v3576_v7 = vld [vmem:[#allocation3 + $0x60] sm:$0xff]  ;;  %v3750_v2 = vpack.c.bf16 %v3738_v55, %v3578_v61 }
 0x725   :  { %v7208_v34 = vld [vmem:[#allocation3 + $0x70] sm:$0xff]  ;;  %v3557_v3 = vpack.c.bf16 %v7198_v48, %v7189_v39  ;;  %v3481_v33 = vld [vmem:[#allocation3 + $0x61] sm:$0xff]  ;;  %3436 = vst.msk [vmem:[#allocation3 + $0xc1] sm:$0xff] %vm76_vm0, %v3420_v50  ;;  %v3383_v35 = vmul.f32 %v7086_v1, %v3348_v58  ;;  %3511 = vrot.lane.b32.xlu1 %v7204_v29, %s5808_s24  ;;  %v5624_v56 = vpop.f32.mrb[110].mxu0  ;;  %v3589_v22 = vpack.c.bf16 %v3576_v7, %v3575_v52  ;;  %v5798_v10 = vld [vmem:[%s7527_s6 + $0x378] sm:$0xff]  }
 0x726   :  { %v7210_v20 = vld [vmem:[#allocation3 + $0x72] sm:$0xff]  ;;  %v7216_v21 = vld [vmem:[#allocation3 + $0x62] sm:$0xff]  ;;  %v7223_v59 = vpack.c.bf16 %v7206_v54, %v3481_v33  ;;  %3469 = vst.msk [vmem:[#allocation4 + $0x50] sm:$0xff] %vm76_vm0, %v3461_v0  ;;  %3756 = vst.msk [vmem:[#allocation4 + $0x40] sm:$0xff] %vm76_vm0, %v3461_v0  ;;  %v3409_v62 = vadd.f32 %v7091_v63, %v3385_v27  ;;  %v3386_v47 = vmul.f32 %v5624_v56, %v7086_v1  ;;  %v3351_v4 = vpop.f32.mrb[111].mxu0 }
 0x727   :  { %v7225_v44 = vld [vmem:[#allocation3 + $0x81] sm:$0xff]  ;;  %3565 = vst.msk [vmem:[#allocation4 + $0x58] sm:$0xff] %vm76_vm0, %v3557_v3  ;;  %3852 = vst.msk [vmem:[#allocation4 + $0x48] sm:$0xff] %vm76_vm0, %v3557_v3  ;;  %v3462_v11 = vpack.c.bf16 %v7208_v34, %v3576_v7  ;;  %v3558_v60 = vpack.c.bf16 %v7210_v20, %v7216_v21  ;;  %v5797_v13 = vld [vmem:[%s7527_s6 + $0x330] sm:$0xff]   ;;  %v3407_v15 = vadd.f32 %v7091_v63, %v3383_v35  ;;  %3607 = vrot.lane.b32.xlu0 %v3589_v22, %s5808_s24 }
 0x728   :  { %v7236_v9 = vld [vmem:[#allocation3 + $0x82] sm:$0xff]  ;;  %v3834_v16 = vld [vmem:[#allocation3 + $0x92] sm:$0xff]  ;;  %v3384_v18 = vmul.f32 %v7086_v1, %v3351_v4  ;;  %v3653_v37 = vpack.c.bf16 %v3481_v33, %v7196_v51  ;;  %v3425_v6 = vmax.f32 %v3409_v62, 0.0  ;;  %v3410_v12 = vadd.f32 %v7091_v63, %v3386_v47  ;;  %5398 = vmatpush3.bf16.msra.mxu0 %v5797_v13  ;;  %3758 = vst.msk [vmem:[#allocation4 + $0x90] sm:$0xff] %vm76_vm0, %v3750_v2 }
 0x729   :  { %3470 = vst.msk [vmem:[#allocation4 + $0x78] sm:$0xff] %vm76_vm0, %v3462_v11  ;;  %3566 = vst.msk [vmem:[#allocation4 + $0x80] sm:$0xff] %vm76_vm0, %v3558_v60  ;;  %v3547_v5 = vld [vmem:[#allocation3 + $0xa2] sm:$0xff]  ;;  %v3654_v1 = vpack.c.bf16 %v7225_v44, %v7206_v54  ;;  %v3423_v8 = vmax.f32 %v3407_v15, 0.0  ;;  %3513 = vrot.lane.b32.xlu1 %v7223_v59, %s5808_s24  ;;  %v3590_v26 = vpack.c.bf16 %v3578_v61, %v7208_v34  ;;  %v5799_v25 = vld [vmem:[%s7527_s6 + $0x338] sm:$0xff]   ;;  %5399 = vmatprep.subr.bf16.mxu0 %v5798_v10 }
 0x72a   :  { %3757 = vst.msk [vmem:[#allocation4 + $0x68] sm:$0xff] %vm76_vm0, %v3462_v11  ;;  %3853 = vst.msk [vmem:[#allocation4 + $0x70] sm:$0xff] %vm76_vm0, %v3558_v60  ;;  %v3408_v41 = vadd.f32 %v7091_v63, %v3384_v18  ;;  %v3846_v19 = vpack.c.bf16 %v3834_v16, %v7236_v9  ;;  %v3426_v31 = vmax.f32 %v3410_v12, 0.0  ;;  %v3483_v32 = vld [vmem:[#allocation3 + $0xa1] sm:$0xff]  ;;  %v3579_v57 = vld [vmem:[#allocation3 + $0xb0] sm:$0xff]  ;;  %v3684_v61 = vpack.c.bf16 %v7189_v39, %v7144_v46 }
 0x72b   :  { %3661 = vst.msk [vmem:[#allocation4 + $0x60] sm:$0xff] %vm76_vm0, %v3653_v37  ;;  %3441 = vst.msk [vmem:[#allocation3 + $0x111] sm:$0xff] %vm76_vm0, %v3425_v6  ;;  %v7268_v40 = vld [vmem:[#allocation3 + $0xd1] sm:$0xff]  ;;  %3609 = vrot.lane.b32.xlu0 %v3590_v26, %s5808_s24  ;;  %v7280_v38 = vld [vmem:[#allocation3 + $0xe1] sm:$0xff]  ;;  %v3463_v49 = vpack.c.bf16 %v3579_v57, %v3451_v23 }
 0x72c   :  { %v7270_v63 = vld [vmem:[#allocation3 + $0xb2] sm:$0xff]  ;;  %3662 = vst.msk [vmem:[#allocation4 + $0x88] sm:$0xff] %vm76_vm0, %v3654_v1  ;;  %3439 = vst.msk [vmem:[#allocation3 + $0xf1] sm:$0xff] %vm76_vm0, %v3423_v8  ;;  %v3424_v43 = vmax.f32 %v3408_v41, 0.0  ;;  %v3580_v52 = vld [vmem:[#allocation3 + $0xc0] sm:$0xff]  ;;  %v3656_v53 = vpack.c.bf16 %v7280_v38, %v7268_v40  ;;  %5400 = vmatpush3.bf16.msra.mxu0 %v5799_v25  ;;  %v3686_v41 = vpack.c.bf16 %v7236_v9, %v7210_v20 }
 0x72d   :  { %v3484_v30 = vld [vmem:[#allocation3 + $0xb1] sm:$0xff]  ;;  %v3559_v51 = vpack.c.bf16 %v7270_v63, %v3547_v5  ;;  %3854 = vst.msk [vmem:[#allocation4 + $0x98] sm:$0xff] %vm76_vm0, %v3846_v19  ;;  %3442 = vst.msk [vmem:[#allocation3 + $0x121] sm:$0xff] %vm76_vm0, %v3426_v31  ;;  %v3485_v50 = vld [vmem:[#allocation3 + $0xc1] sm:$0xff]  ;;  %3699 = vrot.lane.b32.xlu1 %v3683_v36, %s5808_s24  ;;  %v3591_v55 = vpack.c.bf16 %v3580_v52, %v3579_v57  ;;  %v3685_v5 = vpack.c.bf16 %v7216_v21, %v7198_v48 }
 0x72e   :  { %v7278_v45 = vld [vmem:[#allocation3 + $0xd0] sm:$0xff]  ;;  %v7285_v24 = vld [vmem:[#allocation3 + $0xc2] sm:$0xff]  ;;  %3440 = vst.msk [vmem:[#allocation3 + $0x101] sm:$0xff] %vm76_vm0, %v3424_v43  ;;  %3471 = vst.msk [vmem:[#allocation4 + $0xa0] sm:$0xff] %vm76_vm0, %v3463_v49  ;;  %v3655_v0 = vpack.c.bf16 %v3485_v50, %v3484_v30  ;;  %v3495_v3 = vpack.c.bf16 %v3484_v30, %v3483_v32  ;;  %v3496_v23 = vpack.c.bf16 %v7268_v40, %v3485_v50 }
 0x72f   :  { %v7291_v14 = vld [vmem:[#allocation3 + $0xd2] sm:$0xff]  ;;  %3567 = vst.msk [vmem:[#allocation4 + $0xa8] sm:$0xff] %vm76_vm0, %v3559_v51  ;;  %v3464_v54 = vpack.c.bf16 %v7278_v45, %v3580_v52  ;;  %3664 = vst.msk [vmem:[#allocation4 + $0xd8] sm:$0xff] %vm76_vm0, %v3656_v53  ;;  %3795 = vrot.lane.b32.xlu0 %v7154_v17, %s5808_s24  ;;  %v3582_v27 = vld [vmem:[#allocation3 + $0xe0] sm:$0xff]  ;;  %v3687_v26 = vpack.c.bf16 %v7285_v24, %v7270_v63 }
 0x730   :  { %v3560_v34 = vpack.c.bf16 %v7291_v14, %v7285_v24  ;;  %3663 = vst.msk [vmem:[#allocation4 + $0xb0] sm:$0xff] %vm76_vm0, %v3655_v0  ;;  %v3678_v7 = vld [vmem:[#allocation3 + $0xe2] sm:$0xff]  ;;  %v3746_v33 = vld [vmem:[#allocation3 + $0x130] sm:$0xff] }
 0x731   :  { %3472 = vst.msk [vmem:[#allocation4 + $0xc8] sm:$0xff] %vm76_vm0, %v3464_v54  ;;  %3759 = vst.msk [vmem:[#allocation4 + $0xb8] sm:$0xff] %vm76_vm0, %v3464_v54  ;;  %3515 = vrot.lane.b32.xlu1 %v3495_v3, %s5808_s24  ;;  %v3842_v35 = vld [vmem:[#allocation3 + $0x132] sm:$0xff]  ;;  %v3688_v20 = vpack.c.bf16 %v3678_v7, %v7291_v14  ;;  %v5795_v30 = vld [vmem:[%s7527_s6 + $0x388] sm:$0xff]  }
 0x732   :  { %3568 = vst.msk [vmem:[#allocation4 + $0xd0] sm:$0xff] %vm76_vm0, %v3560_v34  ;;  %3855 = vst.msk [vmem:[#allocation4 + $0xc0] sm:$0xff] %vm76_vm0, %v3560_v34  ;;  %v3490_v58 = vld [vmem:[#allocation3 + $0x111] sm:$0xff]  ;;  %v5802_v0 = vld [vmem:[%s7527_s6 + $0x3a0] sm:$0xff]  }
 0x733   :  { %v3583_v17 = vld [vmem:[#allocation3 + $0xf0] sm:$0xff]  ;;  %3611 = vrot.lane.b32.xlu0 %v3591_v55, %s5808_s24 }
 0x734   :  { %v3585_v56 = vld [vmem:[#allocation3 + $0x110] sm:$0xff]  ;;  %v3586_v42 = vld [vmem:[#allocation3 + $0x120] sm:$0xff]  ;;  %v3465_v4 = vpack.c.bf16 %v3583_v17, %v3582_v27 }
 0x735   :  { %v3679_v22 = vld [vmem:[#allocation3 + $0xf2] sm:$0xff]  ;;  %v3682_v62 = vld [vmem:[#allocation3 + $0x122] sm:$0xff]  ;;  %3701 = vrot.lane.b32.xlu1 %v3684_v61, %s5808_s24  ;;  %v3754_v6 = vpack.c.bf16 %v3746_v33, %v3586_v42 }
 0x736   :  { %v3777_v47 = vld [vmem:[#allocation3 + $0x121] sm:$0xff]  ;;  %v3561_v11 = vpack.c.bf16 %v3679_v22, %v3678_v7  ;;  %v3488_v18 = vld [vmem:[#allocation3 + $0xf1] sm:$0xff]  ;;  %3473 = vst.msk [vmem:[#allocation4 + $0xf0] sm:$0xff] %vm76_vm0, %v3465_v4  ;;  %3760 = vst.msk [vmem:[#allocation4 + $0xe0] sm:$0xff] %vm76_vm0, %v3465_v4  ;;  %v3850_v12 = vpack.c.bf16 %v3842_v35, %v3682_v62 }
 0x737   :  { %v3584_v60 = vld [vmem:[#allocation3 + $0x100] sm:$0xff]  ;;  %v3658_v15 = vpack.c.bf16 %v3777_v47, %v3490_v58  ;;  %v3681_v10 = vld [vmem:[#allocation3 + $0x112] sm:$0xff]  ;;  %3797 = vrot.lane.b32.xlu0 %v7204_v29, %s5808_s24  ;;  %3762 = vst.msk [vmem:[#allocation4 + $0x130] sm:$0xff] %vm76_vm0, %v3754_v6  ;;  %v3592_v29 = vpack.c.bf16 %v3582_v27, %v7278_v45  ;;  %v3497_v1 = vpack.c.bf16 %v3488_v18, %v7280_v38 }
 0x738   :  { %v3489_v13 = vld [vmem:[#allocation3 + $0x101] sm:$0xff]  ;;  %3569 = vst.msk [vmem:[#allocation4 + $0xf8] sm:$0xff] %vm76_vm0, %v3561_v11  ;;  %v3466_v37 = vpack.c.bf16 %v3585_v56, %v3584_v60  ;;  %3856 = vst.msk [vmem:[#allocation4 + $0xe8] sm:$0xff] %vm76_vm0, %v3561_v11  ;;  %v3593_v2 = vpack.c.bf16 %v3584_v60, %v3583_v17  ;;  %v3770_v8 = vld [vmem:[#allocation3 + $0x91] sm:$0xff]  ;;  %v3690_v25 = vpack.c.bf16 %v3682_v62, %v3681_v10 }
 0x739   :  { %v3680_v16 = vld [vmem:[#allocation3 + $0x102] sm:$0xff]  ;;  %v3657_v39 = vpack.c.bf16 %v3489_v13, %v3488_v18  ;;  %3666 = vst.msk [vmem:[#allocation4 + $0x128] sm:$0xff] %vm76_vm0, %v3658_v15  ;;  %3858 = vst.msk [vmem:[#allocation4 + $0x138] sm:$0xff] %vm76_vm0, %v3850_v12  ;;  %3517 = vrot.lane.b32.xlu1 %v3496_v23, %s5808_s24  ;;  %v3782_v48 = vpack.c.bf16 %v3770_v8, %v7225_v44  ;;  %v3498_v21 = vpack.c.bf16 %v3490_v58, %v3489_v13  ;;  %v3778_v9 = vld [vmem:[#allocation3 + $0x131] sm:$0xff] }
 0x73a   :  { %v3562_v46 = vpack.c.bf16 %v3681_v10, %v3680_v16  ;;  %3474 = vst.msk [vmem:[#allocation4 + $0x118] sm:$0xff] %vm76_vm0, %v3466_v37  ;;  %3761 = vst.msk [vmem:[#allocation4 + $0x108] sm:$0xff] %vm76_vm0, %v3466_v37  ;;  %v3689_v44 = vpack.c.bf16 %v3680_v16, %v3679_v22  ;;  %v3786_v19 = vpack.c.bf16 %v3778_v9, %v3777_v47  ;;  %v5800_v52 = vld [vmem:[%s7527_s6 + $0x390] sm:$0xff]   ;;  %v5803_v58 = vld [vmem:[%s7527_s6 + $0x3a8] sm:$0xff]  }
 0x73b   :  { %3665 = vst.msk [vmem:[#allocation4 + $0x100] sm:$0xff] %vm76_vm0, %v3657_v39  ;;  %3613 = vrot.lane.b32.xlu0 %v3592_v29, %s5808_s24  ;;  %v5804_v22 = vld [vmem:[%s7527_s6 + $0x3b0] sm:$0xff]   ;;  %v5805_v47 = vld [vmem:[%s7527_s6 + $0x3b8] sm:$0xff]  }
 0x73c   :  { %3570 = vst.msk [vmem:[#allocation4 + $0x120] sm:$0xff] %vm76_vm0, %v3562_v46  ;;  %3857 = vst.msk [vmem:[#allocation4 + $0x110] sm:$0xff] %vm76_vm0, %v3562_v46 }
 0x73d   :  { %3703 = vrot.lane.b32.xlu1 %v3685_v5, %s5808_s24 }
 0x73f   :  { %3799 = vrot.lane.b32.xlu0 %v7223_v59, %s5808_s24  ;;  %v3594_v59 = vpack.c.bf16 %v3586_v42, %v3585_v56 }
 0x741   :  { %3519 = vrot.lane.b32.xlu1 %v3497_v1, %s5808_s24 }
 0x743   :  { %3615 = vrot.lane.b32.xlu0 %v3593_v2, %s5808_s24 }
 0x745   :  { %3705 = vrot.lane.b32.xlu1 %v3686_v41, %s5808_s24 }
 0x747   :  { %3801 = vrot.lane.b32.xlu0 %v3782_v48, %s5808_s24 }
 0x749   :  { %3521 = vrot.lane.b32.xlu1 %v3498_v21, %s5808_s24 }
 0x74b   :  { %3617 = vrot.lane.b32.xlu0 %v3594_v59, %s5808_s24 }
 0x74d   :  { %3707 = vrot.lane.b32.xlu1 %v3687_v26, %s5808_s24 }
 0x74f   :  { %3803 = vrot.lane.b32.xlu0 %v3496_v23, %s5808_s24 }
 0x751   :  { %3709 = vrot.lane.b32.xlu1 %v3688_v20, %s5808_s24 }
 0x753   :  { %3805 = vrot.lane.b32.xlu0 %v3497_v1, %s5808_s24 }
 0x755   :  { %3711 = vrot.lane.b32.xlu1 %v3689_v44, %s5808_s24 }
 0x757   :  { %3807 = vrot.lane.b32.xlu0 %v3498_v21, %s5808_s24 }
 0x759   :  { %3713 = vrot.lane.b32.xlu1 %v3690_v25, %s5808_s24 }
 0x75b   :  { %3809 = vrot.lane.b32.xlu0 %v3786_v19, %s5808_s24 }
 0x78f   :  { %v3508_v31 = vpop.permute.xlu1 %3507 }
 0x790   :  { %3531 = vst.msk [vmem:[#allocation4] sm:$0xff] %vm572_vm3, %v3508_v31 }
 0x791   :  { %v3604_v32 = vpop.permute.xlu0 %3603 }
 0x792   :  { %3627 = vst.msk [vmem:[#allocation4 + $0x8] sm:$0xff] %vm572_vm3, %v3604_v32 }
 0x793   :  { %v3510_v57 = vpop.permute.xlu1 %3509 }
 0x794   :  { %3532 = vst.msk [vmem:[#allocation4 + $0x28] sm:$0xff] %vm572_vm3, %v3510_v57 }
 0x795   :  { %v3606_v40 = vpop.permute.xlu0 %3605 }
 0x796   :  { %3628 = vst.msk [vmem:[#allocation4 + $0x30] sm:$0xff] %vm572_vm3, %v3606_v40 }
 0x797   :  { %v3512_v63 = vpop.permute.xlu1 %3511  ;;  %v3859_v45 = vld [vmem:[#allocation4] sm:$0xff] }
 0x798   :  { %3533 = vst.msk [vmem:[#allocation4 + $0x50] sm:$0xff] %vm572_vm3, %v3512_v63  ;;  %v3863_v63 = vld [vmem:[#allocation4 + $0x20] sm:$0xff] }
 0x799   :  { %v3608_v43 = vpop.permute.xlu0 %3607  ;;  %v3860_v36 = vld [vmem:[#allocation4 + $0x8] sm:$0xff] }
 0x79a   :  { %3629 = vst.msk [vmem:[#allocation4 + $0x58] sm:$0xff] %vm572_vm3, %v3608_v43  ;;  %4252 = vmatprep.mubr.bf16.mxu1 %v3860_v36  ;;  %v3868_v36 = vld [vmem:[#allocation4 + $0x48] sm:$0xff] }
 0x79b   :  { %v3514_v38 = vpop.permute.xlu1 %3513  ;;  %4253 = vmatmul.mubr.bf16.vlgmr.msra.gmra.mrb[96].mxu1 %v3859_v45  ;;  %v3864_v53 = vld [vmem:[#allocation4 + $0x28] sm:$0xff]  ;;  %v3873_v45 = vld [vmem:[#allocation4 + $0x70] sm:$0xff] }
 0x79c   :  { %3534 = vst.msk [vmem:[#allocation4 + $0x78] sm:$0xff] %vm572_vm3, %v3514_v38  ;;  %5626 = vmatpush3.bf16.msra.mxu1 %v7161_v28  ;;  %v5801_v28 = vld [vmem:[%s7527_s6 + $0x398] sm:$0xff]  }
 0x79d   :  { %v3610_v49 = vpop.permute.xlu0 %3609  ;;  %v3865_v51 = vld [vmem:[#allocation4 + $0x30] sm:$0xff]  ;;  %5627 = vmatprep.subr.bf16.mxu1 %v5795_v30 }
 0x79e   :  { %3630 = vst.msk [vmem:[#allocation4 + $0x80] sm:$0xff] %vm572_vm3, %v3610_v49  ;;  %4260 = vmatprep.mubr.bf16.mxu1 %v3865_v51  ;;  %v3878_v49 = vld [vmem:[#allocation4 + $0x98] sm:$0xff]  ;;  %v3883_v51 = vld [vmem:[#allocation4 + $0xc0] sm:$0xff] }
 0x79f   :  { %v3700_v50 = vpop.permute.xlu1 %3699  ;;  %v3869_v7 = vld [vmem:[#allocation4 + $0x50] sm:$0xff] }
 0x7a0   :  { %3723 = vst.msk [vmem:[#allocation4 + $0x10] sm:$0xff] %vm572_vm3, %v3700_v50  ;;  %5628 = vmatpush3.bf16.msra.mxu1 %v5795_v30  ;;  %v3893_v50 = vld [vmem:[#allocation4 + $0x110] sm:$0xff] }
 0x7a1   :  { %v3796_v24 = vpop.permute.xlu0 %3795  ;;  %5629 = vmatprep.subr.bf16.mxu1 %v5800_v52  ;;  %v3870_v54 = vld [vmem:[#allocation4 + $0x58] sm:$0xff] }
 0x7a2   :  { %3819 = vst.msk [vmem:[#allocation4 + $0x18] sm:$0xff] %vm572_vm3, %v3796_v24  ;;  %v3898_v24 = vld [vmem:[#allocation4 + $0x138] sm:$0xff] }
 0x7a3   :  { %v3516_v14 = vpop.permute.xlu1 %3515  ;;  %4261 = vmatmul.mubr.bf16.gmra.mrb[100].mxu1 %v3864_v53  ;;  %v3874_v4 = vld [vmem:[#allocation4 + $0x78] sm:$0xff] }
 0x7a4   :  { %3535 = vst.msk [vmem:[#allocation4 + $0xa0] sm:$0xff] %vm572_vm3, %v3516_v14  ;;  %4268 = vmatprep.mubr.bf16.mxu1 %v3870_v54  ;;  %5630 = vmatpush3.bf16.msra.mxu1 %v5800_v52  ;;  %v3888_v52 = vld [vmem:[#allocation4 + $0xe8] sm:$0xff] }
 0x7a5   :  { %v3612_v34 = vpop.permute.xlu0 %3611  ;;  %5631 = vmatprep.subr.bf16.mxu1 %v5801_v28  ;;  %v3875_v17 = vld [vmem:[#allocation4 + $0x80] sm:$0xff] }
 0x7a6   :  { %3631 = vst.msk [vmem:[#allocation4 + $0xa8] sm:$0xff] %vm572_vm3, %v3612_v34 }
 0x7a7   :  { %v3702_v3 = vpop.permute.xlu1 %3701  ;;  %v3861_v33 = vld [vmem:[#allocation4 + $0x10] sm:$0xff] }
 0x7a8   :  { %3724 = vst.msk [vmem:[#allocation4 + $0x38] sm:$0xff] %vm572_vm3, %v3702_v3  ;;  %5632 = vmatpush3.bf16.msra.mxu1 %v5801_v28 }
 0x7a9   :  { %v3798_v55 = vpop.permute.xlu0 %3797  ;;  %v3862_v27 = vld [vmem:[#allocation4 + $0x18] sm:$0xff]  ;;  %5633 = vmatprep.subr.bf16.mxu1 %v5802_v0 }
 0x7aa   :  { %3820 = vst.msk [vmem:[#allocation4 + $0x40] sm:$0xff] %vm572_vm3, %v3798_v55  ;;  %4349 = vmatprep.mubr.bf16.mxu0 %v3862_v27 }
 0x7ab   :  { %v3518_v35 = vpop.permute.xlu1 %3517  ;;  %4269 = vmatmul.mubr.bf16.gmra.mrb[104].mxu1 %v3869_v7  ;;  %4350 = vmatmul.mubr.bf16.vlgmr.msra.gmra.mrb[112].mxu0 %v3861_v33  ;;  %v3879_v37 = vld [vmem:[#allocation4 + $0xa0] sm:$0xff] }
 0x7ac   :  { %3536 = vst.msk [vmem:[#allocation4 + $0xc8] sm:$0xff] %vm572_vm3, %v3518_v35  ;;  %4276 = vmatprep.mubr.bf16.mxu1 %v3875_v17  ;;  %5634 = vmatpush3.bf16.msra.mxu1 %v5802_v0 }
 0x7ad   :  { %v3614_v56 = vpop.permute.xlu0 %3613  ;;  %5635 = vmatprep.subr.bf16.mxu1 %v5803_v58  ;;  %v3880_v13 = vld [vmem:[#allocation4 + $0xa8] sm:$0xff] }
 0x7ae   :  { %3632 = vst.msk [vmem:[#allocation4 + $0xd0] sm:$0xff] %vm572_vm3, %v3614_v56 }
 0x7af   :  { %v3704_v61 = vpop.permute.xlu1 %3703  ;;  %v3866_v11 = vld [vmem:[#allocation4 + $0x38] sm:$0xff] }
 0x7b0   :  { %3725 = vst.msk [vmem:[#allocation4 + $0x60] sm:$0xff] %vm572_vm3, %v3704_v61  ;;  %5636 = vmatpush3.bf16.msra.mxu1 %v5803_v58 }
 0x7b1   :  { %v3800_v42 = vpop.permute.xlu0 %3799  ;;  %v3867_v62 = vld [vmem:[#allocation4 + $0x40] sm:$0xff]  ;;  %5637 = vmatprep.subr.bf16.mxu1 %v5804_v22 }
 0x7b2   :  { %3821 = vst.msk [vmem:[#allocation4 + $0x68] sm:$0xff] %vm572_vm3, %v3800_v42  ;;  %4357 = vmatprep.mubr.bf16.mxu0 %v3867_v62 }
 0x7b3   :  { %v3520_v60 = vpop.permute.xlu1 %3519  ;;  %4277 = vmatmul.mubr.bf16.gmra.mrb[108].mxu1 %v3874_v4  ;;  %4358 = vmatmul.mubr.bf16.gmra.mrb[116].mxu0 %v3866_v11  ;;  %v3884_v1 = vld [vmem:[#allocation4 + $0xc8] sm:$0xff] }
 0x7b4   :  { %3537 = vst.msk [vmem:[#allocation4 + $0xf0] sm:$0xff] %vm572_vm3, %v3520_v60  ;;  %4284 = vmatprep.mubr.bf16.mxu1 %v3880_v13  ;;  %5638 = vmatpush3.bf16.msra.mxu1 %v5804_v22 }
 0x7b5   :  { %v3616_v16 = vpop.permute.xlu0 %3615  ;;  %5639 = vmatprep.subr.bf16.mxu1 %v5805_v47  ;;  %v3885_v6 = vld [vmem:[#allocation4 + $0xd0] sm:$0xff] }
 0x7b6   :  { %3633 = vst.msk [vmem:[#allocation4 + $0xf8] sm:$0xff] %vm572_vm3, %v3616_v16 }
 0x7b7   :  { %v3706_v15 = vpop.permute.xlu1 %3705  ;;  %v3871_v46 = vld [vmem:[#allocation4 + $0x60] sm:$0xff] }
 0x7b8   :  { %3726 = vst.msk [vmem:[#allocation4 + $0x88] sm:$0xff] %vm572_vm3, %v3706_v15  ;;  %5640 = vmatpush3.bf16.msra.mxu1 %v5805_v47 }
 0x7b9   :  { %v3802_v18 = vpop.permute.xlu0 %3801  ;;  %v3872_v10 = vld [vmem:[#allocation4 + $0x68] sm:$0xff] }
 0x7ba   :  { %3822 = vst.msk [vmem:[#allocation4 + $0x90] sm:$0xff] %vm572_vm3, %v3802_v18  ;;  %4365 = vmatprep.mubr.bf16.mxu0 %v3872_v10 }
 0x7bb   :  { %v3522_v39 = vpop.permute.xlu1 %3521  ;;  %4285 = vmatmul.mubr.bf16.gmra.mrb[112].mxu1 %v3879_v37  ;;  %4366 = vmatmul.mubr.bf16.gmra.mrb[120].mxu0 %v3871_v46  ;;  %v3889_v20 = vld [vmem:[#allocation4 + $0xf0] sm:$0xff] }
 0x7bc   :  { %3538 = vst.msk [vmem:[#allocation4 + $0x118] sm:$0xff] %vm572_vm3, %v3522_v39  ;;  %4292 = vmatprep.mubr.bf16.mxu1 %v3885_v6 }
 0x7bd   :  { %v3618_v12 = vpop.permute.xlu0 %3617  ;;  %v3890_v41 = vld [vmem:[#allocation4 + $0xf8] sm:$0xff] }
 0x7be   :  { %3634 = vst.msk [vmem:[#allocation4 + $0x120] sm:$0xff] %vm572_vm3, %v3618_v12 }
 0x7bf   :  { %v3708_v23 = vpop.permute.xlu1 %3707  ;;  %v3876_v2 = vld [vmem:[#allocation4 + $0x88] sm:$0xff] }
 0x7c0   :  { %3727 = vst.msk [vmem:[#allocation4 + $0xb0] sm:$0xff] %vm572_vm3, %v3708_v23 }
 0x7c1   :  { %v3804_v29 = vpop.permute.xlu0 %3803  ;;  %v3877_v5 = vld [vmem:[#allocation4 + $0x90] sm:$0xff] }
 0x7c2   :  { %3823 = vst.msk [vmem:[#allocation4 + $0xb8] sm:$0xff] %vm572_vm3, %v3804_v29  ;;  %4373 = vmatprep.mubr.bf16.mxu0 %v3877_v5 }
 0x7c3   :  { %v3710_v8 = vpop.permute.xlu1 %3709  ;;  %4293 = vmatmul.mubr.bf16.gmra.mrb[116].mxu1 %v3884_v1  ;;  %4374 = vmatmul.mubr.bf16.gmra.mrb[124].mxu0 %v3876_v2  ;;  %v3894_v32 = vld [vmem:[#allocation4 + $0x118] sm:$0xff] }
 0x7c4   :  { %3728 = vst.msk [vmem:[#allocation4 + $0xd8] sm:$0xff] %vm572_vm3, %v3710_v8  ;;  %4300 = vmatprep.mubr.bf16.mxu1 %v3890_v41 }
 0x7c5   :  { %v3806_v48 = vpop.permute.xlu0 %3805  ;;  %v3895_v25 = vld [vmem:[#allocation4 + $0x120] sm:$0xff] }
 0x7c6   :  { %3824 = vst.msk [vmem:[#allocation4 + $0xe0] sm:$0xff] %vm572_vm3, %v3806_v48 }
 0x7c7   :  { %v3712_v21 = vpop.permute.xlu1 %3711  ;;  %v3881_v44 = vld [vmem:[#allocation4 + $0xb0] sm:$0xff] }
 0x7c8   :  { %3729 = vst.msk [vmem:[#allocation4 + $0x100] sm:$0xff] %vm572_vm3, %v3712_v21 }
 0x7c9   :  { %v3808_v59 = vpop.permute.xlu0 %3807  ;;  %v3882_v26 = vld [vmem:[#allocation4 + $0xb8] sm:$0xff] }
 0x7ca   :  { %3825 = vst.msk [vmem:[#allocation4 + $0x108] sm:$0xff] %vm572_vm3, %v3808_v59  ;;  %4381 = vmatprep.mubr.bf16.mxu0 %v3882_v26 }
 0x7cb   :  { %v3714_v9 = vpop.permute.xlu1 %3713  ;;  %4301 = vmatmul.mubr.bf16.gmra.mrb[120].mxu1 %v3889_v20  ;;  %4382 = vmatmul.mubr.bf16.gmra.mrb[128].mxu0 %v3881_v44  ;;  %v3886_v57 = vld [vmem:[#allocation4 + $0xd8] sm:$0xff] }
 0x7cc   :  { %3730 = vst.msk [vmem:[#allocation4 + $0x128] sm:$0xff] %vm572_vm3, %v3714_v9  ;;  %4308 = vmatprep.mubr.bf16.mxu1 %v3895_v25 }
 0x7cd   :  { %v3810_v19 = vpop.permute.xlu0 %3809  ;;  %v3887_v31 = vld [vmem:[#allocation4 + $0xe0] sm:$0xff] }
 0x7ce   :  { %3826 = vst.msk [vmem:[#allocation4 + $0x130] sm:$0xff] %vm572_vm3, %v3810_v19  ;;  %4389 = vmatprep.mubr.bf16.mxu0 %v3887_v31 }
 0x7cf   :  { %v3891_v43 = vld [vmem:[#allocation4 + $0x100] sm:$0xff] }
 0x7d1   :  { %v3892_v40 = vld [vmem:[#allocation4 + $0x108] sm:$0xff] }
 0x7d3   :  { %4309 = vmatmul.mubr.bf16.gmra.mrb[124].mxu1 %v3894_v32  ;;  %4390 = vmatmul.mubr.bf16.gmra.mrb[132].mxu0 %v3886_v57  ;;  %v3896_v38 = vld [vmem:[#allocation4 + $0x128] sm:$0xff] }
 0x7d4   :  { %4397 = vmatprep.mubr.bf16.mxu0 %v3892_v40  ;;  %5641 = vmatprep.mubr.bf16.mxu1 %v3863_v63 }
 0x7d5   :  { %v3897_v30 = vld [vmem:[#allocation4 + $0x130] sm:$0xff] }
 0x7db   :  { %4398 = vmatmul.mubr.bf16.gmra.mrb[136].mxu0 %v3891_v43  ;;  %5642 = vmatmul.mubr.bf16.vlgmr.msra.gmra.mrb[128].mxu1 %v3868_v36 }
 0x7dc   :  { %4405 = vmatprep.mubr.bf16.mxu0 %v3897_v30  ;;  %5645 = vmatprep.mubr.bf16.mxu1 %v3873_v45 }
 0x7e3   :  { %4406 = vmatmul.mubr.bf16.gmra.mrb[140].mxu0 %v3896_v38  ;;  %5646 = vmatmul.mubr.bf16.gmra.mrb[132].mxu1 %v3878_v49 }
 0x7e4   :  { %5649 = vmatprep.mubr.bf16.mxu1 %v3883_v51 }
 0x7eb   :  { %5650 = vmatmul.mubr.bf16.gmra.mrb[136].mxu1 %v3888_v52 }
 0x7ec   :  { %5653 = vmatprep.mubr.bf16.mxu1 %v3893_v50 }
 0x7f3   :  { %5654 = vmatmul.mubr.bf16.gmra.mrb[140].mxu1 %v3898_v24 }
 0x86e   :  { %v5337_v28 = vpop.f32.mrb[96].mxu1 }
 0x86f   :  { %v5338_v53 = vpop.f32.mrb[97].mxu1 }
 0x870   :  { %v5339_v14 = vadd.f32 %v5338_v53, %v5337_v28  ;;  %v5340_v54 = vpop.f32.mrb[98].mxu1 }
 0x871   :  { %v5341_v34 = vpop.f32.mrb[99].mxu1 }
 0x872   :  { %v5342_v0 = vadd.f32 %v5341_v34, %v5340_v54 }
 0x876   :  { %v5343_v3 = vpop.f32.mrb[100].mxu1 }
 0x877   :  { %v5344_v55 = vpop.f32.mrb[101].mxu1 }
 0x878   :  { %v5345_v27 = vadd.f32 %v5344_v55, %v5343_v3  ;;  %v5346_v58 = vpop.f32.mrb[102].mxu1 }
 0x879   :  { %v5347_v7 = vpop.f32.mrb[103].mxu1 }
 0x87a   :  { %v5348_v33 = vadd.f32 %v5347_v7, %v5346_v58 }
 0x87e   :  { %v5349_v35 = vpop.f32.mrb[104].mxu1  ;;  %v5401_v17 = vpop.f32.mrb[112].mxu0 }
 0x87f   :  { %v5350_v56 = vpop.f32.mrb[105].mxu1  ;;  %v5402_v22 = vpop.f32.mrb[113].mxu0 }
 0x880   :  { %v5351_v61 = vadd.f32 %v5350_v56, %v5349_v35  ;;  %v5403_v42 = vadd.f32 %v5402_v22, %v5401_v17  ;;  %v5352_v62 = vpop.f32.mrb[106].mxu1  ;;  %v5404_v47 = vpop.f32.mrb[114].mxu0 }
 0x881   :  { %v5353_v4 = vpop.f32.mrb[107].mxu1  ;;  %v5405_v11 = vpop.f32.mrb[115].mxu0 }
 0x882   :  { %v5354_v60 = vadd.f32 %v5353_v4, %v5352_v62  ;;  %v5406_v13 = vadd.f32 %v5405_v11, %v5404_v47  ;;  %v7409_v16 = vadd.f32 %v5403_v42, %v5339_v14 }
 0x884   :  { %v7411_v15 = vadd.f32 %v5406_v13, %v5342_v0 }
 0x886   :  { %v5355_v18 = vpop.f32.mrb[108].mxu1  ;;  %v5407_v10 = vpop.f32.mrb[116].mxu0 }
 0x887   :  { %v5356_v37 = vpop.f32.mrb[109].mxu1  ;;  %v5408_v46 = vpop.f32.mrb[117].mxu0 }
 0x888   :  { %v5357_v39 = vadd.f32 %v5356_v37, %v5355_v18  ;;  %v5409_v6 = vadd.f32 %v5408_v46, %v5407_v10  ;;  %v5358_v12 = vpop.f32.mrb[110].mxu1  ;;  %v5410_v23 = vpop.f32.mrb[118].mxu0 }
 0x889   :  { %v5359_v29 = vpop.f32.mrb[111].mxu1  ;;  %v5411_v5 = vpop.f32.mrb[119].mxu0 }
 0x88a   :  { %v5360_v1 = vadd.f32 %v5359_v29, %v5358_v12  ;;  %v5412_v2 = vadd.f32 %v5411_v5, %v5410_v23  ;;  %v4360_v8 = vadd.f32 %v5409_v6, %v5345_v27 }
 0x88c   :  { %v7413_v41 = vadd.f32 %v5412_v2, %v5348_v33 }
 0x88e   :  { %v5361_v48 = vpop.f32.mrb[112].mxu1  ;;  %v5413_v21 = vpop.f32.mrb[120].mxu0 }
 0x88f   :  { %v5362_v59 = vpop.f32.mrb[113].mxu1  ;;  %v5414_v26 = vpop.f32.mrb[121].mxu0 }
 0x890   :  { %v5363_v20 = vadd.f32 %v5362_v59, %v5361_v48  ;;  %v5415_v44 = vadd.f32 %v5414_v26, %v5413_v21  ;;  %v5364_v9 = vpop.f32.mrb[114].mxu1  ;;  %v5416_v25 = vpop.f32.mrb[122].mxu0 }
 0x891   :  { %v5365_v19 = vpop.f32.mrb[115].mxu1  ;;  %v5417_v31 = vpop.f32.mrb[123].mxu0 }
 0x892   :  { %v5366_v32 = vadd.f32 %v5365_v19, %v5364_v9  ;;  %v5418_v57 = vadd.f32 %v5417_v31, %v5416_v25  ;;  %v7415_v40 = vadd.f32 %v5415_v44, %v5351_v61 }
 0x894   :  { %v7417_v63 = vadd.f32 %v5418_v57, %v5354_v60 }
 0x896   :  { %v5367_v43 = vpop.f32.mrb[116].mxu1  ;;  %v5419_v36 = vpop.f32.mrb[124].mxu0 }
 0x897   :  { %v5368_v30 = vpop.f32.mrb[117].mxu1  ;;  %v5420_v45 = vpop.f32.mrb[125].mxu0 }
 0x898   :  { %v5369_v38 = vadd.f32 %v5368_v30, %v5367_v43  ;;  %v5421_v49 = vadd.f32 %v5420_v45, %v5419_v36  ;;  %v5370_v51 = vpop.f32.mrb[118].mxu1  ;;  %v5422_v52 = vpop.f32.mrb[126].mxu0 }
 0x899   :  { %v5371_v50 = vpop.f32.mrb[119].mxu1  ;;  %v5423_v24 = vpop.f32.mrb[127].mxu0 }
 0x89a   :  { %v5372_v28 = vadd.f32 %v5371_v50, %v5370_v51  ;;  %v5424_v53 = vadd.f32 %v5423_v24, %v5422_v52  ;;  %v4376_v14 = vadd.f32 %v5421_v49, %v5357_v39 }
 0x89c   :  { %v4379_v54 = vadd.f32 %v5424_v53, %v5360_v1 }
 0x89e   :  { %v5373_v34 = vpop.f32.mrb[120].mxu1  ;;  %v5425_v0 = vpop.f32.mrb[128].mxu0 }
 0x89f   :  { %v5374_v3 = vpop.f32.mrb[121].mxu1  ;;  %v5426_v55 = vpop.f32.mrb[129].mxu0 }
 0x8a0   :  { %v5375_v27 = vadd.f32 %v5374_v3, %v5373_v34  ;;  %v5427_v58 = vadd.f32 %v5426_v55, %v5425_v0  ;;  %v5376_v7 = vpop.f32.mrb[122].mxu1  ;;  %v5428_v33 = vpop.f32.mrb[130].mxu0 }
 0x8a1   :  { %v5377_v35 = vpop.f32.mrb[123].mxu1  ;;  %v5429_v17 = vpop.f32.mrb[131].mxu0 }
 0x8a2   :  { %v5378_v56 = vadd.f32 %v5377_v35, %v5376_v7  ;;  %v5430_v22 = vadd.f32 %v5429_v17, %v5428_v33  ;;  %v4384_v61 = vadd.f32 %v5427_v58, %v5363_v20 }
 0x8a4   :  { %v7419_v42 = vadd.f32 %v5430_v22, %v5366_v32 }
 0x8a6   :  { %v5379_v62 = vpop.f32.mrb[124].mxu1  ;;  %v5431_v47 = vpop.f32.mrb[132].mxu0 }
 0x8a7   :  { %v5380_v4 = vpop.f32.mrb[125].mxu1  ;;  %v5432_v11 = vpop.f32.mrb[133].mxu0 }
 0x8a8   :  { %v5381_v60 = vadd.f32 %v5380_v4, %v5379_v62  ;;  %v5433_v13 = vadd.f32 %v5432_v11, %v5431_v47  ;;  %v5382_v18 = vpop.f32.mrb[126].mxu1  ;;  %v5434_v10 = vpop.f32.mrb[134].mxu0 }
 0x8a9   :  { %v5383_v37 = vpop.f32.mrb[127].mxu1  ;;  %v5435_v46 = vpop.f32.mrb[135].mxu0 }
 0x8aa   :  { %v5384_v39 = vadd.f32 %v5383_v37, %v5382_v18  ;;  %v5436_v6 = vadd.f32 %v5435_v46, %v5434_v10  ;;  %v4392_v12 = vadd.f32 %v5433_v13, %v5369_v38 }
 0x8ac   :  { %v4395_v23 = vadd.f32 %v5436_v6, %v5372_v28 }
 0x8ae   :  { %v5437_v29 = vpop.f32.mrb[136].mxu0  ;;  %v5643_v5 = vpop.f32.mrb[128].mxu1 }
 0x8af   :  { %v4457_v1 = vadd.f32 %v5643_v5, %v4360_v8  ;;  %v5438_v2 = vpop.f32.mrb[137].mxu0  ;;  %v4448_v48 = vpop.f32.mrb[129].mxu1 }
 0x8b0   :  { %v5439_v21 = vadd.f32 %v5438_v2, %v5437_v29  ;;  %v4449_v59 = vadd.f32 %v4448_v48, %v7409_v16  ;;  %v5440_v26 = vpop.f32.mrb[138].mxu0  ;;  %v5644_v20 = vpop.f32.mrb[130].mxu1 }
 0x8b1   :  { %v4460_v44 = vadd.f32 %v5644_v20, %v7413_v41  ;;  %4531 = vrot.lane.b32.xlu0 %v4457_v1, %s5808_s24  ;;  %v5441_v9 = vpop.f32.mrb[139].mxu0  ;;  %v4451_v25 = vpop.f32.mrb[131].mxu1 }
 0x8b2   :  { %v5442_v19 = vadd.f32 %v5441_v9, %v5440_v26  ;;  %v4452_v31 = vadd.f32 %v4451_v25, %v7411_v15  ;;  %v4400_v32 = vadd.f32 %v5439_v21, %v5375_v27 }
 0x8b3   :  { %4533 = vrot.lane.b32.xlu1 %v4460_v44, %s5808_s24 }
 0x8b4   :  { %v4403_v8 = vadd.f32 %v5442_v19, %v5378_v56 }
 0x8b5   :  { %4527 = vrot.lane.b32.xlu0 %v4449_v59, %s5808_s24 }
 0x8b6   :  { %v5443_v57 = vpop.f32.mrb[140].mxu0  ;;  %v5647_v43 = vpop.f32.mrb[132].mxu1 }
 0x8b7   :  { %v4473_v16 = vadd.f32 %v5647_v43, %v4376_v14  ;;  %v4464_v36 = vpop.f32.mrb[133].mxu1  ;;  %4529 = vrot.lane.b32.xlu1 %v4452_v31, %s5808_s24  ;;  %v5444_v41 = vpop.f32.mrb[141].mxu0 }
 0x8b8   :  { %v4465_v30 = vadd.f32 %v4464_v36, %v7415_v40  ;;  %v5445_v45 = vadd.f32 %v5444_v41, %v5443_v57  ;;  %v5446_v38 = vpop.f32.mrb[142].mxu0  ;;  %v5648_v49 = vpop.f32.mrb[134].mxu1 }
 0x8b9   :  { %v4476_v51 = vadd.f32 %v5648_v49, %v4379_v54  ;;  %v4467_v15 = vpop.f32.mrb[135].mxu1  ;;  %4539 = vrot.lane.b32.xlu0 %v4473_v16, %s5808_s24  ;;  %v5447_v52 = vpop.f32.mrb[143].mxu0 }
 0x8ba   :  { %v4468_v50 = vadd.f32 %v4467_v15, %v7417_v63  ;;  %v5448_v24 = vadd.f32 %v5447_v52, %v5446_v38  ;;  %v4408_v28 = vadd.f32 %v5445_v45, %v5381_v60 }
 0x8bb   :  { %4541 = vrot.lane.b32.xlu1 %v4476_v51, %s5808_s24 }
 0x8bc   :  { %v4411_v53 = vadd.f32 %v5448_v24, %v5384_v39 }
 0x8bd   :  { %4535 = vrot.lane.b32.xlu0 %v4465_v30, %s5808_s24 }
 0x8be   :  { %v5651_v14 = vpop.f32.mrb[136].mxu1 }
 0x8bf   :  { %v4489_v34 = vadd.f32 %v5651_v14, %v4392_v12  ;;  %v4480_v40 = vpop.f32.mrb[137].mxu1  ;;  %4537 = vrot.lane.b32.xlu1 %v4468_v50, %s5808_s24 }
 0x8c0   :  { %v4481_v0 = vadd.f32 %v4480_v40, %v4384_v61  ;;  %v5652_v54 = vpop.f32.mrb[138].mxu1 }
 0x8c1   :  { %v4492_v3 = vadd.f32 %v5652_v54, %v4395_v23  ;;  %v4483_v55 = vpop.f32.mrb[139].mxu1  ;;  %4547 = vrot.lane.b32.xlu0 %v4489_v34, %s5808_s24 }
 0x8c2   :  { %v4484_v63 = vadd.f32 %v4483_v55, %v7419_v42 }
 0x8c3   :  { %4549 = vrot.lane.b32.xlu1 %v4492_v3, %s5808_s24 }
 0x8c5   :  { %4543 = vrot.lane.b32.xlu0 %v4481_v0, %s5808_s24 }
 0x8c6   :  { %v5655_v27 = vpop.f32.mrb[140].mxu1 }
 0x8c7   :  { %v4505_v58 = vadd.f32 %v5655_v27, %v4408_v28  ;;  %v4496_v7 = vpop.f32.mrb[141].mxu1  ;;  %4545 = vrot.lane.b32.xlu1 %v4484_v63, %s5808_s24 }
 0x8c8   :  { %v4497_v33 = vadd.f32 %v4496_v7, %v4400_v32  ;;  %v5656_v35 = vpop.f32.mrb[142].mxu1 }
 0x8c9   :  { %v4508_v17 = vadd.f32 %v5656_v35, %v4411_v53  ;;  %v4499_v56 = vpop.f32.mrb[143].mxu1 }
 0x8ca   :  { %v4500_v22 = vadd.f32 %v4499_v56, %v4403_v8  ;;  %4551 = vrot.lane.b32.xlu0 %v4497_v33, %s5808_s24 }
 0x8cc   :  { %4553 = vrot.lane.b32.xlu1 %v4500_v22, %s5808_s24 }
 0x8ce   :  { %4555 = vrot.lane.b32.xlu0 %v4505_v58, %s5808_s24 }
 0x8d0   :  { %4557 = vrot.lane.b32.xlu1 %v4508_v17, %s5808_s24 }
 0x923   :  { %v4532_v61 = vpop.permute.xlu0 %4531 }
 0x924   :  { %4578 = vst.msk [vmem:[#allocation2 + $0x10] sm:$0xff] %vm4575_vm6, %v4532_v61 }
 0x925   :  { %v4534_v42 = vpop.permute.xlu1 %4533 }
 0x926   :  { %4579 = vst.msk [vmem:[#allocation2 + $0x18] sm:$0xff] %vm4575_vm6, %v4534_v42 }
 0x927   :  { %v4528_v62 = vpop.permute.xlu0 %4527 }
 0x928   :  { %4576 = vst.msk [vmem:[#allocation2] sm:$0xff] %vm4575_vm6, %v4528_v62 }
 0x929   :  { %v4530_v47 = vpop.permute.xlu1 %4529 }
 0x92a   :  { %4577 = vst.msk [vmem:[#allocation2 + $0x8] sm:$0xff] %vm4575_vm6, %v4530_v47 }
 0x92b   :  { %v4594_v4 = vld [vmem:[#allocation2 + $0x10] sm:$0xff]  ;;  %v4540_v11 = vpop.permute.xlu0 %4539 }
 0x92c   :  { %4611 = vst.msk [vmem:[%s7530_s7 + $0x10] sm:$0xff] %vm4608_vm7, %v4594_v4 }
 0x92d   :  { %4582 = vst.msk [vmem:[#allocation2 + $0x30] sm:$0xff] %vm4575_vm6, %v4540_v11  ;;  %v4595_v60 = vld [vmem:[#allocation2 + $0x18] sm:$0xff]  ;;  %v4542_v13 = vpop.permute.xlu1 %4541 }
 0x92e   :  { %4612 = vst.msk [vmem:[%s7530_s7 + $0x18] sm:$0xff] %vm4608_vm7, %v4595_v60 }
 0x92f   :  { %4583 = vst.msk [vmem:[#allocation2 + $0x38] sm:$0xff] %vm4575_vm6, %v4542_v13  ;;  %v4592_v18 = vld [vmem:[#allocation2] sm:$0xff]  ;;  %v4536_v10 = vpop.permute.xlu0 %4535 }
 0x930   :  { %4609 = vst.msk [vmem:[%s7530_s7] sm:$0xff] %vm4608_vm7, %v4592_v18 }
 0x931   :  { %4580 = vst.msk [vmem:[#allocation2 + $0x20] sm:$0xff] %vm4575_vm6, %v4536_v10  ;;  %v4593_v37 = vld [vmem:[#allocation2 + $0x8] sm:$0xff]  ;;  %v4538_v46 = vpop.permute.xlu1 %4537 }
 0x932   :  { %4610 = vst.msk [vmem:[%s7530_s7 + $0x8] sm:$0xff] %vm4608_vm7, %v4593_v37 }
 0x933   :  { %4581 = vst.msk [vmem:[#allocation2 + $0x28] sm:$0xff] %vm4575_vm6, %v4538_v46  ;;  %v4548_v6 = vpop.permute.xlu0 %4547 }
 0x934   :  { %v4598_v39 = vld [vmem:[#allocation2 + $0x30] sm:$0xff]  ;;  %4586 = vst.msk [vmem:[#allocation2 + $0x50] sm:$0xff] %vm4575_vm6, %v4548_v6 }
 0x935   :  { %4615 = vst.msk [vmem:[%s7530_s7 + $0x30] sm:$0xff] %vm4608_vm7, %v4598_v39  ;;  %v4550_v23 = vpop.permute.xlu1 %4549 }
 0x936   :  { %v4599_v12 = vld [vmem:[#allocation2 + $0x38] sm:$0xff]  ;;  %4587 = vst.msk [vmem:[#allocation2 + $0x58] sm:$0xff] %vm4575_vm6, %v4550_v23 }
 0x937   :  { %4616 = vst.msk [vmem:[%s7530_s7 + $0x38] sm:$0xff] %vm4608_vm7, %v4599_v12  ;;  %v4544_v5 = vpop.permute.xlu0 %4543 }
 0x938   :  { %v4596_v29 = vld [vmem:[#allocation2 + $0x20] sm:$0xff]  ;;  %4584 = vst.msk [vmem:[#allocation2 + $0x40] sm:$0xff] %vm4575_vm6, %v4544_v5 }
 0x939   :  { %4613 = vst.msk [vmem:[%s7530_s7 + $0x20] sm:$0xff] %vm4608_vm7, %v4596_v29  ;;  %v4546_v2 = vpop.permute.xlu1 %4545 }
 0x93a   :  { %v4597_v1 = vld [vmem:[#allocation2 + $0x28] sm:$0xff]  ;;  %4585 = vst.msk [vmem:[#allocation2 + $0x48] sm:$0xff] %vm4575_vm6, %v4546_v2 }
 0x93b   :  { %4614 = vst.msk [vmem:[%s7530_s7 + $0x28] sm:$0xff] %vm4608_vm7, %v4597_v1  ;;  %v4602_v48 = vld [vmem:[#allocation2 + $0x50] sm:$0xff] }
 0x93c   :  { %4619 = vst.msk [vmem:[%s7530_s7 + $0x50] sm:$0xff] %vm4608_vm7, %v4602_v48  ;;  %v4552_v21 = vpop.permute.xlu0 %4551 }
 0x93d   :  { %v4603_v59 = vld [vmem:[#allocation2 + $0x58] sm:$0xff]  ;;  %4588 = vst.msk [vmem:[#allocation2 + $0x60] sm:$0xff] %vm4575_vm6, %v4552_v21 }
 0x93e   :  { %4620 = vst.msk [vmem:[%s7530_s7 + $0x58] sm:$0xff] %vm4608_vm7, %v4603_v59  ;;  %v4554_v26 = vpop.permute.xlu1 %4553 }
 0x93f   :  { %v4600_v20 = vld [vmem:[#allocation2 + $0x40] sm:$0xff]  ;;  %4589 = vst.msk [vmem:[#allocation2 + $0x68] sm:$0xff] %vm4575_vm6, %v4554_v26 }
 0x940   :  { %4617 = vst.msk [vmem:[%s7530_s7 + $0x40] sm:$0xff] %vm4608_vm7, %v4600_v20  ;;  %v4556_v44 = vpop.permute.xlu0 %4555 }
 0x941   :  { %v4601_v9 = vld [vmem:[#allocation2 + $0x48] sm:$0xff]  ;;  %4590 = vst.msk [vmem:[#allocation2 + $0x70] sm:$0xff] %vm4575_vm6, %v4556_v44 }
 0x942   :  { %4618 = vst.msk [vmem:[%s7530_s7 + $0x48] sm:$0xff] %vm4608_vm7, %v4601_v9  ;;  %v4558_v25 = vpop.permute.xlu1 %4557 }
 0x943   :  { %4591 = vst.msk [vmem:[#allocation2 + $0x78] sm:$0xff] %vm4575_vm6, %v4558_v25 }
 0x944   :  { %v4604_v19 = vld [vmem:[#allocation2 + $0x60] sm:$0xff] }
 0x945   :  { %4621 = vst.msk [vmem:[%s7530_s7 + $0x60] sm:$0xff] %vm4608_vm7, %v4604_v19 }
 0x946   :  { %v4605_v31 = vld [vmem:[#allocation2 + $0x68] sm:$0xff] }
 0x947   :  { %4622 = vst.msk [vmem:[%s7530_s7 + $0x68] sm:$0xff] %vm4608_vm7, %v4605_v31 }
 0x948   :  { %v4606_v32 = vld [vmem:[#allocation2 + $0x70] sm:$0xff] }
 0x949   :  { %4623 = vst.msk [vmem:[%s7530_s7 + $0x70] sm:$0xff] %vm4608_vm7, %v4606_v32 }
 0x94a   :  { %v4607_v8 = vld [vmem:[#allocation2 + $0x78] sm:$0xff] }
 0x94b   :  { %4624 = vst.msk [vmem:[%s7530_s7 + $0x78] sm:$0xff] %vm4608_vm7, %v4607_v8 }

</bundles_post_ra>
